<compile_context>
chip_gen: v7x
topology: tpu7x:2x2x1
jax: 0.10.0
libtpu: 0.0.40
codegen_flags: <defaults>
</compile_context>

<pallas_src>
import jax
import jax.numpy as jnp
import numpy as np
from jax import lax
from jax.experimental import pallas as pl
from jax.experimental.pallas import tpu as pltpu

_VMEM_LIMIT = 32 * 1024 * 1024  # explicit scoped-VMEM budget (safe on v5e/v6e/v7x)
_BN_EPS = 1e-5                  # torch BatchNorm2d default


# ---------------------------------------------------------------------------
# Kernels
# ---------------------------------------------------------------------------
def _make_conv_bn_relu_kernel(n_parts, n_mults):
    """Fused BasicConv2d over `n_parts` channel-concatenated inputs.

    The weight matrix is split per part so the channel concat never hits HBM;
    ReLU and `n_mults` element-wise multipliers are fused into the epilogue.
    Ref order: parts..., weights..., bias, multipliers..., out.
    """
    def kernel(*refs):
        p_refs = refs[:n_parts]                               # (1, 9*Ci_p, chunk)
        w_refs = refs[n_parts:2 * n_parts]                    # (Co, 9*Ci_p)
        b_ref = refs[2 * n_parts]                             # (Co, 1)
        m_refs = refs[2 * n_parts + 1:2 * n_parts + 1 + n_mults]
        o_ref = refs[-1]                                      # (1, Co, chunk)

        y = jnp.dot(w_refs[0][...], p_refs[0][0],
                    preferred_element_type=jnp.float32)
        for p, w in zip(p_refs[1:], w_refs[1:]):
            y = y + jnp.dot(w[...], p[0], preferred_element_type=jnp.float32)
        y = jnp.maximum(y + b_ref[...], 0.0)
        for m in m_refs:
            y = y * m[0]
        o_ref[0] = y.astype(o_ref.dtype)

    return kernel


def _conv_bn_relu_1x1_kernel(p_ref, w_ref, b_ref, wf_ref, bf_ref, o_ref):
    # Fused BasicConv2d (conv4) followed by the final 1x1 conv (with bias).
    h = jnp.maximum(
        jnp.dot(w_ref[...], p_ref[0], preferred_element_type=jnp.float32) + b_ref[...],
        0.0)
    o_ref[0] = (jnp.dot(wf_ref[...], h, preferred_element_type=jnp.float32)
                + bf_ref[...]).astype(o_ref.dtype)


def _bilinear_up_kernel(x_ref, ah_ref, awt_ref, o_ref):
    # x_ref: (1, C, H, W)  ah_ref: (OH, H)  awt_ref: (W, OW)  o_ref: (1, C, OH, OW)
    C = x_ref.shape[1]
    for c in range(C):  # small static channel count -> unrolled tiny matmuls
        t = jnp.dot(ah_ref[...], x_ref[0, c, :, :],
                    preferred_element_type=jnp.float32)            # (OH, W)
        o_ref[0, c, :, :] = jnp.dot(t, awt_ref[...],
                                    preferred_element_type=jnp.float32
                                    ).astype(o_ref.dtype)           # (OH, OW)


def _bilinear_up12_kernel(x_ref, ah1_ref, awt1_ref, ah2_ref, awt2_ref,
                          o1_ref, o2_ref):
    # Fused up(x) and up(up(x)): x read once, the 2x result reused in-register.
    # x: (1, C, H, W) -> o1: (1, C, 2H, 2W), o2: (1, C, 4H, 4W)
    C = x_ref.shape[1]
    for c in range(C):
        t = jnp.dot(ah1_ref[...], x_ref[0, c, :, :],
                    preferred_element_type=jnp.float32)             # (2H, W)
        u1 = jnp.dot(t, awt1_ref[...],
                     preferred_element_type=jnp.float32)            # (2H, 2W)
        o1_ref[0, c, :, :] = u1.astype(o1_ref.dtype)
        t2 = jnp.dot(ah2_ref[...], u1,
                     preferred_element_type=jnp.float32)            # (4H, 2W)
        o2_ref[0, c, :, :] = jnp.dot(t2, awt2_ref[...],
                                     preferred_element_type=jnp.float32
                                     ).astype(o2_ref.dtype)         # (4H, 4W)


# ---------------------------------------------------------------------------
# Wrapper-side layout helpers (pure data movement)
# ---------------------------------------------------------------------------
def _spatial_chunk(hw, target=4096):
    """Largest lane-dense chunk (multiple of 128 dividing hw) at/below target."""
    if hw <= target:
        return hw
    c = (target // 128) * 128
    while c >= 128:
        if hw % c == 0:
            return c
        c -= 128
    return hw


def _im2col_3x3(x):
    # TODO(synk): halo extraction is done as wrapper-side slicing (layout only);
    # an in-kernel shifted-window variant needs a lane-merging reshape Mosaic
    # does not cleanly support for arbitrary W.
    N, C, H, W = x.shape
    xp = jnp.pad(x, ((0, 0), (0, 0), (1, 1), (1, 1)))
    cols = [xp[:, :, dh:dh + H, dw:dw + W] for dh in range(3) for dw in range(3)]
    return jnp.concatenate(cols, axis=1).reshape(N, 9 * C, H * W)


def _fold_bn(p, eps=_BN_EPS):
    """Fold inference BatchNorm into the (bias-free) conv weight + bias column."""
    w, gamma, beta, mean, var = p["w"], p["gamma"], p["beta"], p["mean"], p["var"]
    scale = gamma / jnp.sqrt(var + eps)
    w_f = w * scale[:, None, None, None]              # (Cout, Cin, 3, 3)
    b_f = (beta - mean * scale).reshape(-1, 1)        # (Cout, 1)
    return w_f, b_f


def _weight_mat(w4, lo, hi):
    """(Cout, Cin, 3, 3) slice [lo:hi] of Cin -> (Cout, 9*(hi-lo)) in (kh, kw, ci) order."""
    cout = w4.shape[0]
    return jnp.transpose(w4[:, lo:hi], (0, 2, 3, 1)).reshape(cout, 9 * (hi - lo))


def _up2_matrix_np(in_size):
    """PyTorch bilinear 2x, align_corners=True, as a (2*in, in) matrix."""
    out_size = 2 * in_size
    if in_size == 1:
        return np.ones((out_size, 1), np.float32)
    src = np.arange(out_size, dtype=np.float64) * (in_size - 1) / (out_size - 1)
    i0 = np.clip(np.floor(src).astype(np.int64), 0, in_size - 2)
    w1 = (src - i0).astype(np.float32)
    A = np.zeros((out_size, in_size), np.float32)
    A[np.arange(out_size), i0] += 1.0 - w1
    A[np.arange(out_size), i0 + 1] += w1
    return A


# ---------------------------------------------------------------------------
# pallas_call wrappers
# ---------------------------------------------------------------------------
def bilinear_upsample2x(x):
    N, C, H, W = x.shape
    OH, OW = 2 * H, 2 * W
    ah = jnp.asarray(_up2_matrix_np(H))           # (OH, H)
    awt = jnp.asarray(_up2_matrix_np(W).T)        # (W, OW)
    return pl.pallas_call(
        _bilinear_up_kernel,
        out_shape=jax.ShapeDtypeStruct((N, C, OH, OW), x.dtype),
        grid_spec=pltpu.PrefetchScalarGridSpec(
            num_scalar_prefetch=0,
            grid=(N,),
            in_specs=[
                pl.BlockSpec((1, C, H, W), lambda n: (n, 0, 0, 0)),
                pl.BlockSpec((OH, H), lambda n: (0, 0)),
                pl.BlockSpec((W, OW), lambda n: (0, 0)),
            ],
            out_specs=pl.BlockSpec((1, C, OH, OW), lambda n: (n, 0, 0, 0))),
        compiler_params=pltpu.CompilerParams(
            dimension_semantics=("parallel",),
            vmem_limit_bytes=_VMEM_LIMIT),
    )(x, ah, awt)


def bilinear_upsample_x2_x4(x):
    """Fused up(x) and up(up(x)) in one kernel launch (two outputs)."""
    N, C, H, W = x.shape
    ah1 = jnp.asarray(_up2_matrix_np(H))          # (2H, H)
    awt1 = jnp.asarray(_up2_matrix_np(W).T)       # (W, 2W)
    ah2 = jnp.asarray(_up2_matrix_np(2 * H))      # (4H, 2H)
    awt2 = jnp.asarray(_up2_matrix_np(2 * W).T)   # (2W, 4W)
    return pl.pallas_call(
        _bilinear_up12_kernel,
        out_shape=(jax.ShapeDtypeStruct((N, C, 2 * H, 2 * W), x.dtype),
                   jax.ShapeDtypeStruct((N, C, 4 * H, 4 * W), x.dtype)),
        grid_spec=pltpu.PrefetchScalarGridSpec(
            num_scalar_prefetch=0,
            grid=(N,),
            in_specs=[
                pl.BlockSpec((1, C, H, W), lambda n: (n, 0, 0, 0)),
                pl.BlockSpec((2 * H, H), lambda n: (0, 0)),
                pl.BlockSpec((W, 2 * W), lambda n: (0, 0)),
                pl.BlockSpec((4 * H, 2 * H), lambda n: (0, 0)),
                pl.BlockSpec((2 * W, 4 * W), lambda n: (0, 0)),
            ],
            out_specs=[pl.BlockSpec((1, C, 2 * H, 2 * W), lambda n: (n, 0, 0, 0)),
                       pl.BlockSpec((1, C, 4 * H, 4 * W), lambda n: (n, 0, 0, 0))]),
        compiler_params=pltpu.CompilerParams(
            dimension_semantics=("parallel",),
            vmem_limit_bytes=_VMEM_LIMIT),
    )(x, ah1, awt1, ah2, awt2)


def conv3x3_bn_relu(xs, w4, b_col, multipliers=()):
    """Fused BasicConv2d over the channel-concatenation of `xs` (+ optional
    element-wise multipliers), NC(HW) layout, weight split per part so the
    concat never materializes in HBM."""
    if not isinstance(xs, (tuple, list)):
        xs = (xs,)
    N, _, H, W = xs[0].shape
    Co = w4.shape[0]
    HW = H * W
    chunk = _spatial_chunk(HW)
    for m in multipliers:
        assert m.shape == (N, Co, H, W), m.shape

    patches = [_im2col_3x3(x) for x in xs]        # each (N, 9*Ci, HW), lane-dense
    w_mats = []
    lo = 0
    for x in xs:
        ci = x.shape[1]
        w_mats.append(_weight_mat(w4, lo, lo + ci))
        lo += ci
    assert lo == w4.shape[1]
    mults = [m.reshape(N, Co, HW) for m in multipliers]

    in_specs = []
    for p in patches:
        in_specs.append(pl.BlockSpec((1, p.shape[1], chunk), lambda n, s: (n, 0, s)))
    for wm in w_mats:
        in_specs.append(pl.BlockSpec(wm.shape, lambda n, s: (0, 0)))   # resident
    in_specs.append(pl.BlockSpec((Co, 1), lambda n, s: (0, 0)))
    in_specs += [pl.BlockSpec((1, Co, chunk), lambda n, s: (n, 0, s)) for _ in mults]

    out = pl.pallas_call(
        _make_conv_bn_relu_kernel(len(patches), len(mults)),
        out_shape=jax.ShapeDtypeStruct((N, Co, HW), xs[0].dtype),
        grid_spec=pltpu.PrefetchScalarGridSpec(
            num_scalar_prefetch=0,
            grid=(N, HW // chunk),
            in_specs=in_specs,
            out_specs=pl.BlockSpec((1, Co, chunk), lambda n, s: (n, 0, s))),
        compiler_params=pltpu.CompilerParams(
            dimension_semantics=("parallel", "parallel"),
            vmem_limit_bytes=_VMEM_LIMIT),
    )(*patches, *w_mats, b_col, *mults)
    return out.reshape(N, Co, H, W)


def conv3x3_bn_relu_1x1(x, w4, b_col, w_out, b_out):
    """Fused conv4 (BasicConv2d) + final 1x1 conv (with bias)."""
    N, Ci, H, W = x.shape
    Cm = w4.shape[0]
    Co = w_out.shape[0]
    HW = H * W
    chunk = _spatial_chunk(HW)
    w_mat = _weight_mat(w4, 0, Ci)
    patches = _im2col_3x3(x)
    out = pl.pallas_call(
        _conv_bn_relu_1x1_kernel,
        out_shape=jax.ShapeDtypeStruct((N, Co, HW), x.dtype),
        grid_spec=pltpu.PrefetchScalarGridSpec(
            num_scalar_prefetch=0,
            grid=(N, HW // chunk),
            in_specs=[
                pl.BlockSpec((1, 9 * Ci, chunk), lambda n, s: (n, 0, s)),
                pl.BlockSpec((Cm, 9 * Ci), lambda n, s: (0, 0)),
                pl.BlockSpec((Cm, 1), lambda n, s: (0, 0)),
                pl.BlockSpec((Co, Cm), lambda n, s: (0, 0)),
                pl.BlockSpec((Co, 1), lambda n, s: (0, 0)),
            ],
            out_specs=pl.BlockSpec((1, Co, chunk), lambda n, s: (n, 0, s))),
        compiler_params=pltpu.CompilerParams(
            dimension_semantics=("parallel", "parallel"),
            vmem_limit_bytes=_VMEM_LIMIT),
    )(patches, w_mat, b_col, w_out, b_out.reshape(Co, 1))
    return out.reshape(N, Co, H, W)


# ---------------------------------------------------------------------------
# Full forward pass (mode='out')
# ---------------------------------------------------------------------------
def aggregation_init_forward(x1, x2, x3, params, out_w, out_b):
    # TODO(synk): BatchNorm is implemented in inference mode (running stats,
    # folded into the conv); training-mode batch statistics are not modeled.
    fold = {k: _fold_bn(v) for k, v in params.items()}

    up_x1, up2_x1 = bilinear_upsample_x2_x4(x1)   # up(x1), up(up(x1)) in one launch
    up_x2 = bilinear_upsample2x(x2)

    # x2_1 = cu1(up(x1)) * x2   (multiply fused into the conv epilogue)
    x2_1 = conv3x3_bn_relu(up_x1, *fold["cu1"], multipliers=(x2,))

    # x3_1 = cu2(up(up(x1))) * cu3(up(x2)) * x3
    t = conv3x3_bn_relu(up2_x1, *fold["cu2"])
    x3_1 = conv3x3_bn_relu(up_x2, *fold["cu3"], multipliers=(t, x3))

    # x2_2 = cc2(cat[x2_1, cu4(up(x1))])  -- concat folded into split-weight conv
    c4 = conv3x3_bn_relu(up_x1, *fold["cu4"])
    x2_2 = conv3x3_bn_relu((x2_1, c4), *fold["cc2"])

    # x3_2 = cc3(cat[x3_1, cu5(up(x2_2))])
    c5 = conv3x3_bn_relu(bilinear_upsample2x(x2_2), *fold["cu5"])
    x3_2 = conv3x3_bn_relu((x3_1, c5), *fold["cc3"])

    # out = conv1x1(conv4(x3_2))   (both fused into one kernel)
    return conv3x3_bn_relu_1x1(x3_2, *fold["c4"], out_w, out_b)


# ---------------------------------------------------------------------------
# Pure-JAX reference + demo
# ---------------------------------------------------------------------------
def _make_basic_conv_params(key, cin, cout):
    kw, kg, kb, km, kv = jax.random.split(key, 5)
    return {
        "w": jax.random.normal(kw, (cout, cin, 3, 3), jnp.float32) / np.sqrt(9 * cin),
        "gamma": 1.0 + 0.1 * jax.random.normal(kg, (cout,), jnp.float32),
        "beta": 0.1 * jax.random.normal(kb, (cout,), jnp.float32),
        "mean": 0.1 * jax.random.normal(km, (cout,), jnp.float32),
        "var": jnp.abs(jax.random.normal(kv, (cout,), jnp.float32)) + 0.5,
    }


def _ref_basic_conv(x, p, eps=_BN_EPS):
    y = lax.conv_general_dilated(
        x, p["w"], window_strides=(1, 1), padding=((1, 1), (1, 1)),
        dimension_numbers=("NCHW", "OIHW", "NCHW"),
        precision=lax.Precision.HIGHEST)
    scale = p["gamma"] / jnp.sqrt(p["var"] + eps)
    shift = p["beta"] - p["mean"] * scale
    return jnp.maximum(y * scale[None, :, None, None] + shift[None, :, None, None], 0.0)


def _ref_upsample2x(x):
    A_h = jnp.asarray(_up2_matrix_np(x.shape[2]))
    A_w = jnp.asarray(_up2_matrix_np(x.shape[3]))
    y = jnp.einsum("oh,nchw->ncow", A_h, x, precision=lax.Precision.HIGHEST)
    return jnp.einsum("pw,ncow->ncop", A_w, y, precision=lax.Precision.HIGHEST)


def _ref_forward(x1, x2, x3, P, out_w, out_b):
    up = _ref_upsample2x
    x1_1 = x1
    x2_1 = _ref_basic_conv(up(x1), P["cu1"]) * x2
    x3_1 = (_ref_basic_conv(up(up(x1)), P["cu2"])
            * _ref_basic_conv(up(x2), P["cu3"]) * x3)
    x2_2 = _ref_basic_conv(
        jnp.concatenate([x2_1, _ref_basic_conv(up(x1_1), P["cu4"])], axis=1), P["cc2"])
    x3_2 = _ref_basic_conv(
        jnp.concatenate([x3_1, _ref_basic_conv(up(x2_2), P["cu5"])], axis=1), P["cc3"])
    y = _ref_basic_conv(x3_2, P["c4"])
    y = jnp.einsum("oi,nihw->nohw", out_w, y,
                   precision=lax.Precision.HIGHEST) + out_b[None, :, None, None]
    return y


if __name__ == "__main__":
    N, channel, n_class = 2, 4, 2
    S = 8  # x1: SxS, x2: 2Sx2S, x3: 4Sx4S (decoder pyramid)

    root = jax.random.PRNGKey(0)
    ks = jax.random.split(root, 13)
    x1 = jax.random.normal(ks[0], (N, channel, S, S), jnp.float32)
    x2 = jax.random.normal(ks[1], (N, channel, 2 * S, 2 * S), jnp.float32)
    x3 = jax.random.normal(ks[2], (N, channel, 4 * S, 4 * S), jnp.float32)

    P = {
        "cu1": _make_basic_conv_params(ks[3], channel, channel),
        "cu2": _make_basic_conv_params(ks[4], channel, channel),
        "cu3": _make_basic_conv_params(ks[5], channel, channel),
        "cu4": _make_basic_conv_params(ks[6], channel, channel),
        "cu5": _make_basic_conv_params(ks[7], 2 * channel, 2 * channel),
        "cc2": _make_basic_conv_params(ks[8], 2 * channel, 2 * channel),
        "cc3": _make_basic_conv_params(ks[9], 3 * channel, 3 * channel),
        "c4": _make_basic_conv_params(ks[10], 3 * channel, 3 * channel),
    }
    out_w = jax.random.normal(ks[11], (n_class, 3 * channel), jnp.float32) / np.sqrt(3 * channel)
    out_b = 0.01 * jax.random.normal(ks[12], (n_class,), jnp.float32)

    fwd = jax.jit(aggregation_init_forward)
    out = jax.block_until_ready(fwd(x1, x2, x3, P, out_w, out_b))

    ref = _ref_forward(x1, x2, x3, P, out_w, out_b)
    assert out.shape == (N, n_class, 4 * S, 4 * S), out.shape
    max_err = float(jnp.max(jnp.abs(out - ref)))
    assert jnp.allclose(out, ref, atol=2e-3, rtol=2e-3), f"mismatch, max_err={max_err}"

    print("KERNEL_OK")
</pallas_src>

<mosaic_0001>
module attributes {stable_mosaic.version = 11 : i64} {
  func.func @_bilinear_up12_kernel(%arg0: i32, %arg1: memref<1x4x8x8xf32, #tpu.memory_space<vmem>>, %arg2: memref<16x8xf32, #tpu.memory_space<vmem>>, %arg3: memref<8x16xf32, #tpu.memory_space<vmem>>, %arg4: memref<32x16xf32, #tpu.memory_space<vmem>>, %arg5: memref<16x32xf32, #tpu.memory_space<vmem>>, %arg6: memref<1x4x16x16xf32, #tpu.memory_space<vmem>>, %arg7: memref<1x4x32x32xf32, #tpu.memory_space<vmem>>) attributes {dimension_semantics = [#tpu.dimension_semantics<parallel>], iteration_bounds = array<i64: 2>, scalar_prefetch = 0 : i64, scratch_operands = 0 : i64, tpu.core_type = #tpu.core_type<tc>, window_params = [{transform_indices = @transform_0, window_bounds = array<i64: 1, 4, 8, 8>}, {pipeline_mode = #tpu.pipeline_mode<synchronous>, transform_indices = @transform_1, window_bounds = array<i64: 16, 8>}, {pipeline_mode = #tpu.pipeline_mode<synchronous>, transform_indices = @transform_2, window_bounds = array<i64: 8, 16>}, {pipeline_mode = #tpu.pipeline_mode<synchronous>, transform_indices = @transform_3, window_bounds = array<i64: 32, 16>}, {pipeline_mode = #tpu.pipeline_mode<synchronous>, transform_indices = @transform_4, window_bounds = array<i64: 16, 32>}, {transform_indices = @transform_5, window_bounds = array<i64: 1, 4, 16, 16>}, {transform_indices = @transform_6, window_bounds = array<i64: 1, 4, 32, 32>}]} {
    %c0 = arith.constant 0 : index
    %c0_0 = arith.constant 0 : index
    %0 = vector.load %arg2[%c0, %c0_0] : memref<16x8xf32, #tpu.memory_space<vmem>>, vector<16x8xf32>
    %c0_1 = arith.constant 0 : index
    %c0_2 = arith.constant 0 : index
    %c0_3 = arith.constant 0 : index
    %c0_4 = arith.constant 0 : index
    %1 = vector.load %arg1[%c0_1, %c0_2, %c0_3, %c0_4] : memref<1x4x8x8xf32, #tpu.memory_space<vmem>>, vector<1x1x8x8xf32>
    %2 = vector.shape_cast %1 : vector<1x1x8x8xf32> to vector<8x8xf32>
    %cst = arith.constant dense<0.000000e+00> : vector<16x8xf32>
    %3 = tpu.matmul %0, %2, %cst {dimension_numbers = #tpu.dot_dimension_numbers<[1], [0], [0], [1], [0, 0, 1, 1], [], []>} : vector<16x8xf32>, vector<8x8xf32>, vector<16x8xf32> -> vector<16x8xf32>
    %c0_5 = arith.constant 0 : index
    %c0_6 = arith.constant 0 : index
    %4 = vector.load %arg3[%c0_5, %c0_6] : memref<8x16xf32, #tpu.memory_space<vmem>>, vector<8x16xf32>
    %cst_7 = arith.constant dense<0.000000e+00> : vector<16x16xf32>
    %5 = tpu.matmul %3, %4, %cst_7 {dimension_numbers = #tpu.dot_dimension_numbers<[1], [0], [0], [1], [0, 0, 1, 1], [], []>} : vector<16x8xf32>, vector<8x16xf32>, vector<16x16xf32> -> vector<16x16xf32>
    %c0_8 = arith.constant 0 : index
    %c0_9 = arith.constant 0 : index
    %c0_10 = arith.constant 0 : index
    %c0_11 = arith.constant 0 : index
    %6 = vector.load %arg6[%c0_8, %c0_9, %c0_10, %c0_11] : memref<1x4x16x16xf32, #tpu.memory_space<vmem>>, vector<1x1x16x16xf32>
    %7 = vector.shape_cast %6 : vector<1x1x16x16xf32> to vector<16x16xf32>
    %8 = vector.shape_cast %5 : vector<16x16xf32> to vector<1x1x16x16xf32>
    tpu.vector_store %arg6[%c0_8, %c0_9, %c0_10, %c0_11], %8 {strides = array<i32>} : memref<1x4x16x16xf32, #tpu.memory_space<vmem>>, vector<1x1x16x16xf32>,
    %c0_12 = arith.constant 0 : index
    %c0_13 = arith.constant 0 : index
    %9 = vector.load %arg4[%c0_12, %c0_13] : memref<32x16xf32, #tpu.memory_space<vmem>>, vector<32x16xf32>
    %cst_14 = arith.constant dense<0.000000e+00> : vector<32x16xf32>
    %10 = tpu.matmul %9, %5, %cst_14 {dimension_numbers = #tpu.dot_dimension_numbers<[1], [0], [0], [1], [0, 0, 1, 1], [], []>} : vector<32x16xf32>, vector<16x16xf32>, vector<32x16xf32> -> vector<32x16xf32>
    %c0_15 = arith.constant 0 : index
    %c0_16 = arith.constant 0 : index
    %11 = vector.load %arg5[%c0_15, %c0_16] : memref<16x32xf32, #tpu.memory_space<vmem>>, vector<16x32xf32>
    %cst_17 = arith.constant dense<0.000000e+00> : vector<32x32xf32>
    %12 = tpu.matmul %10, %11, %cst_17 {dimension_numbers = #tpu.dot_dimension_numbers<[1], [0], [0], [1], [0, 0, 1, 1], [], []>} : vector<32x16xf32>, vector<16x32xf32>, vector<32x32xf32> -> vector<32x32xf32>
    %c0_18 = arith.constant 0 : index
    %c0_19 = arith.constant 0 : index
    %c0_20 = arith.constant 0 : index
    %c0_21 = arith.constant 0 : index
    %13 = vector.load %arg7[%c0_18, %c0_19, %c0_20, %c0_21] : memref<1x4x32x32xf32, #tpu.memory_space<vmem>>, vector<1x1x32x32xf32>
    %14 = vector.shape_cast %13 : vector<1x1x32x32xf32> to vector<32x32xf32>
    %15 = vector.shape_cast %12 : vector<32x32xf32> to vector<1x1x32x32xf32>
    tpu.vector_store %arg7[%c0_18, %c0_19, %c0_20, %c0_21], %15 {strides = array<i32>} : memref<1x4x32x32xf32, #tpu.memory_space<vmem>>, vector<1x1x32x32xf32>,
    %c0_22 = arith.constant 0 : index
    %c0_23 = arith.constant 0 : index
    %16 = vector.load %arg2[%c0_22, %c0_23] : memref<16x8xf32, #tpu.memory_space<vmem>>, vector<16x8xf32>
    %c0_24 = arith.constant 0 : index
    %c1 = arith.constant 1 : index
    %c0_25 = arith.constant 0 : index
    %c0_26 = arith.constant 0 : index
    %17 = vector.load %arg1[%c0_24, %c1, %c0_25, %c0_26] : memref<1x4x8x8xf32, #tpu.memory_space<vmem>>, vector<1x1x8x8xf32>
    %18 = vector.shape_cast %17 : vector<1x1x8x8xf32> to vector<8x8xf32>
    %cst_27 = arith.constant dense<0.000000e+00> : vector<16x8xf32>
    %19 = tpu.matmul %16, %18, %cst_27 {dimension_numbers = #tpu.dot_dimension_numbers<[1], [0], [0], [1], [0, 0, 1, 1], [], []>} : vector<16x8xf32>, vector<8x8xf32>, vector<16x8xf32> -> vector<16x8xf32>
    %c0_28 = arith.constant 0 : index
    %c0_29 = arith.constant 0 : index
    %20 = vector.load %arg3[%c0_28, %c0_29] : memref<8x16xf32, #tpu.memory_space<vmem>>, vector<8x16xf32>
    %cst_30 = arith.constant dense<0.000000e+00> : vector<16x16xf32>
    %21 = tpu.matmul %19, %20, %cst_30 {dimension_numbers = #tpu.dot_dimension_numbers<[1], [0], [0], [1], [0, 0, 1, 1], [], []>} : vector<16x8xf32>, vector<8x16xf32>, vector<16x16xf32> -> vector<16x16xf32>
    %c0_31 = arith.constant 0 : index
    %c1_32 = arith.constant 1 : index
    %c0_33 = arith.constant 0 : index
    %c0_34 = arith.constant 0 : index
    %22 = vector.load %arg6[%c0_31, %c1_32, %c0_33, %c0_34] : memref<1x4x16x16xf32, #tpu.memory_space<vmem>>, vector<1x1x16x16xf32>
    %23 = vector.shape_cast %22 : vector<1x1x16x16xf32> to vector<16x16xf32>
    %24 = vector.shape_cast %21 : vector<16x16xf32> to vector<1x1x16x16xf32>
    tpu.vector_store %arg6[%c0_31, %c1_32, %c0_33, %c0_34], %24 {strides = array<i32>} : memref<1x4x16x16xf32, #tpu.memory_space<vmem>>, vector<1x1x16x16xf32>,
    %c0_35 = arith.constant 0 : index
    %c0_36 = arith.constant 0 : index
    %25 = vector.load %arg4[%c0_35, %c0_36] : memref<32x16xf32, #tpu.memory_space<vmem>>, vector<32x16xf32>
    %cst_37 = arith.constant dense<0.000000e+00> : vector<32x16xf32>
    %26 = tpu.matmul %25, %21, %cst_37 {dimension_numbers = #tpu.dot_dimension_numbers<[1], [0], [0], [1], [0, 0, 1, 1], [], []>} : vector<32x16xf32>, vector<16x16xf32>, vector<32x16xf32> -> vector<32x16xf32>
    %c0_38 = arith.constant 0 : index
    %c0_39 = arith.constant 0 : index
    %27 = vector.load %arg5[%c0_38, %c0_39] : memref<16x32xf32, #tpu.memory_space<vmem>>, vector<16x32xf32>
    %cst_40 = arith.constant dense<0.000000e+00> : vector<32x32xf32>
    %28 = tpu.matmul %26, %27, %cst_40 {dimension_numbers = #tpu.dot_dimension_numbers<[1], [0], [0], [1], [0, 0, 1, 1], [], []>} : vector<32x16xf32>, vector<16x32xf32>, vector<32x32xf32> -> vector<32x32xf32>
    %c0_41 = arith.constant 0 : index
    %c1_42 = arith.constant 1 : index
    %c0_43 = arith.constant 0 : index
    %c0_44 = arith.constant 0 : index
    %29 = vector.load %arg7[%c0_41, %c1_42, %c0_43, %c0_44] : memref<1x4x32x32xf32, #tpu.memory_space<vmem>>, vector<1x1x32x32xf32>
    %30 = vector.shape_cast %29 : vector<1x1x32x32xf32> to vector<32x32xf32>
    %31 = vector.shape_cast %28 : vector<32x32xf32> to vector<1x1x32x32xf32>
    tpu.vector_store %arg7[%c0_41, %c1_42, %c0_43, %c0_44], %31 {strides = array<i32>} : memref<1x4x32x32xf32, #tpu.memory_space<vmem>>, vector<1x1x32x32xf32>,
    %c0_45 = arith.constant 0 : index
    %c0_46 = arith.constant 0 : index
    %32 = vector.load %arg2[%c0_45, %c0_46] : memref<16x8xf32, #tpu.memory_space<vmem>>, vector<16x8xf32>
    %c0_47 = arith.constant 0 : index
    %c2 = arith.constant 2 : index
    %c0_48 = arith.constant 0 : index
    %c0_49 = arith.constant 0 : index
    %33 = vector.load %arg1[%c0_47, %c2, %c0_48, %c0_49] : memref<1x4x8x8xf32, #tpu.memory_space<vmem>>, vector<1x1x8x8xf32>
    %34 = vector.shape_cast %33 : vector<1x1x8x8xf32> to vector<8x8xf32>
    %cst_50 = arith.constant dense<0.000000e+00> : vector<16x8xf32>
    %35 = tpu.matmul %32, %34, %cst_50 {dimension_numbers = #tpu.dot_dimension_numbers<[1], [0], [0], [1], [0, 0, 1, 1], [], []>} : vector<16x8xf32>, vector<8x8xf32>, vector<16x8xf32> -> vector<16x8xf32>
    %c0_51 = arith.constant 0 : index
    %c0_52 = arith.constant 0 : index
    %36 = vector.load %arg3[%c0_51, %c0_52] : memref<8x16xf32, #tpu.memory_space<vmem>>, vector<8x16xf32>
    %cst_53 = arith.constant dense<0.000000e+00> : vector<16x16xf32>
    %37 = tpu.matmul %35, %36, %cst_53 {dimension_numbers = #tpu.dot_dimension_numbers<[1], [0], [0], [1], [0, 0, 1, 1], [], []>} : vector<16x8xf32>, vector<8x16xf32>, vector<16x16xf32> -> vector<16x16xf32>
    %c0_54 = arith.constant 0 : index
    %c2_55 = arith.constant 2 : index
    %c0_56 = arith.constant 0 : index
    %c0_57 = arith.constant 0 : index
    %38 = vector.load %arg6[%c0_54, %c2_55, %c0_56, %c0_57] : memref<1x4x16x16xf32, #tpu.memory_space<vmem>>, vector<1x1x16x16xf32>
    %39 = vector.shape_cast %38 : vector<1x1x16x16xf32> to vector<16x16xf32>
    %40 = vector.shape_cast %37 : vector<16x16xf32> to vector<1x1x16x16xf32>
    tpu.vector_store %arg6[%c0_54, %c2_55, %c0_56, %c0_57], %40 {strides = array<i32>} : memref<1x4x16x16xf32, #tpu.memory_space<vmem>>, vector<1x1x16x16xf32>,
    %c0_58 = arith.constant 0 : index
    %c0_59 = arith.constant 0 : index
    %41 = vector.load %arg4[%c0_58, %c0_59] : memref<32x16xf32, #tpu.memory_space<vmem>>, vector<32x16xf32>
    %cst_60 = arith.constant dense<0.000000e+00> : vector<32x16xf32>
    %42 = tpu.matmul %41, %37, %cst_60 {dimension_numbers = #tpu.dot_dimension_numbers<[1], [0], [0], [1], [0, 0, 1, 1], [], []>} : vector<32x16xf32>, vector<16x16xf32>, vector<32x16xf32> -> vector<32x16xf32>
    %c0_61 = arith.constant 0 : index
    %c0_62 = arith.constant 0 : index
    %43 = vector.load %arg5[%c0_61, %c0_62] : memref<16x32xf32, #tpu.memory_space<vmem>>, vector<16x32xf32>
    %cst_63 = arith.constant dense<0.000000e+00> : vector<32x32xf32>
    %44 = tpu.matmul %42, %43, %cst_63 {dimension_numbers = #tpu.dot_dimension_numbers<[1], [0], [0], [1], [0, 0, 1, 1], [], []>} : vector<32x16xf32>, vector<16x32xf32>, vector<32x32xf32> -> vector<32x32xf32>
    %c0_64 = arith.constant 0 : index
    %c2_65 = arith.constant 2 : index
    %c0_66 = arith.constant 0 : index
    %c0_67 = arith.constant 0 : index
    %45 = vector.load %arg7[%c0_64, %c2_65, %c0_66, %c0_67] : memref<1x4x32x32xf32, #tpu.memory_space<vmem>>, vector<1x1x32x32xf32>
    %46 = vector.shape_cast %45 : vector<1x1x32x32xf32> to vector<32x32xf32>
    %47 = vector.shape_cast %44 : vector<32x32xf32> to vector<1x1x32x32xf32>
    tpu.vector_store %arg7[%c0_64, %c2_65, %c0_66, %c0_67], %47 {strides = array<i32>} : memref<1x4x32x32xf32, #tpu.memory_space<vmem>>, vector<1x1x32x32xf32>,
    %c0_68 = arith.constant 0 : index
    %c0_69 = arith.constant 0 : index
    %48 = vector.load %arg2[%c0_68, %c0_69] : memref<16x8xf32, #tpu.memory_space<vmem>>, vector<16x8xf32>
    %c0_70 = arith.constant 0 : index
    %c3 = arith.constant 3 : index
    %c0_71 = arith.constant 0 : index
    %c0_72 = arith.constant 0 : index
    %49 = vector.load %arg1[%c0_70, %c3, %c0_71, %c0_72] : memref<1x4x8x8xf32, #tpu.memory_space<vmem>>, vector<1x1x8x8xf32>
    %50 = vector.shape_cast %49 : vector<1x1x8x8xf32> to vector<8x8xf32>
    %cst_73 = arith.constant dense<0.000000e+00> : vector<16x8xf32>
    %51 = tpu.matmul %48, %50, %cst_73 {dimension_numbers = #tpu.dot_dimension_numbers<[1], [0], [0], [1], [0, 0, 1, 1], [], []>} : vector<16x8xf32>, vector<8x8xf32>, vector<16x8xf32> -> vector<16x8xf32>
    %c0_74 = arith.constant 0 : index
    %c0_75 = arith.constant 0 : index
    %52 = vector.load %arg3[%c0_74, %c0_75] : memref<8x16xf32, #tpu.memory_space<vmem>>, vector<8x16xf32>
    %cst_76 = arith.constant dense<0.000000e+00> : vector<16x16xf32>
    %53 = tpu.matmul %51, %52, %cst_76 {dimension_numbers = #tpu.dot_dimension_numbers<[1], [0], [0], [1], [0, 0, 1, 1], [], []>} : vector<16x8xf32>, vector<8x16xf32>, vector<16x16xf32> -> vector<16x16xf32>
    %c0_77 = arith.constant 0 : index
    %c3_78 = arith.constant 3 : index
    %c0_79 = arith.constant 0 : index
    %c0_80 = arith.constant 0 : index
    %54 = vector.load %arg6[%c0_77, %c3_78, %c0_79, %c0_80] : memref<1x4x16x16xf32, #tpu.memory_space<vmem>>, vector<1x1x16x16xf32>
    %55 = vector.shape_cast %54 : vector<1x1x16x16xf32> to vector<16x16xf32>
    %56 = vector.shape_cast %53 : vector<16x16xf32> to vector<1x1x16x16xf32>
    tpu.vector_store %arg6[%c0_77, %c3_78, %c0_79, %c0_80], %56 {strides = array<i32>} : memref<1x4x16x16xf32, #tpu.memory_space<vmem>>, vector<1x1x16x16xf32>,
    %c0_81 = arith.constant 0 : index
    %c0_82 = arith.constant 0 : index
    %57 = vector.load %arg4[%c0_81, %c0_82] : memref<32x16xf32, #tpu.memory_space<vmem>>, vector<32x16xf32>
    %cst_83 = arith.constant dense<0.000000e+00> : vector<32x16xf32>
    %58 = tpu.matmul %57, %53, %cst_83 {dimension_numbers = #tpu.dot_dimension_numbers<[1], [0], [0], [1], [0, 0, 1, 1], [], []>} : vector<32x16xf32>, vector<16x16xf32>, vector<32x16xf32> -> vector<32x16xf32>
    %c0_84 = arith.constant 0 : index
    %c0_85 = arith.constant 0 : index
    %59 = vector.load %arg5[%c0_84, %c0_85] : memref<16x32xf32, #tpu.memory_space<vmem>>, vector<16x32xf32>
    %cst_86 = arith.constant dense<0.000000e+00> : vector<32x32xf32>
    %60 = tpu.matmul %58, %59, %cst_86 {dimension_numbers = #tpu.dot_dimension_numbers<[1], [0], [0], [1], [0, 0, 1, 1], [], []>} : vector<32x16xf32>, vector<16x32xf32>, vector<32x32xf32> -> vector<32x32xf32>
    %c0_87 = arith.constant 0 : index
    %c3_88 = arith.constant 3 : index
    %c0_89 = arith.constant 0 : index
    %c0_90 = arith.constant 0 : index
    %61 = vector.load %arg7[%c0_87, %c3_88, %c0_89, %c0_90] : memref<1x4x32x32xf32, #tpu.memory_space<vmem>>, vector<1x1x32x32xf32>
    %62 = vector.shape_cast %61 : vector<1x1x32x32xf32> to vector<32x32xf32>
    %63 = vector.shape_cast %60 : vector<32x32xf32> to vector<1x1x32x32xf32>
    tpu.vector_store %arg7[%c0_87, %c3_88, %c0_89, %c0_90], %63 {strides = array<i32>} : memref<1x4x32x32xf32, #tpu.memory_space<vmem>>, vector<1x1x32x32xf32>,
    return
  }
  func.func @transform_0(%arg0: i32) -> (i32, i32, i32, i32) {
    %c0_i32 = arith.constant 0 : i32
    %c0_i32_0 = arith.constant 0 : i32
    %c0_i32_1 = arith.constant 0 : i32
    %c0_i32_2 = arith.constant 0 : i32
    return %arg0, %c0_i32, %c0_i32_0, %c0_i32_1 : i32, i32, i32, i32
  }
  func.func @transform_1(%arg0: i32) -> (i32, i32) {
    %c0_i32 = arith.constant 0 : i32
    %c0_i32_0 = arith.constant 0 : i32
    %c0_i32_1 = arith.constant 0 : i32
    return %c0_i32, %c0_i32_0 : i32, i32
  }
  func.func @transform_2(%arg0: i32) -> (i32, i32) {
    %c0_i32 = arith.constant 0 : i32
    %c0_i32_0 = arith.constant 0 : i32
    %c0_i32_1 = arith.constant 0 : i32
    return %c0_i32, %c0_i32_0 : i32, i32
  }
  func.func @transform_3(%arg0: i32) -> (i32, i32) {
    %c0_i32 = arith.constant 0 : i32
    %c0_i32_0 = arith.constant 0 : i32
    %c0_i32_1 = arith.constant 0 : i32
    return %c0_i32, %c0_i32_0 : i32, i32
  }
  func.func @transform_4(%arg0: i32) -> (i32, i32) {
    %c0_i32 = arith.constant 0 : i32
    %c0_i32_0 = arith.constant 0 : i32
    %c0_i32_1 = arith.constant 0 : i32
    return %c0_i32, %c0_i32_0 : i32, i32
  }
  func.func @transform_5(%arg0: i32) -> (i32, i32, i32, i32) {
    %c0_i32 = arith.constant 0 : i32
    %c0_i32_0 = arith.constant 0 : i32
    %c0_i32_1 = arith.constant 0 : i32
    %c0_i32_2 = arith.constant 0 : i32
    return %arg0, %c0_i32, %c0_i32_0, %c0_i32_1 : i32, i32, i32, i32
  }
  func.func @transform_6(%arg0: i32) -> (i32, i32, i32, i32) {
    %c0_i32 = arith.constant 0 : i32
    %c0_i32_0 = arith.constant 0 : i32
    %c0_i32_1 = arith.constant 0 : i32
    %c0_i32_2 = arith.constant 0 : i32
    return %arg0, %c0_i32, %c0_i32_0, %c0_i32_1 : i32, i32, i32, i32
  }
}

module attributes {stable_mosaic.version = 11 : i64} {
  func.func @kernel(%arg0: i32, %arg1: i32, %arg2: memref<1x36x256xf32, #tpu.memory_space<vmem>>, %arg3: memref<4x36xf32, #tpu.memory_space<vmem>>, %arg4: memref<4x1xf32, #tpu.memory_space<vmem>>, %arg5: memref<1x4x256xf32, #tpu.memory_space<vmem>>) attributes {dimension_semantics = [#tpu.dimension_semantics<parallel>, #tpu.dimension_semantics<parallel>], iteration_bounds = array<i64: 2, 1>, scalar_prefetch = 0 : i64, scratch_operands = 0 : i64, tpu.core_type = #tpu.core_type<tc>, window_params = [{transform_indices = @transform_0, window_bounds = array<i64: 1, 36, 256>}, {pipeline_mode = #tpu.pipeline_mode<synchronous>, transform_indices = @transform_1, window_bounds = array<i64: 4, 36>}, {pipeline_mode = #tpu.pipeline_mode<synchronous>, transform_indices = @transform_2, window_bounds = array<i64: 4, 1>}, {transform_indices = @transform_3, window_bounds = array<i64: 1, 4, 256>}]} {
    %c0 = arith.constant 0 : index
    %c0_0 = arith.constant 0 : index
    %0 = vector.load %arg3[%c0, %c0_0] : memref<4x36xf32, #tpu.memory_space<vmem>>, vector<4x36xf32>
    %c0_1 = arith.constant 0 : index
    %c0_2 = arith.constant 0 : index
    %c0_3 = arith.constant 0 : index
    %1 = vector.load %arg2[%c0_1, %c0_2, %c0_3] : memref<1x36x256xf32, #tpu.memory_space<vmem>>, vector<1x36x256xf32>
    %2 = vector.shape_cast %1 : vector<1x36x256xf32> to vector<36x256xf32>
    %cst = arith.constant dense<0.000000e+00> : vector<4x256xf32>
    %3 = tpu.matmul %0, %2, %cst {dimension_numbers = #tpu.dot_dimension_numbers<[1], [0], [0], [1], [0, 0, 1, 1], [], []>} : vector<4x36xf32>, vector<36x256xf32>, vector<4x256xf32> -> vector<4x256xf32>
    %c0_4 = arith.constant 0 : index
    %c0_5 = arith.constant 0 : index
    %4 = vector.load %arg4[%c0_4, %c0_5] : memref<4x1xf32, #tpu.memory_space<vmem>>, vector<4x1xf32>
    %5 = vector.broadcast %4 : vector<4x1xf32> to vector<4x256xf32>
    %6 = arith.addf %3, %5 : vector<4x256xf32>
    %cst_6 = arith.constant 0.000000e+00 : f32
    %7 = vector.broadcast %cst_6 : f32 to vector<4x256xf32>
    %8 = arith.maximumf %6, %7 : vector<4x256xf32>
    %c0_7 = arith.constant 0 : index
    %c0_8 = arith.constant 0 : index
    %c0_9 = arith.constant 0 : index
    %9 = vector.load %arg5[%c0_7, %c0_8, %c0_9] : memref<1x4x256xf32, #tpu.memory_space<vmem>>, vector<1x4x256xf32>
    %10 = vector.shape_cast %9 : vector<1x4x256xf32> to vector<4x256xf32>
    %11 = vector.shape_cast %8 : vector<4x256xf32> to vector<1x4x256xf32>
    tpu.vector_store %arg5[%c0_7, %c0_8, %c0_9], %11 {strides = array<i32>} : memref<1x4x256xf32, #tpu.memory_space<vmem>>, vector<1x4x256xf32>,
    return
  }
  func.func @transform_0(%arg0: i32, %arg1: i32) -> (i32, i32, i32) {
    %c0_i32 = arith.constant 0 : i32
    %c0_i32_0 = arith.constant 0 : i32
    return %arg0, %c0_i32, %arg1 : i32, i32, i32
  }
  func.func @transform_1(%arg0: i32, %arg1: i32) -> (i32, i32) {
    %c0_i32 = arith.constant 0 : i32
    %c0_i32_0 = arith.constant 0 : i32
    %c0_i32_1 = arith.constant 0 : i32
    return %c0_i32, %c0_i32_0 : i32, i32
  }
  func.func @transform_2(%arg0: i32, %arg1: i32) -> (i32, i32) {
    %c0_i32 = arith.constant 0 : i32
    %c0_i32_0 = arith.constant 0 : i32
    %c0_i32_1 = arith.constant 0 : i32
    return %c0_i32, %c0_i32_0 : i32, i32
  }
  func.func @transform_3(%arg0: i32, %arg1: i32) -> (i32, i32, i32) {
    %c0_i32 = arith.constant 0 : i32
    %c0_i32_0 = arith.constant 0 : i32
    return %arg0, %c0_i32, %arg1 : i32, i32, i32
  }
}

module attributes {stable_mosaic.version = 11 : i64} {
  func.func @kernel(%arg0: i32, %arg1: i32, %arg2: memref<1x36x256xf32, #tpu.memory_space<vmem>>, %arg3: memref<4x36xf32, #tpu.memory_space<vmem>>, %arg4: memref<4x1xf32, #tpu.memory_space<vmem>>, %arg5: memref<1x4x256xf32, #tpu.memory_space<vmem>>, %arg6: memref<1x4x256xf32, #tpu.memory_space<vmem>>) attributes {dimension_semantics = [#tpu.dimension_semantics<parallel>, #tpu.dimension_semantics<parallel>], iteration_bounds = array<i64: 2, 1>, scalar_prefetch = 0 : i64, scratch_operands = 0 : i64, tpu.core_type = #tpu.core_type<tc>, window_params = [{transform_indices = @transform_0, window_bounds = array<i64: 1, 36, 256>}, {pipeline_mode = #tpu.pipeline_mode<synchronous>, transform_indices = @transform_1, window_bounds = array<i64: 4, 36>}, {pipeline_mode = #tpu.pipeline_mode<synchronous>, transform_indices = @transform_2, window_bounds = array<i64: 4, 1>}, {transform_indices = @transform_3, window_bounds = array<i64: 1, 4, 256>}, {transform_indices = @transform_4, window_bounds = array<i64: 1, 4, 256>}]} {
    %c0 = arith.constant 0 : index
    %c0_0 = arith.constant 0 : index
    %0 = vector.load %arg3[%c0, %c0_0] : memref<4x36xf32, #tpu.memory_space<vmem>>, vector<4x36xf32>
    %c0_1 = arith.constant 0 : index
    %c0_2 = arith.constant 0 : index
    %c0_3 = arith.constant 0 : index
    %1 = vector.load %arg2[%c0_1, %c0_2, %c0_3] : memref<1x36x256xf32, #tpu.memory_space<vmem>>, vector<1x36x256xf32>
    %2 = vector.shape_cast %1 : vector<1x36x256xf32> to vector<36x256xf32>
    %cst = arith.constant dense<0.000000e+00> : vector<4x256xf32>
    %3 = tpu.matmul %0, %2, %cst {dimension_numbers = #tpu.dot_dimension_numbers<[1], [0], [0], [1], [0, 0, 1, 1], [], []>} : vector<4x36xf32>, vector<36x256xf32>, vector<4x256xf32> -> vector<4x256xf32>
    %c0_4 = arith.constant 0 : index
    %c0_5 = arith.constant 0 : index
    %4 = vector.load %arg4[%c0_4, %c0_5] : memref<4x1xf32, #tpu.memory_space<vmem>>, vector<4x1xf32>
    %5 = vector.broadcast %4 : vector<4x1xf32> to vector<4x256xf32>
    %6 = arith.addf %3, %5 : vector<4x256xf32>
    %cst_6 = arith.constant 0.000000e+00 : f32
    %7 = vector.broadcast %cst_6 : f32 to vector<4x256xf32>
    %8 = arith.maximumf %6, %7 : vector<4x256xf32>
    %c0_7 = arith.constant 0 : index
    %c0_8 = arith.constant 0 : index
    %c0_9 = arith.constant 0 : index
    %9 = vector.load %arg5[%c0_7, %c0_8, %c0_9] : memref<1x4x256xf32, #tpu.memory_space<vmem>>, vector<1x4x256xf32>
    %10 = vector.shape_cast %9 : vector<1x4x256xf32> to vector<4x256xf32>
    %11 = arith.mulf %8, %10 : vector<4x256xf32>
    %c0_10 = arith.constant 0 : index
    %c0_11 = arith.constant 0 : index
    %c0_12 = arith.constant 0 : index
    %12 = vector.load %arg6[%c0_10, %c0_11, %c0_12] : memref<1x4x256xf32, #tpu.memory_space<vmem>>, vector<1x4x256xf32>
    %13 = vector.shape_cast %12 : vector<1x4x256xf32> to vector<4x256xf32>
    %14 = vector.shape_cast %11 : vector<4x256xf32> to vector<1x4x256xf32>
    tpu.vector_store %arg6[%c0_10, %c0_11, %c0_12], %14 {strides = array<i32>} : memref<1x4x256xf32, #tpu.memory_space<vmem>>, vector<1x4x256xf32>,
    return
  }
  func.func @transform_0(%arg0: i32, %arg1: i32) -> (i32, i32, i32) {
    %c0_i32 = arith.constant 0 : i32
    %c0_i32_0 = arith.constant 0 : i32
    return %arg0, %c0_i32, %arg1 : i32, i32, i32
  }
  func.func @transform_1(%arg0: i32, %arg1: i32) -> (i32, i32) {
    %c0_i32 = arith.constant 0 : i32
    %c0_i32_0 = arith.constant 0 : i32
    %c0_i32_1 = arith.constant 0 : i32
    return %c0_i32, %c0_i32_0 : i32, i32
  }
  func.func @transform_2(%arg0: i32, %arg1: i32) -> (i32, i32) {
    %c0_i32 = arith.constant 0 : i32
    %c0_i32_0 = arith.constant 0 : i32
    %c0_i32_1 = arith.constant 0 : i32
    return %c0_i32, %c0_i32_0 : i32, i32
  }
  func.func @transform_3(%arg0: i32, %arg1: i32) -> (i32, i32, i32) {
    %c0_i32 = arith.constant 0 : i32
    %c0_i32_0 = arith.constant 0 : i32
    return %arg0, %c0_i32, %arg1 : i32, i32, i32
  }
  func.func @transform_4(%arg0: i32, %arg1: i32) -> (i32, i32, i32) {
    %c0_i32 = arith.constant 0 : i32
    %c0_i32_0 = arith.constant 0 : i32
    return %arg0, %c0_i32, %arg1 : i32, i32, i32
  }
}

module attributes {stable_mosaic.version = 11 : i64} {
  func.func @_bilinear_up_kernel(%arg0: i32, %arg1: memref<1x8x16x16xf32, #tpu.memory_space<vmem>>, %arg2: memref<32x16xf32, #tpu.memory_space<vmem>>, %arg3: memref<16x32xf32, #tpu.memory_space<vmem>>, %arg4: memref<1x8x32x32xf32, #tpu.memory_space<vmem>>) attributes {dimension_semantics = [#tpu.dimension_semantics<parallel>], iteration_bounds = array<i64: 2>, scalar_prefetch = 0 : i64, scratch_operands = 0 : i64, tpu.core_type = #tpu.core_type<tc>, window_params = [{transform_indices = @transform_0, window_bounds = array<i64: 1, 8, 16, 16>}, {pipeline_mode = #tpu.pipeline_mode<synchronous>, transform_indices = @transform_1, window_bounds = array<i64: 32, 16>}, {pipeline_mode = #tpu.pipeline_mode<synchronous>, transform_indices = @transform_2, window_bounds = array<i64: 16, 32>}, {transform_indices = @transform_3, window_bounds = array<i64: 1, 8, 32, 32>}]} {
    %c0 = arith.constant 0 : index
    %c0_0 = arith.constant 0 : index
    %0 = vector.load %arg2[%c0, %c0_0] : memref<32x16xf32, #tpu.memory_space<vmem>>, vector<32x16xf32>
    %c0_1 = arith.constant 0 : index
    %c0_2 = arith.constant 0 : index
    %c0_3 = arith.constant 0 : index
    %c0_4 = arith.constant 0 : index
    %1 = vector.load %arg1[%c0_1, %c0_2, %c0_3, %c0_4] : memref<1x8x16x16xf32, #tpu.memory_space<vmem>>, vector<1x1x16x16xf32>
    %2 = vector.shape_cast %1 : vector<1x1x16x16xf32> to vector<16x16xf32>
    %cst = arith.constant dense<0.000000e+00> : vector<32x16xf32>
    %3 = tpu.matmul %0, %2, %cst {dimension_numbers = #tpu.dot_dimension_numbers<[1], [0], [0], [1], [0, 0, 1, 1], [], []>} : vector<32x16xf32>, vector<16x16xf32>, vector<32x16xf32> -> vector<32x16xf32>
    %c0_5 = arith.constant 0 : index
    %c0_6 = arith.constant 0 : index
    %4 = vector.load %arg3[%c0_5, %c0_6] : memref<16x32xf32, #tpu.memory_space<vmem>>, vector<16x32xf32>
    %cst_7 = arith.constant dense<0.000000e+00> : vector<32x32xf32>
    %5 = tpu.matmul %3, %4, %cst_7 {dimension_numbers = #tpu.dot_dimension_numbers<[1], [0], [0], [1], [0, 0, 1, 1], [], []>} : vector<32x16xf32>, vector<16x32xf32>, vector<32x32xf32> -> vector<32x32xf32>
    %c0_8 = arith.constant 0 : index
    %c0_9 = arith.constant 0 : index
    %c0_10 = arith.constant 0 : index
    %c0_11 = arith.constant 0 : index
    %6 = vector.load %arg4[%c0_8, %c0_9, %c0_10, %c0_11] : memref<1x8x32x32xf32, #tpu.memory_space<vmem>>, vector<1x1x32x32xf32>
    %7 = vector.shape_cast %6 : vector<1x1x32x32xf32> to vector<32x32xf32>
    %8 = vector.shape_cast %5 : vector<32x32xf32> to vector<1x1x32x32xf32>
    tpu.vector_store %arg4[%c0_8, %c0_9, %c0_10, %c0_11], %8 {strides = array<i32>} : memref<1x8x32x32xf32, #tpu.memory_space<vmem>>, vector<1x1x32x32xf32>,
    %c0_12 = arith.constant 0 : index
    %c0_13 = arith.constant 0 : index
    %9 = vector.load %arg2[%c0_12, %c0_13] : memref<32x16xf32, #tpu.memory_space<vmem>>, vector<32x16xf32>
    %c0_14 = arith.constant 0 : index
    %c1 = arith.constant 1 : index
    %c0_15 = arith.constant 0 : index
    %c0_16 = arith.constant 0 : index
    %10 = vector.load %arg1[%c0_14, %c1, %c0_15, %c0_16] : memref<1x8x16x16xf32, #tpu.memory_space<vmem>>, vector<1x1x16x16xf32>
    %11 = vector.shape_cast %10 : vector<1x1x16x16xf32> to vector<16x16xf32>
    %cst_17 = arith.constant dense<0.000000e+00> : vector<32x16xf32>
    %12 = tpu.matmul %9, %11, %cst_17 {dimension_numbers = #tpu.dot_dimension_numbers<[1], [0], [0], [1], [0, 0, 1, 1], [], []>} : vector<32x16xf32>, vector<16x16xf32>, vector<32x16xf32> -> vector<32x16xf32>
    %c0_18 = arith.constant 0 : index
    %c0_19 = arith.constant 0 : index
    %13 = vector.load %arg3[%c0_18, %c0_19] : memref<16x32xf32, #tpu.memory_space<vmem>>, vector<16x32xf32>
    %cst_20 = arith.constant dense<0.000000e+00> : vector<32x32xf32>
    %14 = tpu.matmul %12, %13, %cst_20 {dimension_numbers = #tpu.dot_dimension_numbers<[1], [0], [0], [1], [0, 0, 1, 1], [], []>} : vector<32x16xf32>, vector<16x32xf32>, vector<32x32xf32> -> vector<32x32xf32>
    %c0_21 = arith.constant 0 : index
    %c1_22 = arith.constant 1 : index
    %c0_23 = arith.constant 0 : index
    %c0_24 = arith.constant 0 : index
    %15 = vector.load %arg4[%c0_21, %c1_22, %c0_23, %c0_24] : memref<1x8x32x32xf32, #tpu.memory_space<vmem>>, vector<1x1x32x32xf32>
    %16 = vector.shape_cast %15 : vector<1x1x32x32xf32> to vector<32x32xf32>
    %17 = vector.shape_cast %14 : vector<32x32xf32> to vector<1x1x32x32xf32>
    tpu.vector_store %arg4[%c0_21, %c1_22, %c0_23, %c0_24], %17 {strides = array<i32>} : memref<1x8x32x32xf32, #tpu.memory_space<vmem>>, vector<1x1x32x32xf32>,
    %c0_25 = arith.constant 0 : index
    %c0_26 = arith.constant 0 : index
    %18 = vector.load %arg2[%c0_25, %c0_26] : memref<32x16xf32, #tpu.memory_space<vmem>>, vector<32x16xf32>
    %c0_27 = arith.constant 0 : index
    %c2 = arith.constant 2 : index
    %c0_28 = arith.constant 0 : index
    %c0_29 = arith.constant 0 : index
    %19 = vector.load %arg1[%c0_27, %c2, %c0_28, %c0_29] : memref<1x8x16x16xf32, #tpu.memory_space<vmem>>, vector<1x1x16x16xf32>
    %20 = vector.shape_cast %19 : vector<1x1x16x16xf32> to vector<16x16xf32>
    %cst_30 = arith.constant dense<0.000000e+00> : vector<32x16xf32>
    %21 = tpu.matmul %18, %20, %cst_30 {dimension_numbers = #tpu.dot_dimension_numbers<[1], [0], [0], [1], [0, 0, 1, 1], [], []>} : vector<32x16xf32>, vector<16x16xf32>, vector<32x16xf32> -> vector<32x16xf32>
    %c0_31 = arith.constant 0 : index
    %c0_32 = arith.constant 0 : index
    %22 = vector.load %arg3[%c0_31, %c0_32] : memref<16x32xf32, #tpu.memory_space<vmem>>, vector<16x32xf32>
    %cst_33 = arith.constant dense<0.000000e+00> : vector<32x32xf32>
    %23 = tpu.matmul %21, %22, %cst_33 {dimension_numbers = #tpu.dot_dimension_numbers<[1], [0], [0], [1], [0, 0, 1, 1], [], []>} : vector<32x16xf32>, vector<16x32xf32>, vector<32x32xf32> -> vector<32x32xf32>
    %c0_34 = arith.constant 0 : index
    %c2_35 = arith.constant 2 : index
    %c0_36 = arith.constant 0 : index
    %c0_37 = arith.constant 0 : index
    %24 = vector.load %arg4[%c0_34, %c2_35, %c0_36, %c0_37] : memref<1x8x32x32xf32, #tpu.memory_space<vmem>>, vector<1x1x32x32xf32>
    %25 = vector.shape_cast %24 : vector<1x1x32x32xf32> to vector<32x32xf32>
    %26 = vector.shape_cast %23 : vector<32x32xf32> to vector<1x1x32x32xf32>
    tpu.vector_store %arg4[%c0_34, %c2_35, %c0_36, %c0_37], %26 {strides = array<i32>} : memref<1x8x32x32xf32, #tpu.memory_space<vmem>>, vector<1x1x32x32xf32>,
    %c0_38 = arith.constant 0 : index
    %c0_39 = arith.constant 0 : index
    %27 = vector.load %arg2[%c0_38, %c0_39] : memref<32x16xf32, #tpu.memory_space<vmem>>, vector<32x16xf32>
    %c0_40 = arith.constant 0 : index
    %c3 = arith.constant 3 : index
    %c0_41 = arith.constant 0 : index
    %c0_42 = arith.constant 0 : index
    %28 = vector.load %arg1[%c0_40, %c3, %c0_41, %c0_42] : memref<1x8x16x16xf32, #tpu.memory_space<vmem>>, vector<1x1x16x16xf32>
    %29 = vector.shape_cast %28 : vector<1x1x16x16xf32> to vector<16x16xf32>
    %cst_43 = arith.constant dense<0.000000e+00> : vector<32x16xf32>
    %30 = tpu.matmul %27, %29, %cst_43 {dimension_numbers = #tpu.dot_dimension_numbers<[1], [0], [0], [1], [0, 0, 1, 1], [], []>} : vector<32x16xf32>, vector<16x16xf32>, vector<32x16xf32> -> vector<32x16xf32>
    %c0_44 = arith.constant 0 : index
    %c0_45 = arith.constant 0 : index
    %31 = vector.load %arg3[%c0_44, %c0_45] : memref<16x32xf32, #tpu.memory_space<vmem>>, vector<16x32xf32>
    %cst_46 = arith.constant dense<0.000000e+00> : vector<32x32xf32>
    %32 = tpu.matmul %30, %31, %cst_46 {dimension_numbers = #tpu.dot_dimension_numbers<[1], [0], [0], [1], [0, 0, 1, 1], [], []>} : vector<32x16xf32>, vector<16x32xf32>, vector<32x32xf32> -> vector<32x32xf32>
    %c0_47 = arith.constant 0 : index
    %c3_48 = arith.constant 3 : index
    %c0_49 = arith.constant 0 : index
    %c0_50 = arith.constant 0 : index
    %33 = vector.load %arg4[%c0_47, %c3_48, %c0_49, %c0_50] : memref<1x8x32x32xf32, #tpu.memory_space<vmem>>, vector<1x1x32x32xf32>
    %34 = vector.shape_cast %33 : vector<1x1x32x32xf32> to vector<32x32xf32>
    %35 = vector.shape_cast %32 : vector<32x32xf32> to vector<1x1x32x32xf32>
    tpu.vector_store %arg4[%c0_47, %c3_48, %c0_49, %c0_50], %35 {strides = array<i32>} : memref<1x8x32x32xf32, #tpu.memory_space<vmem>>, vector<1x1x32x32xf32>,
    %c0_51 = arith.constant 0 : index
    %c0_52 = arith.constant 0 : index
    %36 = vector.load %arg2[%c0_51, %c0_52] : memref<32x16xf32, #tpu.memory_space<vmem>>, vector<32x16xf32>
    %c0_53 = arith.constant 0 : index
    %c4 = arith.constant 4 : index
    %c0_54 = arith.constant 0 : index
    %c0_55 = arith.constant 0 : index
    %37 = vector.load %arg1[%c0_53, %c4, %c0_54, %c0_55] : memref<1x8x16x16xf32, #tpu.memory_space<vmem>>, vector<1x1x16x16xf32>
    %38 = vector.shape_cast %37 : vector<1x1x16x16xf32> to vector<16x16xf32>
    %cst_56 = arith.constant dense<0.000000e+00> : vector<32x16xf32>
    %39 = tpu.matmul %36, %38, %cst_56 {dimension_numbers = #tpu.dot_dimension_numbers<[1], [0], [0], [1], [0, 0, 1, 1], [], []>} : vector<32x16xf32>, vector<16x16xf32>, vector<32x16xf32> -> vector<32x16xf32>
    %c0_57 = arith.constant 0 : index
    %c0_58 = arith.constant 0 : index
    %40 = vector.load %arg3[%c0_57, %c0_58] : memref<16x32xf32, #tpu.memory_space<vmem>>, vector<16x32xf32>
    %cst_59 = arith.constant dense<0.000000e+00> : vector<32x32xf32>
    %41 = tpu.matmul %39, %40, %cst_59 {dimension_numbers = #tpu.dot_dimension_numbers<[1], [0], [0], [1], [0, 0, 1, 1], [], []>} : vector<32x16xf32>, vector<16x32xf32>, vector<32x32xf32> -> vector<32x32xf32>
    %c0_60 = arith.constant 0 : index
    %c4_61 = arith.constant 4 : index
    %c0_62 = arith.constant 0 : index
    %c0_63 = arith.constant 0 : index
    %42 = vector.load %arg4[%c0_60, %c4_61, %c0_62, %c0_63] : memref<1x8x32x32xf32, #tpu.memory_space<vmem>>, vector<1x1x32x32xf32>
    %43 = vector.shape_cast %42 : vector<1x1x32x32xf32> to vector<32x32xf32>
    %44 = vector.shape_cast %41 : vector<32x32xf32> to vector<1x1x32x32xf32>
    tpu.vector_store %arg4[%c0_60, %c4_61, %c0_62, %c0_63], %44 {strides = array<i32>} : memref<1x8x32x32xf32, #tpu.memory_space<vmem>>, vector<1x1x32x32xf32>,
    %c0_64 = arith.constant 0 : index
    %c0_65 = arith.constant 0 : index
    %45 = vector.load %arg2[%c0_64, %c0_65] : memref<32x16xf32, #tpu.memory_space<vmem>>, vector<32x16xf32>
    %c0_66 = arith.constant 0 : index
    %c5 = arith.constant 5 : index
    %c0_67 = arith.constant 0 : index
    %c0_68 = arith.constant 0 : index
    %46 = vector.load %arg1[%c0_66, %c5, %c0_67, %c0_68] : memref<1x8x16x16xf32, #tpu.memory_space<vmem>>, vector<1x1x16x16xf32>
    %47 = vector.shape_cast %46 : vector<1x1x16x16xf32> to vector<16x16xf32>
    %cst_69 = arith.constant dense<0.000000e+00> : vector<32x16xf32>
    %48 = tpu.matmul %45, %47, %cst_69 {dimension_numbers = #tpu.dot_dimension_numbers<[1], [0], [0], [1], [0, 0, 1, 1], [], []>} : vector<32x16xf32>, vector<16x16xf32>, vector<32x16xf32> -> vector<32x16xf32>
    %c0_70 = arith.constant 0 : index
    %c0_71 = arith.constant 0 : index
    %49 = vector.load %arg3[%c0_70, %c0_71] : memref<16x32xf32, #tpu.memory_space<vmem>>, vector<16x32xf32>
    %cst_72 = arith.constant dense<0.000000e+00> : vector<32x32xf32>
    %50 = tpu.matmul %48, %49, %cst_72 {dimension_numbers = #tpu.dot_dimension_numbers<[1], [0], [0], [1], [0, 0, 1, 1], [], []>} : vector<32x16xf32>, vector<16x32xf32>, vector<32x32xf32> -> vector<32x32xf32>
    %c0_73 = arith.constant 0 : index
    %c5_74 = arith.constant 5 : index
    %c0_75 = arith.constant 0 : index
    %c0_76 = arith.constant 0 : index
    %51 = vector.load %arg4[%c0_73, %c5_74, %c0_75, %c0_76] : memref<1x8x32x32xf32, #tpu.memory_space<vmem>>, vector<1x1x32x32xf32>
    %52 = vector.shape_cast %51 : vector<1x1x32x32xf32> to vector<32x32xf32>
    %53 = vector.shape_cast %50 : vector<32x32xf32> to vector<1x1x32x32xf32>
    tpu.vector_store %arg4[%c0_73, %c5_74, %c0_75, %c0_76], %53 {strides = array<i32>} : memref<1x8x32x32xf32, #tpu.memory_space<vmem>>, vector<1x1x32x32xf32>,
    %c0_77 = arith.constant 0 : index
    %c0_78 = arith.constant 0 : index
    %54 = vector.load %arg2[%c0_77, %c0_78] : memref<32x16xf32, #tpu.memory_space<vmem>>, vector<32x16xf32>
    %c0_79 = arith.constant 0 : index
    %c6 = arith.constant 6 : index
    %c0_80 = arith.constant 0 : index
    %c0_81 = arith.constant 0 : index
    %55 = vector.load %arg1[%c0_79, %c6, %c0_80, %c0_81] : memref<1x8x16x16xf32, #tpu.memory_space<vmem>>, vector<1x1x16x16xf32>
    %56 = vector.shape_cast %55 : vector<1x1x16x16xf32> to vector<16x16xf32>
    %cst_82 = arith.constant dense<0.000000e+00> : vector<32x16xf32>
    %57 = tpu.matmul %54, %56, %cst_82 {dimension_numbers = #tpu.dot_dimension_numbers<[1], [0], [0], [1], [0, 0, 1, 1], [], []>} : vector<32x16xf32>, vector<16x16xf32>, vector<32x16xf32> -> vector<32x16xf32>
    %c0_83 = arith.constant 0 : index
    %c0_84 = arith.constant 0 : index
    %58 = vector.load %arg3[%c0_83, %c0_84] : memref<16x32xf32, #tpu.memory_space<vmem>>, vector<16x32xf32>
    %cst_85 = arith.constant dense<0.000000e+00> : vector<32x32xf32>
    %59 = tpu.matmul %57, %58, %cst_85 {dimension_numbers = #tpu.dot_dimension_numbers<[1], [0], [0], [1], [0, 0, 1, 1], [], []>} : vector<32x16xf32>, vector<16x32xf32>, vector<32x32xf32> -> vector<32x32xf32>
    %c0_86 = arith.constant 0 : index
    %c6_87 = arith.constant 6 : index
    %c0_88 = arith.constant 0 : index
    %c0_89 = arith.constant 0 : index
    %60 = vector.load %arg4[%c0_86, %c6_87, %c0_88, %c0_89] : memref<1x8x32x32xf32, #tpu.memory_space<vmem>>, vector<1x1x32x32xf32>
    %61 = vector.shape_cast %60 : vector<1x1x32x32xf32> to vector<32x32xf32>
    %62 = vector.shape_cast %59 : vector<32x32xf32> to vector<1x1x32x32xf32>
    tpu.vector_store %arg4[%c0_86, %c6_87, %c0_88, %c0_89], %62 {strides = array<i32>} : memref<1x8x32x32xf32, #tpu.memory_space<vmem>>, vector<1x1x32x32xf32>,
    %c0_90 = arith.constant 0 : index
    %c0_91 = arith.constant 0 : index
    %63 = vector.load %arg2[%c0_90, %c0_91] : memref<32x16xf32, #tpu.memory_space<vmem>>, vector<32x16xf32>
    %c0_92 = arith.constant 0 : index
    %c7 = arith.constant 7 : index
    %c0_93 = arith.constant 0 : index
    %c0_94 = arith.constant 0 : index
    %64 = vector.load %arg1[%c0_92, %c7, %c0_93, %c0_94] : memref<1x8x16x16xf32, #tpu.memory_space<vmem>>, vector<1x1x16x16xf32>
    %65 = vector.shape_cast %64 : vector<1x1x16x16xf32> to vector<16x16xf32>
    %cst_95 = arith.constant dense<0.000000e+00> : vector<32x16xf32>
    %66 = tpu.matmul %63, %65, %cst_95 {dimension_numbers = #tpu.dot_dimension_numbers<[1], [0], [0], [1], [0, 0, 1, 1], [], []>} : vector<32x16xf32>, vector<16x16xf32>, vector<32x16xf32> -> vector<32x16xf32>
    %c0_96 = arith.constant 0 : index
    %c0_97 = arith.constant 0 : index
    %67 = vector.load %arg3[%c0_96, %c0_97] : memref<16x32xf32, #tpu.memory_space<vmem>>, vector<16x32xf32>
    %cst_98 = arith.constant dense<0.000000e+00> : vector<32x32xf32>
    %68 = tpu.matmul %66, %67, %cst_98 {dimension_numbers = #tpu.dot_dimension_numbers<[1], [0], [0], [1], [0, 0, 1, 1], [], []>} : vector<32x16xf32>, vector<16x32xf32>, vector<32x32xf32> -> vector<32x32xf32>
    %c0_99 = arith.constant 0 : index
    %c7_100 = arith.constant 7 : index
    %c0_101 = arith.constant 0 : index
    %c0_102 = arith.constant 0 : index
    %69 = vector.load %arg4[%c0_99, %c7_100, %c0_101, %c0_102] : memref<1x8x32x32xf32, #tpu.memory_space<vmem>>, vector<1x1x32x32xf32>
    %70 = vector.shape_cast %69 : vector<1x1x32x32xf32> to vector<32x32xf32>
    %71 = vector.shape_cast %68 : vector<32x32xf32> to vector<1x1x32x32xf32>
    tpu.vector_store %arg4[%c0_99, %c7_100, %c0_101, %c0_102], %71 {strides = array<i32>} : memref<1x8x32x32xf32, #tpu.memory_space<vmem>>, vector<1x1x32x32xf32>,
    return
  }
  func.func @transform_0(%arg0: i32) -> (i32, i32, i32, i32) {
    %c0_i32 = arith.constant 0 : i32
    %c0_i32_0 = arith.constant 0 : i32
    %c0_i32_1 = arith.constant 0 : i32
    %c0_i32_2 = arith.constant 0 : i32
    return %arg0, %c0_i32, %c0_i32_0, %c0_i32_1 : i32, i32, i32, i32
  }
  func.func @transform_1(%arg0: i32) -> (i32, i32) {
    %c0_i32 = arith.constant 0 : i32
    %c0_i32_0 = arith.constant 0 : i32
    %c0_i32_1 = arith.constant 0 : i32
    return %c0_i32, %c0_i32_0 : i32, i32
  }
  func.func @transform_2(%arg0: i32) -> (i32, i32) {
    %c0_i32 = arith.constant 0 : i32
    %c0_i32_0 = arith.constant 0 : i32
    %c0_i32_1 = arith.constant 0 : i32
    return %c0_i32, %c0_i32_0 : i32, i32
  }
  func.func @transform_3(%arg0: i32) -> (i32, i32, i32, i32) {
    %c0_i32 = arith.constant 0 : i32
    %c0_i32_0 = arith.constant 0 : i32
    %c0_i32_1 = arith.constant 0 : i32
    %c0_i32_2 = arith.constant 0 : i32
    return %arg0, %c0_i32, %c0_i32_0, %c0_i32_1 : i32, i32, i32, i32
  }
}

module attributes {stable_mosaic.version = 11 : i64} {
  func.func @kernel(%arg0: i32, %arg1: i32, %arg2: memref<1x36x256xf32, #tpu.memory_space<vmem>>, %arg3: memref<1x36x256xf32, #tpu.memory_space<vmem>>, %arg4: memref<8x36xf32, #tpu.memory_space<vmem>>, %arg5: memref<8x36xf32, #tpu.memory_space<vmem>>, %arg6: memref<8x1xf32, #tpu.memory_space<vmem>>, %arg7: memref<1x8x256xf32, #tpu.memory_space<vmem>>) attributes {dimension_semantics = [#tpu.dimension_semantics<parallel>, #tpu.dimension_semantics<parallel>], iteration_bounds = array<i64: 2, 1>, scalar_prefetch = 0 : i64, scratch_operands = 0 : i64, tpu.core_type = #tpu.core_type<tc>, window_params = [{transform_indices = @transform_0, window_bounds = array<i64: 1, 36, 256>}, {transform_indices = @transform_1, window_bounds = array<i64: 1, 36, 256>}, {pipeline_mode = #tpu.pipeline_mode<synchronous>, transform_indices = @transform_2, window_bounds = array<i64: 8, 36>}, {pipeline_mode = #tpu.pipeline_mode<synchronous>, transform_indices = @transform_3, window_bounds = array<i64: 8, 36>}, {pipeline_mode = #tpu.pipeline_mode<synchronous>, transform_indices = @transform_4, window_bounds = array<i64: 8, 1>}, {transform_indices = @transform_5, window_bounds = array<i64: 1, 8, 256>}]} {
    %c0 = arith.constant 0 : index
    %c0_0 = arith.constant 0 : index
    %0 = vector.load %arg4[%c0, %c0_0] : memref<8x36xf32, #tpu.memory_space<vmem>>, vector<8x36xf32>
    %c0_1 = arith.constant 0 : index
    %c0_2 = arith.constant 0 : index
    %c0_3 = arith.constant 0 : index
    %1 = vector.load %arg2[%c0_1, %c0_2, %c0_3] : memref<1x36x256xf32, #tpu.memory_space<vmem>>, vector<1x36x256xf32>
    %2 = vector.shape_cast %1 : vector<1x36x256xf32> to vector<36x256xf32>
    %cst = arith.constant dense<0.000000e+00> : vector<8x256xf32>
    %3 = tpu.matmul %0, %2, %cst {dimension_numbers = #tpu.dot_dimension_numbers<[1], [0], [0], [1], [0, 0, 1, 1], [], []>} : vector<8x36xf32>, vector<36x256xf32>, vector<8x256xf32> -> vector<8x256xf32>
    %c0_4 = arith.constant 0 : index
    %c0_5 = arith.constant 0 : index
    %4 = vector.load %arg5[%c0_4, %c0_5] : memref<8x36xf32, #tpu.memory_space<vmem>>, vector<8x36xf32>
    %c0_6 = arith.constant 0 : index
    %c0_7 = arith.constant 0 : index
    %c0_8 = arith.constant 0 : index
    %5 = vector.load %arg3[%c0_6, %c0_7, %c0_8] : memref<1x36x256xf32, #tpu.memory_space<vmem>>, vector<1x36x256xf32>
    %6 = vector.shape_cast %5 : vector<1x36x256xf32> to vector<36x256xf32>
    %cst_9 = arith.constant dense<0.000000e+00> : vector<8x256xf32>
    %7 = tpu.matmul %4, %6, %cst_9 {dimension_numbers = #tpu.dot_dimension_numbers<[1], [0], [0], [1], [0, 0, 1, 1], [], []>} : vector<8x36xf32>, vector<36x256xf32>, vector<8x256xf32> -> vector<8x256xf32>
    %8 = arith.addf %3, %7 : vector<8x256xf32>
    %c0_10 = arith.constant 0 : index
    %c0_11 = arith.constant 0 : index
    %9 = vector.load %arg6[%c0_10, %c0_11] : memref<8x1xf32, #tpu.memory_space<vmem>>, vector<8x1xf32>
    %10 = vector.broadcast %9 : vector<8x1xf32> to vector<8x256xf32>
    %11 = arith.addf %8, %10 : vector<8x256xf32>
    %cst_12 = arith.constant 0.000000e+00 : f32
    %12 = vector.broadcast %cst_12 : f32 to vector<8x256xf32>
    %13 = arith.maximumf %11, %12 : vector<8x256xf32>
    %c0_13 = arith.constant 0 : index
    %c0_14 = arith.constant 0 : index
    %c0_15 = arith.constant 0 : index
    %14 = vector.load %arg7[%c0_13, %c0_14, %c0_15] : memref<1x8x256xf32, #tpu.memory_space<vmem>>, vector<1x8x256xf32>
    %15 = vector.shape_cast %14 : vector<1x8x256xf32> to vector<8x256xf32>
    %16 = vector.shape_cast %13 : vector<8x256xf32> to vector<1x8x256xf32>
    tpu.vector_store %arg7[%c0_13, %c0_14, %c0_15], %16 {strides = array<i32>} : memref<1x8x256xf32, #tpu.memory_space<vmem>>, vector<1x8x256xf32>,
    return
  }
  func.func @transform_0(%arg0: i32, %arg1: i32) -> (i32, i32, i32) {
    %c0_i32 = arith.constant 0 : i32
    %c0_i32_0 = arith.constant 0 : i32
    return %arg0, %c0_i32, %arg1 : i32, i32, i32
  }
  func.func @transform_1(%arg0: i32, %arg1: i32) -> (i32, i32, i32) {
    %c0_i32 = arith.constant 0 : i32
    %c0_i32_0 = arith.constant 0 : i32
    return %arg0, %c0_i32, %arg1 : i32, i32, i32
  }
  func.func @transform_2(%arg0: i32, %arg1: i32) -> (i32, i32) {
    %c0_i32 = arith.constant 0 : i32
    %c0_i32_0 = arith.constant 0 : i32
    %c0_i32_1 = arith.constant 0 : i32
    return %c0_i32, %c0_i32_0 : i32, i32
  }
  func.func @transform_3(%arg0: i32, %arg1: i32) -> (i32, i32) {
    %c0_i32 = arith.constant 0 : i32
    %c0_i32_0 = arith.constant 0 : i32
    %c0_i32_1 = arith.constant 0 : i32
    return %c0_i32, %c0_i32_0 : i32, i32
  }
  func.func @transform_4(%arg0: i32, %arg1: i32) -> (i32, i32) {
    %c0_i32 = arith.constant 0 : i32
    %c0_i32_0 = arith.constant 0 : i32
    %c0_i32_1 = arith.constant 0 : i32
    return %c0_i32, %c0_i32_0 : i32, i32
  }
  func.func @transform_5(%arg0: i32, %arg1: i32) -> (i32, i32, i32) {
    %c0_i32 = arith.constant 0 : i32
    %c0_i32_0 = arith.constant 0 : i32
    return %arg0, %c0_i32, %arg1 : i32, i32, i32
  }
}

module attributes {stable_mosaic.version = 11 : i64} {
  func.func @kernel(%arg0: i32, %arg1: i32, %arg2: memref<1x72x1024xf32, #tpu.memory_space<vmem>>, %arg3: memref<8x72xf32, #tpu.memory_space<vmem>>, %arg4: memref<8x1xf32, #tpu.memory_space<vmem>>, %arg5: memref<1x8x1024xf32, #tpu.memory_space<vmem>>) attributes {dimension_semantics = [#tpu.dimension_semantics<parallel>, #tpu.dimension_semantics<parallel>], iteration_bounds = array<i64: 2, 1>, scalar_prefetch = 0 : i64, scratch_operands = 0 : i64, tpu.core_type = #tpu.core_type<tc>, window_params = [{transform_indices = @transform_0, window_bounds = array<i64: 1, 72, 1024>}, {pipeline_mode = #tpu.pipeline_mode<synchronous>, transform_indices = @transform_1, window_bounds = array<i64: 8, 72>}, {pipeline_mode = #tpu.pipeline_mode<synchronous>, transform_indices = @transform_2, window_bounds = array<i64: 8, 1>}, {transform_indices = @transform_3, window_bounds = array<i64: 1, 8, 1024>}]} {
    %c0 = arith.constant 0 : index
    %c0_0 = arith.constant 0 : index
    %0 = vector.load %arg3[%c0, %c0_0] : memref<8x72xf32, #tpu.memory_space<vmem>>, vector<8x72xf32>
    %c0_1 = arith.constant 0 : index
    %c0_2 = arith.constant 0 : index
    %c0_3 = arith.constant 0 : index
    %1 = vector.load %arg2[%c0_1, %c0_2, %c0_3] : memref<1x72x1024xf32, #tpu.memory_space<vmem>>, vector<1x72x1024xf32>
    %2 = vector.shape_cast %1 : vector<1x72x1024xf32> to vector<72x1024xf32>
    %cst = arith.constant dense<0.000000e+00> : vector<8x1024xf32>
    %3 = tpu.matmul %0, %2, %cst {dimension_numbers = #tpu.dot_dimension_numbers<[1], [0], [0], [1], [0, 0, 1, 1], [], []>} : vector<8x72xf32>, vector<72x1024xf32>, vector<8x1024xf32> -> vector<8x1024xf32>
    %c0_4 = arith.constant 0 : index
    %c0_5 = arith.constant 0 : index
    %4 = vector.load %arg4[%c0_4, %c0_5] : memref<8x1xf32, #tpu.memory_space<vmem>>, vector<8x1xf32>
    %5 = vector.broadcast %4 : vector<8x1xf32> to vector<8x1024xf32>
    %6 = arith.addf %3, %5 : vector<8x1024xf32>
    %cst_6 = arith.constant 0.000000e+00 : f32
    %7 = vector.broadcast %cst_6 : f32 to vector<8x1024xf32>
    %8 = arith.maximumf %6, %7 : vector<8x1024xf32>
    %c0_7 = arith.constant 0 : index
    %c0_8 = arith.constant 0 : index
    %c0_9 = arith.constant 0 : index
    %9 = vector.load %arg5[%c0_7, %c0_8, %c0_9] : memref<1x8x1024xf32, #tpu.memory_space<vmem>>, vector<1x8x1024xf32>
    %10 = vector.shape_cast %9 : vector<1x8x1024xf32> to vector<8x1024xf32>
    %11 = vector.shape_cast %8 : vector<8x1024xf32> to vector<1x8x1024xf32>
    tpu.vector_store %arg5[%c0_7, %c0_8, %c0_9], %11 {strides = array<i32>} : memref<1x8x1024xf32, #tpu.memory_space<vmem>>, vector<1x8x1024xf32>,
    return
  }
  func.func @transform_0(%arg0: i32, %arg1: i32) -> (i32, i32, i32) {
    %c0_i32 = arith.constant 0 : i32
    %c0_i32_0 = arith.constant 0 : i32
    return %arg0, %c0_i32, %arg1 : i32, i32, i32
  }
  func.func @transform_1(%arg0: i32, %arg1: i32) -> (i32, i32) {
    %c0_i32 = arith.constant 0 : i32
    %c0_i32_0 = arith.constant 0 : i32
    %c0_i32_1 = arith.constant 0 : i32
    return %c0_i32, %c0_i32_0 : i32, i32
  }
  func.func @transform_2(%arg0: i32, %arg1: i32) -> (i32, i32) {
    %c0_i32 = arith.constant 0 : i32
    %c0_i32_0 = arith.constant 0 : i32
    %c0_i32_1 = arith.constant 0 : i32
    return %c0_i32, %c0_i32_0 : i32, i32
  }
  func.func @transform_3(%arg0: i32, %arg1: i32) -> (i32, i32, i32) {
    %c0_i32 = arith.constant 0 : i32
    %c0_i32_0 = arith.constant 0 : i32
    return %arg0, %c0_i32, %arg1 : i32, i32, i32
  }
}

module attributes {stable_mosaic.version = 11 : i64} {
  func.func @_bilinear_up_kernel(%arg0: i32, %arg1: memref<1x4x16x16xf32, #tpu.memory_space<vmem>>, %arg2: memref<32x16xf32, #tpu.memory_space<vmem>>, %arg3: memref<16x32xf32, #tpu.memory_space<vmem>>, %arg4: memref<1x4x32x32xf32, #tpu.memory_space<vmem>>) attributes {dimension_semantics = [#tpu.dimension_semantics<parallel>], iteration_bounds = array<i64: 2>, scalar_prefetch = 0 : i64, scratch_operands = 0 : i64, tpu.core_type = #tpu.core_type<tc>, window_params = [{transform_indices = @transform_0, window_bounds = array<i64: 1, 4, 16, 16>}, {pipeline_mode = #tpu.pipeline_mode<synchronous>, transform_indices = @transform_1, window_bounds = array<i64: 32, 16>}, {pipeline_mode = #tpu.pipeline_mode<synchronous>, transform_indices = @transform_2, window_bounds = array<i64: 16, 32>}, {transform_indices = @transform_3, window_bounds = array<i64: 1, 4, 32, 32>}]} {
    %c0 = arith.constant 0 : index
    %c0_0 = arith.constant 0 : index
    %0 = vector.load %arg2[%c0, %c0_0] : memref<32x16xf32, #tpu.memory_space<vmem>>, vector<32x16xf32>
    %c0_1 = arith.constant 0 : index
    %c0_2 = arith.constant 0 : index
    %c0_3 = arith.constant 0 : index
    %c0_4 = arith.constant 0 : index
    %1 = vector.load %arg1[%c0_1, %c0_2, %c0_3, %c0_4] : memref<1x4x16x16xf32, #tpu.memory_space<vmem>>, vector<1x1x16x16xf32>
    %2 = vector.shape_cast %1 : vector<1x1x16x16xf32> to vector<16x16xf32>
    %cst = arith.constant dense<0.000000e+00> : vector<32x16xf32>
    %3 = tpu.matmul %0, %2, %cst {dimension_numbers = #tpu.dot_dimension_numbers<[1], [0], [0], [1], [0, 0, 1, 1], [], []>} : vector<32x16xf32>, vector<16x16xf32>, vector<32x16xf32> -> vector<32x16xf32>
    %c0_5 = arith.constant 0 : index
    %c0_6 = arith.constant 0 : index
    %4 = vector.load %arg3[%c0_5, %c0_6] : memref<16x32xf32, #tpu.memory_space<vmem>>, vector<16x32xf32>
    %cst_7 = arith.constant dense<0.000000e+00> : vector<32x32xf32>
    %5 = tpu.matmul %3, %4, %cst_7 {dimension_numbers = #tpu.dot_dimension_numbers<[1], [0], [0], [1], [0, 0, 1, 1], [], []>} : vector<32x16xf32>, vector<16x32xf32>, vector<32x32xf32> -> vector<32x32xf32>
    %c0_8 = arith.constant 0 : index
    %c0_9 = arith.constant 0 : index
    %c0_10 = arith.constant 0 : index
    %c0_11 = arith.constant 0 : index
    %6 = vector.load %arg4[%c0_8, %c0_9, %c0_10, %c0_11] : memref<1x4x32x32xf32, #tpu.memory_space<vmem>>, vector<1x1x32x32xf32>
    %7 = vector.shape_cast %6 : vector<1x1x32x32xf32> to vector<32x32xf32>
    %8 = vector.shape_cast %5 : vector<32x32xf32> to vector<1x1x32x32xf32>
    tpu.vector_store %arg4[%c0_8, %c0_9, %c0_10, %c0_11], %8 {strides = array<i32>} : memref<1x4x32x32xf32, #tpu.memory_space<vmem>>, vector<1x1x32x32xf32>,
    %c0_12 = arith.constant 0 : index
    %c0_13 = arith.constant 0 : index
    %9 = vector.load %arg2[%c0_12, %c0_13] : memref<32x16xf32, #tpu.memory_space<vmem>>, vector<32x16xf32>
    %c0_14 = arith.constant 0 : index
    %c1 = arith.constant 1 : index
    %c0_15 = arith.constant 0 : index
    %c0_16 = arith.constant 0 : index
    %10 = vector.load %arg1[%c0_14, %c1, %c0_15, %c0_16] : memref<1x4x16x16xf32, #tpu.memory_space<vmem>>, vector<1x1x16x16xf32>
    %11 = vector.shape_cast %10 : vector<1x1x16x16xf32> to vector<16x16xf32>
    %cst_17 = arith.constant dense<0.000000e+00> : vector<32x16xf32>
    %12 = tpu.matmul %9, %11, %cst_17 {dimension_numbers = #tpu.dot_dimension_numbers<[1], [0], [0], [1], [0, 0, 1, 1], [], []>} : vector<32x16xf32>, vector<16x16xf32>, vector<32x16xf32> -> vector<32x16xf32>
    %c0_18 = arith.constant 0 : index
    %c0_19 = arith.constant 0 : index
    %13 = vector.load %arg3[%c0_18, %c0_19] : memref<16x32xf32, #tpu.memory_space<vmem>>, vector<16x32xf32>
    %cst_20 = arith.constant dense<0.000000e+00> : vector<32x32xf32>
    %14 = tpu.matmul %12, %13, %cst_20 {dimension_numbers = #tpu.dot_dimension_numbers<[1], [0], [0], [1], [0, 0, 1, 1], [], []>} : vector<32x16xf32>, vector<16x32xf32>, vector<32x32xf32> -> vector<32x32xf32>
    %c0_21 = arith.constant 0 : index
    %c1_22 = arith.constant 1 : index
    %c0_23 = arith.constant 0 : index
    %c0_24 = arith.constant 0 : index
    %15 = vector.load %arg4[%c0_21, %c1_22, %c0_23, %c0_24] : memref<1x4x32x32xf32, #tpu.memory_space<vmem>>, vector<1x1x32x32xf32>
    %16 = vector.shape_cast %15 : vector<1x1x32x32xf32> to vector<32x32xf32>
    %17 = vector.shape_cast %14 : vector<32x32xf32> to vector<1x1x32x32xf32>
    tpu.vector_store %arg4[%c0_21, %c1_22, %c0_23, %c0_24], %17 {strides = array<i32>} : memref<1x4x32x32xf32, #tpu.memory_space<vmem>>, vector<1x1x32x32xf32>,
    %c0_25 = arith.constant 0 : index
    %c0_26 = arith.constant 0 : index
    %18 = vector.load %arg2[%c0_25, %c0_26] : memref<32x16xf32, #tpu.memory_space<vmem>>, vector<32x16xf32>
    %c0_27 = arith.constant 0 : index
    %c2 = arith.constant 2 : index
    %c0_28 = arith.constant 0 : index
    %c0_29 = arith.constant 0 : index
    %19 = vector.load %arg1[%c0_27, %c2, %c0_28, %c0_29] : memref<1x4x16x16xf32, #tpu.memory_space<vmem>>, vector<1x1x16x16xf32>
    %20 = vector.shape_cast %19 : vector<1x1x16x16xf32> to vector<16x16xf32>
    %cst_30 = arith.constant dense<0.000000e+00> : vector<32x16xf32>
    %21 = tpu.matmul %18, %20, %cst_30 {dimension_numbers = #tpu.dot_dimension_numbers<[1], [0], [0], [1], [0, 0, 1, 1], [], []>} : vector<32x16xf32>, vector<16x16xf32>, vector<32x16xf32> -> vector<32x16xf32>
    %c0_31 = arith.constant 0 : index
    %c0_32 = arith.constant 0 : index
    %22 = vector.load %arg3[%c0_31, %c0_32] : memref<16x32xf32, #tpu.memory_space<vmem>>, vector<16x32xf32>
    %cst_33 = arith.constant dense<0.000000e+00> : vector<32x32xf32>
    %23 = tpu.matmul %21, %22, %cst_33 {dimension_numbers = #tpu.dot_dimension_numbers<[1], [0], [0], [1], [0, 0, 1, 1], [], []>} : vector<32x16xf32>, vector<16x32xf32>, vector<32x32xf32> -> vector<32x32xf32>
    %c0_34 = arith.constant 0 : index
    %c2_35 = arith.constant 2 : index
    %c0_36 = arith.constant 0 : index
    %c0_37 = arith.constant 0 : index
    %24 = vector.load %arg4[%c0_34, %c2_35, %c0_36, %c0_37] : memref<1x4x32x32xf32, #tpu.memory_space<vmem>>, vector<1x1x32x32xf32>
    %25 = vector.shape_cast %24 : vector<1x1x32x32xf32> to vector<32x32xf32>
    %26 = vector.shape_cast %23 : vector<32x32xf32> to vector<1x1x32x32xf32>
    tpu.vector_store %arg4[%c0_34, %c2_35, %c0_36, %c0_37], %26 {strides = array<i32>} : memref<1x4x32x32xf32, #tpu.memory_space<vmem>>, vector<1x1x32x32xf32>,
    %c0_38 = arith.constant 0 : index
    %c0_39 = arith.constant 0 : index
    %27 = vector.load %arg2[%c0_38, %c0_39] : memref<32x16xf32, #tpu.memory_space<vmem>>, vector<32x16xf32>
    %c0_40 = arith.constant 0 : index
    %c3 = arith.constant 3 : index
    %c0_41 = arith.constant 0 : index
    %c0_42 = arith.constant 0 : index
    %28 = vector.load %arg1[%c0_40, %c3, %c0_41, %c0_42] : memref<1x4x16x16xf32, #tpu.memory_space<vmem>>, vector<1x1x16x16xf32>
    %29 = vector.shape_cast %28 : vector<1x1x16x16xf32> to vector<16x16xf32>
    %cst_43 = arith.constant dense<0.000000e+00> : vector<32x16xf32>
    %30 = tpu.matmul %27, %29, %cst_43 {dimension_numbers = #tpu.dot_dimension_numbers<[1], [0], [0], [1], [0, 0, 1, 1], [], []>} : vector<32x16xf32>, vector<16x16xf32>, vector<32x16xf32> -> vector<32x16xf32>
    %c0_44 = arith.constant 0 : index
    %c0_45 = arith.constant 0 : index
    %31 = vector.load %arg3[%c0_44, %c0_45] : memref<16x32xf32, #tpu.memory_space<vmem>>, vector<16x32xf32>
    %cst_46 = arith.constant dense<0.000000e+00> : vector<32x32xf32>
    %32 = tpu.matmul %30, %31, %cst_46 {dimension_numbers = #tpu.dot_dimension_numbers<[1], [0], [0], [1], [0, 0, 1, 1], [], []>} : vector<32x16xf32>, vector<16x32xf32>, vector<32x32xf32> -> vector<32x32xf32>
    %c0_47 = arith.constant 0 : index
    %c3_48 = arith.constant 3 : index
    %c0_49 = arith.constant 0 : index
    %c0_50 = arith.constant 0 : index
    %33 = vector.load %arg4[%c0_47, %c3_48, %c0_49, %c0_50] : memref<1x4x32x32xf32, #tpu.memory_space<vmem>>, vector<1x1x32x32xf32>
    %34 = vector.shape_cast %33 : vector<1x1x32x32xf32> to vector<32x32xf32>
    %35 = vector.shape_cast %32 : vector<32x32xf32> to vector<1x1x32x32xf32>
    tpu.vector_store %arg4[%c0_47, %c3_48, %c0_49, %c0_50], %35 {strides = array<i32>} : memref<1x4x32x32xf32, #tpu.memory_space<vmem>>, vector<1x1x32x32xf32>,
    return
  }
  func.func @transform_0(%arg0: i32) -> (i32, i32, i32, i32) {
    %c0_i32 = arith.constant 0 : i32
    %c0_i32_0 = arith.constant 0 : i32
    %c0_i32_1 = arith.constant 0 : i32
    %c0_i32_2 = arith.constant 0 : i32
    return %arg0, %c0_i32, %c0_i32_0, %c0_i32_1 : i32, i32, i32, i32
  }
  func.func @transform_1(%arg0: i32) -> (i32, i32) {
    %c0_i32 = arith.constant 0 : i32
    %c0_i32_0 = arith.constant 0 : i32
    %c0_i32_1 = arith.constant 0 : i32
    return %c0_i32, %c0_i32_0 : i32, i32
  }
  func.func @transform_2(%arg0: i32) -> (i32, i32) {
    %c0_i32 = arith.constant 0 : i32
    %c0_i32_0 = arith.constant 0 : i32
    %c0_i32_1 = arith.constant 0 : i32
    return %c0_i32, %c0_i32_0 : i32, i32
  }
  func.func @transform_3(%arg0: i32) -> (i32, i32, i32, i32) {
    %c0_i32 = arith.constant 0 : i32
    %c0_i32_0 = arith.constant 0 : i32
    %c0_i32_1 = arith.constant 0 : i32
    %c0_i32_2 = arith.constant 0 : i32
    return %arg0, %c0_i32, %c0_i32_0, %c0_i32_1 : i32, i32, i32, i32
  }
}

module attributes {stable_mosaic.version = 11 : i64} {
  func.func @kernel(%arg0: i32, %arg1: i32, %arg2: memref<1x36x1024xf32, #tpu.memory_space<vmem>>, %arg3: memref<4x36xf32, #tpu.memory_space<vmem>>, %arg4: memref<4x1xf32, #tpu.memory_space<vmem>>, %arg5: memref<1x4x1024xf32, #tpu.memory_space<vmem>>) attributes {dimension_semantics = [#tpu.dimension_semantics<parallel>, #tpu.dimension_semantics<parallel>], iteration_bounds = array<i64: 2, 1>, scalar_prefetch = 0 : i64, scratch_operands = 0 : i64, tpu.core_type = #tpu.core_type<tc>, window_params = [{transform_indices = @transform_0, window_bounds = array<i64: 1, 36, 1024>}, {pipeline_mode = #tpu.pipeline_mode<synchronous>, transform_indices = @transform_1, window_bounds = array<i64: 4, 36>}, {pipeline_mode = #tpu.pipeline_mode<synchronous>, transform_indices = @transform_2, window_bounds = array<i64: 4, 1>}, {transform_indices = @transform_3, window_bounds = array<i64: 1, 4, 1024>}]} {
    %c0 = arith.constant 0 : index
    %c0_0 = arith.constant 0 : index
    %0 = vector.load %arg3[%c0, %c0_0] : memref<4x36xf32, #tpu.memory_space<vmem>>, vector<4x36xf32>
    %c0_1 = arith.constant 0 : index
    %c0_2 = arith.constant 0 : index
    %c0_3 = arith.constant 0 : index
    %1 = vector.load %arg2[%c0_1, %c0_2, %c0_3] : memref<1x36x1024xf32, #tpu.memory_space<vmem>>, vector<1x36x1024xf32>
    %2 = vector.shape_cast %1 : vector<1x36x1024xf32> to vector<36x1024xf32>
    %cst = arith.constant dense<0.000000e+00> : vector<4x1024xf32>
    %3 = tpu.matmul %0, %2, %cst {dimension_numbers = #tpu.dot_dimension_numbers<[1], [0], [0], [1], [0, 0, 1, 1], [], []>} : vector<4x36xf32>, vector<36x1024xf32>, vector<4x1024xf32> -> vector<4x1024xf32>
    %c0_4 = arith.constant 0 : index
    %c0_5 = arith.constant 0 : index
    %4 = vector.load %arg4[%c0_4, %c0_5] : memref<4x1xf32, #tpu.memory_space<vmem>>, vector<4x1xf32>
    %5 = vector.broadcast %4 : vector<4x1xf32> to vector<4x1024xf32>
    %6 = arith.addf %3, %5 : vector<4x1024xf32>
    %cst_6 = arith.constant 0.000000e+00 : f32
    %7 = vector.broadcast %cst_6 : f32 to vector<4x1024xf32>
    %8 = arith.maximumf %6, %7 : vector<4x1024xf32>
    %c0_7 = arith.constant 0 : index
    %c0_8 = arith.constant 0 : index
    %c0_9 = arith.constant 0 : index
    %9 = vector.load %arg5[%c0_7, %c0_8, %c0_9] : memref<1x4x1024xf32, #tpu.memory_space<vmem>>, vector<1x4x1024xf32>
    %10 = vector.shape_cast %9 : vector<1x4x1024xf32> to vector<4x1024xf32>
    %11 = vector.shape_cast %8 : vector<4x1024xf32> to vector<1x4x1024xf32>
    tpu.vector_store %arg5[%c0_7, %c0_8, %c0_9], %11 {strides = array<i32>} : memref<1x4x1024xf32, #tpu.memory_space<vmem>>, vector<1x4x1024xf32>,
    return
  }
  func.func @transform_0(%arg0: i32, %arg1: i32) -> (i32, i32, i32) {
    %c0_i32 = arith.constant 0 : i32
    %c0_i32_0 = arith.constant 0 : i32
    return %arg0, %c0_i32, %arg1 : i32, i32, i32
  }
  func.func @transform_1(%arg0: i32, %arg1: i32) -> (i32, i32) {
    %c0_i32 = arith.constant 0 : i32
    %c0_i32_0 = arith.constant 0 : i32
    %c0_i32_1 = arith.constant 0 : i32
    return %c0_i32, %c0_i32_0 : i32, i32
  }
  func.func @transform_2(%arg0: i32, %arg1: i32) -> (i32, i32) {
    %c0_i32 = arith.constant 0 : i32
    %c0_i32_0 = arith.constant 0 : i32
    %c0_i32_1 = arith.constant 0 : i32
    return %c0_i32, %c0_i32_0 : i32, i32
  }
  func.func @transform_3(%arg0: i32, %arg1: i32) -> (i32, i32, i32) {
    %c0_i32 = arith.constant 0 : i32
    %c0_i32_0 = arith.constant 0 : i32
    return %arg0, %c0_i32, %arg1 : i32, i32, i32
  }
}

module attributes {stable_mosaic.version = 11 : i64} {
  func.func @kernel(%arg0: i32, %arg1: i32, %arg2: memref<1x36x1024xf32, #tpu.memory_space<vmem>>, %arg3: memref<4x36xf32, #tpu.memory_space<vmem>>, %arg4: memref<4x1xf32, #tpu.memory_space<vmem>>, %arg5: memref<1x4x1024xf32, #tpu.memory_space<vmem>>, %arg6: memref<1x4x1024xf32, #tpu.memory_space<vmem>>, %arg7: memref<1x4x1024xf32, #tpu.memory_space<vmem>>) attributes {dimension_semantics = [#tpu.dimension_semantics<parallel>, #tpu.dimension_semantics<parallel>], iteration_bounds = array<i64: 2, 1>, scalar_prefetch = 0 : i64, scratch_operands = 0 : i64, tpu.core_type = #tpu.core_type<tc>, window_params = [{transform_indices = @transform_0, window_bounds = array<i64: 1, 36, 1024>}, {pipeline_mode = #tpu.pipeline_mode<synchronous>, transform_indices = @transform_1, window_bounds = array<i64: 4, 36>}, {pipeline_mode = #tpu.pipeline_mode<synchronous>, transform_indices = @transform_2, window_bounds = array<i64: 4, 1>}, {transform_indices = @transform_3, window_bounds = array<i64: 1, 4, 1024>}, {transform_indices = @transform_4, window_bounds = array<i64: 1, 4, 1024>}, {transform_indices = @transform_5, window_bounds = array<i64: 1, 4, 1024>}]} {
    %c0 = arith.constant 0 : index
    %c0_0 = arith.constant 0 : index
    %0 = vector.load %arg3[%c0, %c0_0] : memref<4x36xf32, #tpu.memory_space<vmem>>, vector<4x36xf32>
    %c0_1 = arith.constant 0 : index
    %c0_2 = arith.constant 0 : index
    %c0_3 = arith.constant 0 : index
    %1 = vector.load %arg2[%c0_1, %c0_2, %c0_3] : memref<1x36x1024xf32, #tpu.memory_space<vmem>>, vector<1x36x1024xf32>
    %2 = vector.shape_cast %1 : vector<1x36x1024xf32> to vector<36x1024xf32>
    %cst = arith.constant dense<0.000000e+00> : vector<4x1024xf32>
    %3 = tpu.matmul %0, %2, %cst {dimension_numbers = #tpu.dot_dimension_numbers<[1], [0], [0], [1], [0, 0, 1, 1], [], []>} : vector<4x36xf32>, vector<36x1024xf32>, vector<4x1024xf32> -> vector<4x1024xf32>
    %c0_4 = arith.constant 0 : index
    %c0_5 = arith.constant 0 : index
    %4 = vector.load %arg4[%c0_4, %c0_5] : memref<4x1xf32, #tpu.memory_space<vmem>>, vector<4x1xf32>
    %5 = vector.broadcast %4 : vector<4x1xf32> to vector<4x1024xf32>
    %6 = arith.addf %3, %5 : vector<4x1024xf32>
    %cst_6 = arith.constant 0.000000e+00 : f32
    %7 = vector.broadcast %cst_6 : f32 to vector<4x1024xf32>
    %8 = arith.maximumf %6, %7 : vector<4x1024xf32>
    %c0_7 = arith.constant 0 : index
    %c0_8 = arith.constant 0 : index
    %c0_9 = arith.constant 0 : index
    %9 = vector.load %arg5[%c0_7, %c0_8, %c0_9] : memref<1x4x1024xf32, #tpu.memory_space<vmem>>, vector<1x4x1024xf32>
    %10 = vector.shape_cast %9 : vector<1x4x1024xf32> to vector<4x1024xf32>
    %11 = arith.mulf %8, %10 : vector<4x1024xf32>
    %c0_10 = arith.constant 0 : index
    %c0_11 = arith.constant 0 : index
    %c0_12 = arith.constant 0 : index
    %12 = vector.load %arg6[%c0_10, %c0_11, %c0_12] : memref<1x4x1024xf32, #tpu.memory_space<vmem>>, vector<1x4x1024xf32>
    %13 = vector.shape_cast %12 : vector<1x4x1024xf32> to vector<4x1024xf32>
    %14 = arith.mulf %11, %13 : vector<4x1024xf32>
    %c0_13 = arith.constant 0 : index
    %c0_14 = arith.constant 0 : index
    %c0_15 = arith.constant 0 : index
    %15 = vector.load %arg7[%c0_13, %c0_14, %c0_15] : memref<1x4x1024xf32, #tpu.memory_space<vmem>>, vector<1x4x1024xf32>
    %16 = vector.shape_cast %15 : vector<1x4x1024xf32> to vector<4x1024xf32>
    %17 = vector.shape_cast %14 : vector<4x1024xf32> to vector<1x4x1024xf32>
    tpu.vector_store %arg7[%c0_13, %c0_14, %c0_15], %17 {strides = array<i32>} : memref<1x4x1024xf32, #tpu.memory_space<vmem>>, vector<1x4x1024xf32>,
    return
  }
  func.func @transform_0(%arg0: i32, %arg1: i32) -> (i32, i32, i32) {
    %c0_i32 = arith.constant 0 : i32
    %c0_i32_0 = arith.constant 0 : i32
    return %arg0, %c0_i32, %arg1 : i32, i32, i32
  }
  func.func @transform_1(%arg0: i32, %arg1: i32) -> (i32, i32) {
    %c0_i32 = arith.constant 0 : i32
    %c0_i32_0 = arith.constant 0 : i32
    %c0_i32_1 = arith.constant 0 : i32
    return %c0_i32, %c0_i32_0 : i32, i32
  }
  func.func @transform_2(%arg0: i32, %arg1: i32) -> (i32, i32) {
    %c0_i32 = arith.constant 0 : i32
    %c0_i32_0 = arith.constant 0 : i32
    %c0_i32_1 = arith.constant 0 : i32
    return %c0_i32, %c0_i32_0 : i32, i32
  }
  func.func @transform_3(%arg0: i32, %arg1: i32) -> (i32, i32, i32) {
    %c0_i32 = arith.constant 0 : i32
    %c0_i32_0 = arith.constant 0 : i32
    return %arg0, %c0_i32, %arg1 : i32, i32, i32
  }
  func.func @transform_4(%arg0: i32, %arg1: i32) -> (i32, i32, i32) {
    %c0_i32 = arith.constant 0 : i32
    %c0_i32_0 = arith.constant 0 : i32
    return %arg0, %c0_i32, %arg1 : i32, i32, i32
  }
  func.func @transform_5(%arg0: i32, %arg1: i32) -> (i32, i32, i32) {
    %c0_i32 = arith.constant 0 : i32
    %c0_i32_0 = arith.constant 0 : i32
    return %arg0, %c0_i32, %arg1 : i32, i32, i32
  }
}

module attributes {stable_mosaic.version = 11 : i64} {
  func.func @kernel(%arg0: i32, %arg1: i32, %arg2: memref<1x36x1024xf32, #tpu.memory_space<vmem>>, %arg3: memref<1x72x1024xf32, #tpu.memory_space<vmem>>, %arg4: memref<12x36xf32, #tpu.memory_space<vmem>>, %arg5: memref<12x72xf32, #tpu.memory_space<vmem>>, %arg6: memref<12x1xf32, #tpu.memory_space<vmem>>, %arg7: memref<1x12x1024xf32, #tpu.memory_space<vmem>>) attributes {dimension_semantics = [#tpu.dimension_semantics<parallel>, #tpu.dimension_semantics<parallel>], iteration_bounds = array<i64: 2, 1>, scalar_prefetch = 0 : i64, scratch_operands = 0 : i64, tpu.core_type = #tpu.core_type<tc>, window_params = [{transform_indices = @transform_0, window_bounds = array<i64: 1, 36, 1024>}, {transform_indices = @transform_1, window_bounds = array<i64: 1, 72, 1024>}, {pipeline_mode = #tpu.pipeline_mode<synchronous>, transform_indices = @transform_2, window_bounds = array<i64: 12, 36>}, {pipeline_mode = #tpu.pipeline_mode<synchronous>, transform_indices = @transform_3, window_bounds = array<i64: 12, 72>}, {pipeline_mode = #tpu.pipeline_mode<synchronous>, transform_indices = @transform_4, window_bounds = array<i64: 12, 1>}, {transform_indices = @transform_5, window_bounds = array<i64: 1, 12, 1024>}]} {
    %c0 = arith.constant 0 : index
    %c0_0 = arith.constant 0 : index
    %0 = vector.load %arg4[%c0, %c0_0] : memref<12x36xf32, #tpu.memory_space<vmem>>, vector<12x36xf32>
    %c0_1 = arith.constant 0 : index
    %c0_2 = arith.constant 0 : index
    %c0_3 = arith.constant 0 : index
    %1 = vector.load %arg2[%c0_1, %c0_2, %c0_3] : memref<1x36x1024xf32, #tpu.memory_space<vmem>>, vector<1x36x1024xf32>
    %2 = vector.shape_cast %1 : vector<1x36x1024xf32> to vector<36x1024xf32>
    %cst = arith.constant dense<0.000000e+00> : vector<12x1024xf32>
    %3 = tpu.matmul %0, %2, %cst {dimension_numbers = #tpu.dot_dimension_numbers<[1], [0], [0], [1], [0, 0, 1, 1], [], []>} : vector<12x36xf32>, vector<36x1024xf32>, vector<12x1024xf32> -> vector<12x1024xf32>
    %c0_4 = arith.constant 0 : index
    %c0_5 = arith.constant 0 : index
    %4 = vector.load %arg5[%c0_4, %c0_5] : memref<12x72xf32, #tpu.memory_space<vmem>>, vector<12x72xf32>
    %c0_6 = arith.constant 0 : index
    %c0_7 = arith.constant 0 : index
    %c0_8 = arith.constant 0 : index
    %5 = vector.load %arg3[%c0_6, %c0_7, %c0_8] : memref<1x72x1024xf32, #tpu.memory_space<vmem>>, vector<1x72x1024xf32>
    %6 = vector.shape_cast %5 : vector<1x72x1024xf32> to vector<72x1024xf32>
    %cst_9 = arith.constant dense<0.000000e+00> : vector<12x1024xf32>
    %7 = tpu.matmul %4, %6, %cst_9 {dimension_numbers = #tpu.dot_dimension_numbers<[1], [0], [0], [1], [0, 0, 1, 1], [], []>} : vector<12x72xf32>, vector<72x1024xf32>, vector<12x1024xf32> -> vector<12x1024xf32>
    %8 = arith.addf %3, %7 : vector<12x1024xf32>
    %c0_10 = arith.constant 0 : index
    %c0_11 = arith.constant 0 : index
    %9 = vector.load %arg6[%c0_10, %c0_11] : memref<12x1xf32, #tpu.memory_space<vmem>>, vector<12x1xf32>
    %10 = vector.broadcast %9 : vector<12x1xf32> to vector<12x1024xf32>
    %11 = arith.addf %8, %10 : vector<12x1024xf32>
    %cst_12 = arith.constant 0.000000e+00 : f32
    %12 = vector.broadcast %cst_12 : f32 to vector<12x1024xf32>
    %13 = arith.maximumf %11, %12 : vector<12x1024xf32>
    %c0_13 = arith.constant 0 : index
    %c0_14 = arith.constant 0 : index
    %c0_15 = arith.constant 0 : index
    %14 = vector.load %arg7[%c0_13, %c0_14, %c0_15] : memref<1x12x1024xf32, #tpu.memory_space<vmem>>, vector<1x12x1024xf32>
    %15 = vector.shape_cast %14 : vector<1x12x1024xf32> to vector<12x1024xf32>
    %16 = vector.shape_cast %13 : vector<12x1024xf32> to vector<1x12x1024xf32>
    tpu.vector_store %arg7[%c0_13, %c0_14, %c0_15], %16 {strides = array<i32>} : memref<1x12x1024xf32, #tpu.memory_space<vmem>>, vector<1x12x1024xf32>,
    return
  }
  func.func @transform_0(%arg0: i32, %arg1: i32) -> (i32, i32, i32) {
    %c0_i32 = arith.constant 0 : i32
    %c0_i32_0 = arith.constant 0 : i32
    return %arg0, %c0_i32, %arg1 : i32, i32, i32
  }
  func.func @transform_1(%arg0: i32, %arg1: i32) -> (i32, i32, i32) {
    %c0_i32 = arith.constant 0 : i32
    %c0_i32_0 = arith.constant 0 : i32
    return %arg0, %c0_i32, %arg1 : i32, i32, i32
  }
  func.func @transform_2(%arg0: i32, %arg1: i32) -> (i32, i32) {
    %c0_i32 = arith.constant 0 : i32
    %c0_i32_0 = arith.constant 0 : i32
    %c0_i32_1 = arith.constant 0 : i32
    return %c0_i32, %c0_i32_0 : i32, i32
  }
  func.func @transform_3(%arg0: i32, %arg1: i32) -> (i32, i32) {
    %c0_i32 = arith.constant 0 : i32
    %c0_i32_0 = arith.constant 0 : i32
    %c0_i32_1 = arith.constant 0 : i32
    return %c0_i32, %c0_i32_0 : i32, i32
  }
  func.func @transform_4(%arg0: i32, %arg1: i32) -> (i32, i32) {
    %c0_i32 = arith.constant 0 : i32
    %c0_i32_0 = arith.constant 0 : i32
    %c0_i32_1 = arith.constant 0 : i32
    return %c0_i32, %c0_i32_0 : i32, i32
  }
  func.func @transform_5(%arg0: i32, %arg1: i32) -> (i32, i32, i32) {
    %c0_i32 = arith.constant 0 : i32
    %c0_i32_0 = arith.constant 0 : i32
    return %arg0, %c0_i32, %arg1 : i32, i32, i32
  }
}

module attributes {stable_mosaic.version = 11 : i64} {
  func.func @_conv_bn_relu_1x1_kernel(%arg0: i32, %arg1: i32, %arg2: memref<1x108x1024xf32, #tpu.memory_space<vmem>>, %arg3: memref<12x108xf32, #tpu.memory_space<vmem>>, %arg4: memref<12x1xf32, #tpu.memory_space<vmem>>, %arg5: memref<2x12xf32, #tpu.memory_space<vmem>>, %arg6: memref<2x1xf32, #tpu.memory_space<vmem>>, %arg7: memref<1x2x1024xf32, #tpu.memory_space<vmem>>) attributes {dimension_semantics = [#tpu.dimension_semantics<parallel>, #tpu.dimension_semantics<parallel>], iteration_bounds = array<i64: 2, 1>, scalar_prefetch = 0 : i64, scratch_operands = 0 : i64, tpu.core_type = #tpu.core_type<tc>, window_params = [{transform_indices = @transform_0, window_bounds = array<i64: 1, 108, 1024>}, {pipeline_mode = #tpu.pipeline_mode<synchronous>, transform_indices = @transform_1, window_bounds = array<i64: 12, 108>}, {pipeline_mode = #tpu.pipeline_mode<synchronous>, transform_indices = @transform_2, window_bounds = array<i64: 12, 1>}, {pipeline_mode = #tpu.pipeline_mode<synchronous>, transform_indices = @transform_3, window_bounds = array<i64: 2, 12>}, {pipeline_mode = #tpu.pipeline_mode<synchronous>, transform_indices = @transform_4, window_bounds = array<i64: 2, 1>}, {transform_indices = @transform_5, window_bounds = array<i64: 1, 2, 1024>}]} {
    %c0 = arith.constant 0 : index
    %c0_0 = arith.constant 0 : index
    %0 = vector.load %arg3[%c0, %c0_0] : memref<12x108xf32, #tpu.memory_space<vmem>>, vector<12x108xf32>
    %c0_1 = arith.constant 0 : index
    %c0_2 = arith.constant 0 : index
    %c0_3 = arith.constant 0 : index
    %1 = vector.load %arg2[%c0_1, %c0_2, %c0_3] : memref<1x108x1024xf32, #tpu.memory_space<vmem>>, vector<1x108x1024xf32>
    %2 = vector.shape_cast %1 : vector<1x108x1024xf32> to vector<108x1024xf32>
    %cst = arith.constant dense<0.000000e+00> : vector<12x1024xf32>
    %3 = tpu.matmul %0, %2, %cst {dimension_numbers = #tpu.dot_dimension_numbers<[1], [0], [0], [1], [0, 0, 1, 1], [], []>} : vector<12x108xf32>, vector<108x1024xf32>, vector<12x1024xf32> -> vector<12x1024xf32>
    %c0_4 = arith.constant 0 : index
    %c0_5 = arith.constant 0 : index
    %4 = vector.load %arg4[%c0_4, %c0_5] : memref<12x1xf32, #tpu.memory_space<vmem>>, vector<12x1xf32>
    %5 = vector.broadcast %4 : vector<12x1xf32> to vector<12x1024xf32>
    %6 = arith.addf %3, %5 : vector<12x1024xf32>
    %cst_6 = arith.constant 0.000000e+00 : f32
    %7 = vector.broadcast %cst_6 : f32 to vector<12x1024xf32>
    %8 = arith.maximumf %6, %7 : vector<12x1024xf32>
    %c0_7 = arith.constant 0 : index
    %c0_8 = arith.constant 0 : index
    %9 = vector.load %arg5[%c0_7, %c0_8] : memref<2x12xf32, #tpu.memory_space<vmem>>, vector<2x12xf32>
    %cst_9 = arith.constant dense<0.000000e+00> : vector<2x1024xf32>
    %10 = tpu.matmul %9, %8, %cst_9 {dimension_numbers = #tpu.dot_dimension_numbers<[1], [0], [0], [1], [0, 0, 1, 1], [], []>} : vector<2x12xf32>, vector<12x1024xf32>, vector<2x1024xf32> -> vector<2x1024xf32>
    %c0_10 = arith.constant 0 : index
    %c0_11 = arith.constant 0 : index
    %11 = vector.load %arg6[%c0_10, %c0_11] : memref<2x1xf32, #tpu.memory_space<vmem>>, vector<2x1xf32>
    %12 = vector.broadcast %11 : vector<2x1xf32> to vector<2x1024xf32>
    %13 = arith.addf %10, %12 : vector<2x1024xf32>
    %c0_12 = arith.constant 0 : index
    %c0_13 = arith.constant 0 : index
    %c0_14 = arith.constant 0 : index
    %14 = vector.load %arg7[%c0_12, %c0_13, %c0_14] : memref<1x2x1024xf32, #tpu.memory_space<vmem>>, vector<1x2x1024xf32>
    %15 = vector.shape_cast %14 : vector<1x2x1024xf32> to vector<2x1024xf32>
    %16 = vector.shape_cast %13 : vector<2x1024xf32> to vector<1x2x1024xf32>
    tpu.vector_store %arg7[%c0_12, %c0_13, %c0_14], %16 {strides = array<i32>} : memref<1x2x1024xf32, #tpu.memory_space<vmem>>, vector<1x2x1024xf32>,
    return
  }
  func.func @transform_0(%arg0: i32, %arg1: i32) -> (i32, i32, i32) {
    %c0_i32 = arith.constant 0 : i32
    %c0_i32_0 = arith.constant 0 : i32
    return %arg0, %c0_i32, %arg1 : i32, i32, i32
  }
  func.func @transform_1(%arg0: i32, %arg1: i32) -> (i32, i32) {
    %c0_i32 = arith.constant 0 : i32
    %c0_i32_0 = arith.constant 0 : i32
    %c0_i32_1 = arith.constant 0 : i32
    return %c0_i32, %c0_i32_0 : i32, i32
  }
  func.func @transform_2(%arg0: i32, %arg1: i32) -> (i32, i32) {
    %c0_i32 = arith.constant 0 : i32
    %c0_i32_0 = arith.constant 0 : i32
    %c0_i32_1 = arith.constant 0 : i32
    return %c0_i32, %c0_i32_0 : i32, i32
  }
  func.func @transform_3(%arg0: i32, %arg1: i32) -> (i32, i32) {
    %c0_i32 = arith.constant 0 : i32
    %c0_i32_0 = arith.constant 0 : i32
    %c0_i32_1 = arith.constant 0 : i32
    return %c0_i32, %c0_i32_0 : i32, i32
  }
  func.func @transform_4(%arg0: i32, %arg1: i32) -> (i32, i32) {
    %c0_i32 = arith.constant 0 : i32
    %c0_i32_0 = arith.constant 0 : i32
    %c0_i32_1 = arith.constant 0 : i32
    return %c0_i32, %c0_i32_0 : i32, i32
  }
  func.func @transform_5(%arg0: i32, %arg1: i32) -> (i32, i32, i32) {
    %c0_i32 = arith.constant 0 : i32
    %c0_i32_0 = arith.constant 0 : i32
    return %arg0, %c0_i32, %arg1 : i32, i32, i32
  }
}

</mosaic_0001>

<bundles_post_ra>
// kernel: aggregation_init_forward.16
= control target key start
LH: loop header
LB: loop body
LE: loop exit
PB: predicated region body
PF: predicated region fallthrough
CT: control target
= control target key end

     0   :  { %s499_s12 = smov 0   ;;  %s501_s13 = smov 0   ;;  %s542_s0 = inlined_call_operand.vmem [shape: f32[2,36,256], index: 0, kind: input, shape index: {}]   ;;  %s543_s1 = inlined_call_operand.vmem [shape: f32[4,36], index: 1, kind: input, shape index: {}]   ;;  %s544_s2 = inlined_call_operand.vmem [shape: f32[4,1], index: 2, kind: input, shape index: {}]   ;;  %s545_s3 = inlined_call_operand.vmem [shape: f32[2,4,256], index: 3, kind: output, shape index: {}]  }
   0x1   :  { %s503_s14 = smov 0  }
   0x2 LB: > { %s25_s15 = sadd.s32 1, %s471_s13  ;;  %p407_p0 = scmp.ge.s32.totalorder %s475_s14, 1  ;;  %s475_s14 = sphi %s503_s14, %s13_s14   ;;  %s471_s13 = sphi %s501_s13, %s547_s13   ;;  %s467_s12 = sphi %s499_s12, %s546_s12  }
   0x3   : > { %p27_p1 = scmp.ge.s32.totalorder %s25_s15, 2  ;;  %p158_p2 = scmp.lt.s32.totalorder %s475_s14, 3 }
   0x5   : > { %s549_s15 = smov (%p27_p1, %s25_s15), 0  ;;  %p159_p3 = pnand %p407_p0, %p158_p2 }
   0x6   : > { %p191_p4 = scmp.lt.s32.totalorder (!%p159_p3), %s467_s12, 1  ;;  %v477_v0 = vmov (!%p159_p3), 0.0   ;;  %v221_v1 = vld [vmem:[%s544_s2] sm:$0xf] (!%p159_p3)  ;;  %v478_v2 = vmov (!%p159_p3), 0   ;;  %vm231_vm0 = vcmask (!%p159_p3), 1043456  }
   0x7   : > { %162 = sbr.rel (%p159_p3) target bundleno = 251 (0xfb), region = 32  ;;  %302 = vmatprep.mubr.f32.mxu0 (!%p159_p3), %v477_v0  ;;  %452 = vset.pattern.permute.xlu0 (!%p159_p3), %v478_v2  ;;  %v210_v17 = vld [vmem:[%s543_s1] sm:$0xf] (!%p159_p3)  ;;  %vm227_vm1 = vcmask (!%p159_p3), 293888  }
   0x8   : > { %224 = vperm.xlu0 (!%p159_p3), %452, %v221_v1  }
   0xe   : > { %s551_s12 = smov (!%p191_p4, %s467_s12), 1 }
   0xf   : > { %s425_s18 = smul.u32 80, %s551_s12  ;;  %s416_s24 = sshll.u32 %s551_s12, 3 }
  0x10   : > { %s208_s27 = scalar_lea.vmem %s545_s3, %s416_s24 }
  0x11   : > { %s198_s21 = scalar_lea.vmem %s542_s0, %s425_s18 }
  0x12   : > { %v212_v3 = vld [vmem:[%s198_s21 + $0x8] sm:$0xff]  ;;  %v214_v4 = vld [vmem:[%s198_s21 + $0x18] sm:$0xff]  ;;  %v211_v5 = vld [vmem:[%s198_s21] sm:$0xff] }
  0x13   : > { %v417_v6 = vpack.c.bf16 %v214_v4, %v212_v3  ;;  %v213_v7 = vld [vmem:[%s198_s21 + $0x10] sm:$0xff]  ;;  %v216_v8 = vld [vmem:[%s198_s21 + $0x28] sm:$0xff]  ;;  %v218_v9 = vld [vmem:[%s198_s21 + $0x38] sm:$0xff] }
  0x14   : > { %v419_v10 = vpack.c.bf16 %v213_v7, %v211_v5  ;;  %v421_v11 = vpack.c.bf16 %v218_v9, %v216_v8  ;;  %v215_v12 = vld [vmem:[%s198_s21 + $0x20] sm:$0xff]  ;;  %v217_v13 = vld [vmem:[%s198_s21 + $0x30] sm:$0xff]  ;;  %v220_v15 = vld [vmem:[%s198_s21 + $0x48] sm:$0xf] }
  0x15   : > { %418 = vmatprep.subr.bf16.mxu0 %v417_v6  ;;  %v423_v14 = vpack.c.bf16 %v217_v13, %v215_v12  ;;  %v219_v16 = vld [vmem:[%s198_s21 + $0x40] sm:$0xf] }
  0x16   : > { %420 = vmatpush1.bf16.msra.mxu0 %v419_v10 }
  0x17   : > { %422 = vmatprep.subr.bf16.mxu0 %v421_v11 }
  0x1a   : > { %424 = vmatpush1.bf16.msra.mxu0 %v423_v14 }
  0x1b   : > { %411 = vmatprep.subr.msk.mxu0 %vm231_vm0, %v220_v15 }
  0x1e   : > { %412 = vmatpush1.msk.msra.mxu0 %vm231_vm0, %v219_v16 }
  0x1f   : > { %413 = vmatmul.mubr.msk.f32.vlgmr.msra.gmra.mrb[0].mxu0 %vm227_vm1, %v210_v17 }
  0x87   : > { %v225_v18 = vpop.permute.xlu0 %224 }
  0xf2   : > { %v304_v19 = vpop.f32.mrb[0].mxu0 }
  0xf3   : > { %v305_v20 = vadd.f32 %v304_v19, %v225_v18  ;;  %v306_v21 = vpop.f32.mrb[1].mxu0 }
  0xf4   : > { %v307_v22 = vadd.f32 %v306_v21, %v225_v18 }
  0xf5   : > { %v309_v23 = vmax.f32 %v305_v20, 0.0 }
  0xf6   : > { %v310_v24 = vmax.f32 %v307_v22, 0.0 }
  0xf8   : > { %v313_v25 = vcombine.low %v309_v23, %v310_v24 }
  0xfa   : > { %315 = vst [vmem:[%s208_s27] sm:$0xff] %v313_v25 }
  0xfb PF: > { %s13_s14 = sadd.s32 1, %s475_s14   ;;  %s546_s12 = smov %s471_s13 }
  0xfc   : > { %p10_p5 = scmp.ge.s32.totalorder %s13_s14, 4   ;;  %s547_s13 = smov %s549_s15 }
  0xfe   :  { %12 = sbr.rel (!%p10_p5) target bundleno = 2 (0x2), region = 62 }

// kernel: aggregation_init_forward.11
= control target key start
LH: loop header
LB: loop body
LE: loop exit
PB: predicated region body
PF: predicated region fallthrough
CT: control target
= control target key end

     0   :  { %12 = vsyncpa [#allocation3], 0  ;;  %s3013_s0 = inlined_call_operand.hbm [shape: f32[2,4,8,8], index: 0, kind: input, shape index: {}]   ;;  %s3014_s1 = inlined_call_operand.hbm [shape: f32[16,8], index: 1, kind: input, shape index: {}]   ;;  %s3015_s2 = inlined_call_operand.hbm [shape: f32[8,16], index: 2, kind: input, shape index: {}]   ;;  %s3016_s3 = inlined_call_operand.hbm [shape: f32[32,16], index: 3, kind: input, shape index: {}]   ;;  %s3017_s4 = inlined_call_operand.hbm [shape: f32[16,32], index: 4, kind: input, shape index: {}]   ;;  %s3018_s5 = inlined_call_operand.vmem [shape: f32[2,4,16,16], index: 5, kind: output, shape index: {0}]   ;;  %s3019_s6 = inlined_call_operand.vmem [shape: f32[2,4,32,32], index: 6, kind: output, shape index: {1}]  }
   0x1   :  { %14 = vsyncpa [#allocation3 + $0x1], 0 }
   0x2   :  { %15 = vsyncpa [#allocation5], 0 }
   0x3   :  { %16 = vsyncpa [#allocation8], 0  ;;  %s2607_s21 = smov 0   ;;  %s2609_s22 = smov 0  }
   0x4   :  { %s2611_s23 = smov 0   ;;  %s2613_s24 = smov 0  }
   0x5 LB: > { %s2626_s25 = sadd.s32 4294967295, %s2563_s24   ;;  %p42_p0 = scmp.ne.s32.totalorder %s2555_s22, %s2551_s21  ;;  %s2563_s24 = sphi %s2613_s24, %s3037_s24   ;;  %s2559_s23 = sphi %s2611_s23, %s3036_s23   ;;  %s2555_s22 = sphi %s2609_s22, %s3035_s22   ;;  %s2551_s21 = sphi %s2607_s21, %s3034_s21  }
   0x6   : > { %p3020_p1 = scmp.eq.s32.totalorder %s2626_s25, 0  ;;  %p1980_p2 = scmp.ge.s32.totalorder %s2563_s24, 1 }
   0x7   : > { %p189_p3 = scmp.lt.s32.totalorder %s2563_s24, 3  ;;  %s2565_s28 = smov [#allocation4]  }
   0x8   : > { %p2634_p4 = por %p3020_p1, %p42_p0  ;;  %s201_s29 = sshll.u32 %s2565_s28, 4  ;;  %s2642_s29 = int_to_ptr.vmem [resolvable:$true] %s201_s29 }
   0x9   : > { %p2638_p5 = pnand %p1980_p2, %p189_p3  ;;  %s2566_s7 = smov [#allocation7]  }
   0xa   : > { %s3023_s26 = scalar_select %p2634_p4, 1, 0 }
   0xb   : > { %s3024_s27 = scalar_select %p2638_p5, 1, 0 }
   0xc   : > { %p2315_p6 = pneg %p2638_p5  ;;  %s225_s8 = sshll.u32 %s2566_s7, 4  ;;  %s2652_s8 = int_to_ptr.vmem [resolvable:$true] %s225_s8 }
   0xd   : > { %s2567_s9 = smov [#allocation6]   ;;  %s2379_s13 = scalar_lea.hbm %s3014_s1, 256 }
   0xe   : > { %p2648_p7 = pnand %p2315_p6, %p3020_p1  ;;  %s2654_s10 = sshll.u32 %s2567_s9, 4  ;;  %s216_s10 = int_to_ptr.vmem [resolvable:$true] %s2654_s10 }
   0xf   : > { %p2380_p8 = scmp.ne.s32.totalorder %s3014_s1, %s2379_s13  ;;  %p2386_p12 = scmp.lt.u32.totalorder %s2379_s13, %s3014_s1 }
  0x10   : > { %p2664_p9 = pneg %p2648_p7 }
  0x12   : > { %p2382_p10 = pnand %p2664_p9, %p2380_p8 }
  0x14   : > { %p2383_p11 = pneg %p2382_p10 }
  0x16   : > { %p2388_p13 = pnand %p2386_p12, %p2383_p11 }
  0x18   : > { %2391 = shalt.err (!%p2388_p13)
}
  0x19   : > { %s2392_s19 = scalar_lea.vmem %s2642_s29, 256  ;;  %p2400_p6 = scmp.lt.s32.totalorder %s2642_s29, %s2642_s29 }
  0x1a   : > { %p2393_p0 = scmp.ne.s32.totalorder %s2642_s29, %s2392_s19  ;;  %p2401_p1 = scmp.lt.s32.totalorder %s2392_s19, %s2392_s19 }
  0x1c   : > { %p2395_p2 = pnand %p2393_p0, %p2664_p9  ;;  %p2402_p8 = por %p2401_p1, %p2400_p6 }
  0x1e   : > { %p2396_p3 = pneg %p2395_p2 }
  0x20   : > { %p2403_p10 = pnand %p2402_p8, %p2396_p3 }
  0x22   : > { %2406 = shalt.err (!%p2403_p10)
}
  0x23   : > { %s2568_s20 = smov 128   ;;  %s2569_s21 = smov 8  }
  0x24   : > { %2318 = dma.hbm_to_vmem [thread:$0]  (!%p2648_p7), %s3014_s1, 256, %s2642_s29, [#allocation5], %s2568_s20, %s2568_s20, %s2569_s21  }
  0x25   : > { %s2407_s12 = scalar_lea.hbm %s3016_s3, 512 }
  0x26   : > { %p2408_p1 = scmp.ne.s32.totalorder %s3016_s3, %s2407_s12  ;;  %p2414_p13 = scmp.lt.u32.totalorder %s2407_s12, %s3016_s3 }
  0x28   : > { %p2410_p11 = pnand %p2408_p1, %p2664_p9 }
  0x2a   : > { %p2411_p12 = pneg %p2410_p11 }
  0x2c   : > { %p2416_p0 = pnand %p2414_p13, %p2411_p12 }
  0x2e   : > { %2419 = shalt.err (!%p2416_p0)
}
  0x2f   : > { %s2420_s29 = scalar_lea.vmem %s2652_s8, 512  ;;  %p2428_p8 = scmp.lt.s32.totalorder %s2652_s8, %s2652_s8 }
  0x30   : > { %p2421_p2 = scmp.ne.s32.totalorder %s2652_s8, %s2420_s29  ;;  %p2429_p10 = scmp.lt.s32.totalorder %s2420_s29, %s2420_s29 }
  0x32   : > { %p2423_p3 = pnand %p2421_p2, %p2664_p9  ;;  %p2430_p1 = por %p2429_p10, %p2428_p8 }
  0x34   : > { %p2424_p6 = pneg %p2423_p3 }
  0x36   : > { %p2431_p11 = pnand %p2430_p1, %p2424_p6 }
  0x38   : > { %2434 = shalt.err (!%p2431_p11)
}
  0x39   : > { %2324 = dma.hbm_to_vmem [thread:$0]  (!%p2648_p7), %s3016_s3, 512, %s2652_s8, [#allocation8], %s2568_s20, %s2568_s20, %s2569_s21  }
  0x3a   : > { %s2435_s9 = scalar_lea.hbm %s3015_s2, 128 }
  0x3b   : > { %p2436_p12 = scmp.ne.s32.totalorder %s3015_s2, %s2435_s9  ;;  %p2442_p2 = scmp.lt.u32.totalorder %s2435_s9, %s3015_s2 }
  0x3d   : > { %p2438_p13 = pnand %p2436_p12, %p2664_p9 }
  0x3f   : > { %p2439_p0 = pneg %p2438_p13 }
  0x41   : > { %p2444_p3 = pnand %p2442_p2, %p2439_p0 }
  0x43   : > { %2447 = shalt.err (!%p2444_p3)
}
  0x44   : > { %s2448_s15 = scalar_lea.vmem %s216_s10, 128  ;;  %p2456_p1 = scmp.lt.s32.totalorder %s216_s10, %s216_s10 }
  0x45   : > { %p2449_p6 = scmp.ne.s32.totalorder %s216_s10, %s2448_s15  ;;  %p2457_p11 = scmp.lt.s32.totalorder %s2448_s15, %s2448_s15 }
  0x47   : > { %p2451_p8 = pnand %p2449_p6, %p2664_p9  ;;  %p2458_p4 = por %p2457_p11, %p2456_p1 }
  0x49   : > { %p2452_p10 = pneg %p2451_p8 }
  0x4b   : > { %p2459_p5 = pnand %p2458_p4, %p2452_p10 }
  0x4d   : > { %2462 = shalt.err (!%p2459_p5)
}
  0x4e   : > { %2321 = dma.hbm_to_vmem [thread:$0]  (!%p2648_p7), %s3015_s2, 128, %s216_s10, [#allocation5]  }
  0x4f   : > { %s2570_s29 = smov [#allocation9]   ;;  %s2463_s7 = scalar_lea.hbm %s3017_s4, 256 }
  0x50   : > { %s238_s18 = sshll.u32 %s2570_s29, 4  ;;  %p2464_p12 = scmp.ne.s32.totalorder %s3017_s4, %s2463_s7  ;;  %s239_s18 = int_to_ptr.vmem [resolvable:$true] %s238_s18 }
  0x51   : > { %p2470_p13 = scmp.lt.u32.totalorder %s2463_s7, %s3017_s4 }
  0x52   : > { %p2466_p4 = pnand %p2464_p12, %p2664_p9 }
  0x54   : > { %p2467_p5 = pneg %p2466_p4 }
  0x56   : > { %p2472_p0 = pnand %p2470_p13, %p2467_p5 }
  0x58   : > { %2475 = shalt.err (!%p2472_p0)
}
  0x59   : > { %s2476_s10 = scalar_lea.vmem %s239_s18, 256  ;;  %p2484_p8 = scmp.lt.s32.totalorder %s239_s18, %s239_s18 }
  0x5a   : > { %p2477_p2 = scmp.ne.s32.totalorder %s239_s18, %s2476_s10  ;;  %p2485_p10 = scmp.lt.s32.totalorder %s2476_s10, %s2476_s10 }
  0x5c   : > { %p2479_p3 = pnand %p2477_p2, %p2664_p9  ;;  %p2486_p1 = por %p2485_p10, %p2484_p8 }
  0x5e   : > { %p2480_p6 = pneg %p2479_p3 }
  0x60   : > { %p2487_p11 = pnand %p2486_p1, %p2480_p6 }
  0x62   : > { %2490 = shalt.err (!%p2487_p11)
}
  0x63   : > { %2327 = dma.hbm_to_vmem [thread:$0]  (!%p2648_p7), %s3017_s4, 256, %s239_s18, [#allocation8], %s2568_s20, %s2568_s20, %s2569_s21  }
  0x64   : > { %s2755_s16 = sadd.s32 1, %s2563_s24   ;;  %s29_s30 = sadd.s32 1, %s2559_s23 }
  0x65   : > { %s26_s8 = ssub.s32 %s2563_s24, %s2755_s16  ;;  %p36_p9 = scmp.ne.s32.totalorder %s2559_s23, %s2555_s22 }
  0x66   : > { %p27_p12 = scmp.eq.s32.totalorder %s26_s8, 0  ;;  %p37_p4 = scmp.eq.s32.totalorder %s2563_s24, 0 }
  0x67   : > { %p2336_p5 = scmp.lt.s32.totalorder %s2563_s24, 2  ;;  %s252_s17 = sand.u32 1, %s2559_s23  }
  0x68   : > { %s2766_s29 = scalar_select %p27_p12, %s2559_s23, %s29_s30  }
  0x69   : > { %p38_p13 = por %p37_p4, %p36_p9  ;;  %s1986_s19 = sshll.u32 %s252_s17, 5 }
  0x6a   : > { %s2070_s28 = sshll.u32 %s2563_s24, 9  ;;  %s256_s18 = scalar_lea.vmem [#allocation2], %s1986_s19 }
  0x6b   : > { %s2772_s11 = scalar_lea.hbm %s3013_s0, %s2070_s28  ;;  %s263_s12 = sshll.u32 %s256_s18, 4  ;;  %s2778_s12 = int_to_ptr.vmem [resolvable:$true] %s263_s12 }
  0x6c   : > { %p2774_p7 = pnand %p2336_p5, %p38_p13  ;;  %s2780_s24 = scalar_lea.sflag [#allocation3], %s252_s17 }
  0x6d   : > { %s2491_s10 = scalar_lea.hbm %s2772_s11, 512  ;;  %s2496_s30 = scalar_lea.hbm %s3013_s0, 1024 }
  0x6e   : > { %p2492_p0 = scmp.ne.s32.totalorder %s2772_s11, %s2491_s10  ;;  %p2493_p2 = pneg %p2774_p7 }
  0x6f   : > { %p2497_p8 = scmp.lt.u32.totalorder %s2772_s11, %s3013_s0  ;;  %p2498_p10 = scmp.lt.u32.totalorder %s2496_s30, %s2491_s10 }
  0x70   : > { %p2494_p3 = pnand %p2493_p2, %p2492_p0  ;;  %p2500_p11 = scmp.lt.u32.totalorder %s2491_s10, %s2772_s11 }
  0x71   : > { %p2499_p1 = por %p2498_p10, %p2497_p8 }
  0x72   : > { %p2495_p6 = pneg %p2494_p3 }
  0x73   : > { %p2501_p9 = por %p2500_p11, %p2499_p1 }
  0x75   : > { %p2502_p12 = pnand %p2501_p9, %p2495_p6 }
  0x77   : > { %2505 = shalt.err (!%p2502_p12)
}
  0x78   : > { %s2506_s17 = scalar_lea.vmem %s2778_s12, 512  ;;  %s2571_s28 = smov [#allocation2]  }
  0x79   : > { %p2507_p4 = scmp.ne.s32.totalorder %s2778_s12, %s2506_s17  ;;  %s2511_s7 = sshll.u32 %s2571_s28, 4  ;;  %s2512_s7 = int_to_ptr.vmem [resolvable:$false] %s2511_s7 }
  0x7a   : > { %s2513_s9 = scalar_lea.vmem %s2512_s7, 1024  ;;  %p2514_p0 = scmp.lt.s32.totalorder %s2778_s12, %s2512_s7 }
  0x7b   : > { %p2509_p5 = pnand %p2507_p4, %p2493_p2  ;;  %p2515_p3 = scmp.lt.s32.totalorder %s2513_s9, %s2506_s17 }
  0x7d   : > { %p2510_p13 = pneg %p2509_p5  ;;  %p2516_p8 = por %p2515_p3, %p2514_p0 }
  0x7f   : > { %p2517_p10 = pnand %p2516_p8, %p2510_p13 }
  0x81   : > { %2520 = shalt.err (!%p2517_p10)
}
  0x82   : > { %2331 = dma.hbm_to_vmem [thread:$0]  (!%p2774_p7), %s2772_s11, 512, %s2778_s12, %s2780_s24, %s2568_s20, %s2568_s20, %s2569_s21  }
  0x83   : > { %p3028_p2 = scmp.ne.s32.totalorder %s3024_s27, 0 }
  0x84   : > { %s277_s18 = sand.u32 (!%p3028_p2), 1, %s2555_s22   ;;  %p3029_p6 = scmp.ne.s32.totalorder (!%p3028_p2), %s3023_s26, 0 }
  0x85   : > { %275 = sbr.rel (%p3028_p2) target bundleno = 2338 (0x922), region = 40  ;;  %s1990_s10 = sshll.u32 (!%p3028_p2), %s277_s18, 5 }
  0x86   : > { %s278_s14 = scalar_lea.sflag (!%p3028_p2), [#allocation3], %s277_s18  ;;  %s2814_s15 = scalar_lea.vmem (!%p3028_p2), [#allocation2], %s1990_s10 }
  0x8c   : > { %2538 = dma.done.wait (%p3029_p6), %s278_s14, 512  }
  0x8d   : > { %2540 = vsyncadd (%p3029_p6), %s278_s14, 4294966784  ;;  %p3030_p1 = scmp.eq.s32.totalorder %s2626_s25, 0 }
  0x8f   : > { %2542 = dma.done.wait (%p3030_p1), [#allocation5], 384   ;;  %p3031_p7 = pmov %p3030_p1 }
  0x90   : > { %p3032_p11 = pmov %p3030_p1 }
  0x91   : > { %2544 = vsyncadd (%p3031_p7), [#allocation5], 4294966912 }
  0x92   : > { %2546 = dma.done.wait (%p3032_p11), [#allocation8], 768   ;;  %p3033_p9 = pmov %p3030_p1 }
  0x93   : > { %vm344_vm0 = vcmask 64512   ;;  %v343_v0 = vld [vmem:[%s2814_s15] sm:$0xff]  ;;  %v2831_v2 = vld [vmem:[#allocation4 + $0x8] sm:$0xff]  ;;  %v2837_v3 = vld [vmem:[#allocation6] sm:$0xff]  ;;  %vm508_vm1 = vcmask 130048   ;;  %p331_p12 = scmp.lt.s32.totalorder %s2626_s25, 1 }
  0x94   : > { %2548 = vsyncadd (%p3033_p9), [#allocation8], 4294966528  ;;  %v2829_v1 = vld [vmem:[#allocation4] sm:$0xff]  ;;  %2145 = vmatprep.subr.mxu0 %v343_v0  ;;  %2150 = vmatprep.subr.mxu1 %v2837_v3  ;;  %v2843_v6 = vld [vmem:[#allocation7] sm:$0xff]  ;;  %vm711_vm2 = vcmask 261120  }
  0x95   : > { %2147 = vmatprep.mubr.msk.f32.mxu0 %vm344_vm0, %v2829_v1  ;;  %2146 = vmatpush3.msra.mxu0 %v343_v0  ;;  %v612_v7 = vld [vmem:[#allocation9] sm:$0xff]  ;;  %v613_v8 = vld [vmem:[#allocation9 + $0x8] sm:$0xff]  ;;  %s3039_s25 = smov (!%p331_p12, %s2626_s25), 1  ;;  %v2011_v13 = vld [vmem:[%s2814_s15 + $0x8] sm:$0xff] }
  0x96   : > { %2148 = vmatmul.mubr.msk.f32.vlgmr.msra.gmra.mrb[0].mxu0 %vm344_vm0, %v2831_v2  ;;  %2151 = vmatpush3.msra.mxu1 %v2837_v3  ;;  %v2847_v9 = vpack.c.bf16 %v613_v8, %v612_v7  ;;  %s2071_s26 = sshll.u32 %s3039_s25, 6  ;;  %v2867_v14 = vld [vmem:[#allocation7 + $0x8] sm:$0xff]  ;;  %v2869_v15 = vld [vmem:[#allocation7 + $0x10] sm:$0xff]  ;;  %v2875_v16 = vld [vmem:[#allocation7 + $0x18] sm:$0xff]  ;;  %s2072_s11 = sshll.u32 %s3039_s25, 7 }
  0x97   : > { %2159 = vmatprep.mubr.msk.f32.mxu0 %vm508_vm1, %v2843_v6  ;;  %s2860_s21 = scalar_lea.vmem %s3018_s5, %s2071_s26  ;;  %s2899_s24 = scalar_lea.vmem %s3019_s6, %s2072_s11  ;;  %v2030_v30 = vld [vmem:[%s2814_s15 + $0x10] sm:$0xff]  ;;  %v2049_v44 = vld [vmem:[%s2814_s15 + $0x18] sm:$0xff] }
  0x98   : > { %2270 = vmatprep.subr.bf16.mxu1 %v2847_v9 }
 0x169   : > { %v2149_v4 = vpop.f32.mrb[0].mxu0 }
 0x16a   : > { %v417_v5 = vpop.f32.mrb[1].mxu0 }
 0x16b   : > { %2152 = vmatprep.mubr.msk.f32.mxu1 %vm344_vm0, %v417_v5 }
 0x16c   : > { %2153 = vmatmul.mubr.msk.f32.vlgmr.msra.gmra.mrb[0].mxu1 %vm344_vm0, %v2149_v4 }
 0x16d   : > { %2272 = vmatpush3.bf16.msra.mxu1 %v2847_v9 }
 0x16e   : > { %2180 = vmatprep.subr.mxu1 %v2837_v3 }
 0x23f   : > { %v2154_v10 = vpop.f32.mrb[0].mxu1 }
 0x240   : > { %510 = vst.msk [vmem:[%s2860_s21 + $0x8] sm:$0xff] %vm508_vm1, %v2154_v10  ;;  %v499_v11 = vpop.f32.mrb[1].mxu1 }
 0x241   : > { %509 = vst.msk [vmem:[%s2860_s21] sm:$0xff] %vm508_vm1, %v499_v11  ;;  %v2265_v12 = vpack.c.bf16 %v2154_v10, %v499_v11 }
 0x243   : > { %2266 = vmatprep.subr.bf16.mxu0 %v2265_v12 }
 0x244   : > { %2268 = vmatpush3.bf16.msra.mxu0 %v2265_v12 }
 0x245   : > { %2175 = vmatprep.subr.mxu0 %v2011_v13 }
 0x247   : > { %2160 = vmatmul.mubr.msk.f32.vlgmr.msra.gmra.mrb[2].mxu0 %vm508_vm1, %v2867_v14 }
 0x248   : > { %2176 = vmatpush3.msra.mxu0 %v2011_v13  ;;  %2162 = vmatprep.mubr.msk.f32.mxu0 %vm508_vm1, %v2869_v15 }
 0x24b   : > { %2163 = vmatmul.mubr.msk.f32.gmra.mrb[4].mxu0 %vm508_vm1, %v2875_v16 }
 0x24c   : > { %2177 = vmatprep.mubr.msk.f32.mxu0 %vm344_vm0, %v2829_v1 }
 0x24f   : > { %2178 = vmatmul.mubr.msk.f32.vlgmr.msra.gmra.mrb[6].mxu0 %vm344_vm0, %v2831_v2 }
 0x250   : > { %2189 = vmatprep.mubr.msk.f32.mxu0 %vm508_vm1, %v2843_v6 }
 0x31a   : > { %v2161_v17 = vpop.f32.mrb[2].mxu0 }
 0x31b   : > { %v593_v18 = vpop.f32.mrb[3].mxu0 }
 0x31c   : > { %2169 = vmatprep.mubr.msk.f32.mxu1 %vm508_vm1, %v593_v18 }
 0x31d   : > { %2170 = vmatmul.mubr.msk.f32.vlgmr.msra.gmra.mrb[2].mxu1 %vm508_vm1, %v2161_v17 }
 0x31e   : > { %v2164_v19 = vpop.f32.mrb[4].mxu0  ;;  %2181 = vmatpush3.msra.mxu1 %v2837_v3 }
 0x31f   : > { %v603_v20 = vpop.f32.mrb[5].mxu0  ;;  %2278 = vmatprep.subr.bf16.mxu1 %v2847_v9 }
 0x320   : > { %2172 = vmatprep.mubr.msk.f32.mxu1 %vm508_vm1, %v603_v20 }
 0x321   : > { %2173 = vmatmul.mubr.msk.f32.gmra.mrb[4].mxu1 %vm508_vm1, %v2164_v19 }
 0x322   : > { %v2179_v21 = vpop.f32.mrb[6].mxu0 }
 0x323   : > { %v792_v22 = vpop.f32.mrb[7].mxu0 }
 0x324   : > { %2182 = vmatprep.mubr.msk.f32.mxu1 %vm344_vm0, %v792_v22 }
 0x325   : > { %2183 = vmatmul.mubr.msk.f32.vlgmr.msra.gmra.mrb[6].mxu1 %vm344_vm0, %v2179_v21 }
 0x326   : > { %2280 = vmatpush3.bf16.msra.mxu1 %v2847_v9 }
 0x327   : > { %2210 = vmatprep.subr.mxu1 %v2837_v3 }
 0x3f0   : > { %v2171_v23 = vpop.f32.mrb[2].mxu1 }
 0x3f1   : > { %713 = vst.msk [vmem:[%s2899_s24 + $0x8] sm:$0xff] %vm711_vm2, %v2171_v23  ;;  %v692_v24 = vpop.f32.mrb[3].mxu1 }
 0x3f2   : > { %712 = vst.msk [vmem:[%s2899_s24] sm:$0xff] %vm711_vm2, %v692_v24 }
 0x3f4   : > { %v2174_v25 = vpop.f32.mrb[4].mxu1 }
 0x3f5   : > { %715 = vst.msk [vmem:[%s2899_s24 + $0x18] sm:$0xff] %vm711_vm2, %v2174_v25  ;;  %v702_v26 = vpop.f32.mrb[5].mxu1 }
 0x3f6   : > { %714 = vst.msk [vmem:[%s2899_s24 + $0x10] sm:$0xff] %vm711_vm2, %v702_v26 }
 0x3f8   : > { %v2184_v27 = vpop.f32.mrb[6].mxu1 }
 0x3f9   : > { %2017 = vst.msk [vmem:[%s2860_s21 + $0x18] sm:$0xff] %vm508_vm1, %v2184_v27  ;;  %v874_v28 = vpop.f32.mrb[7].mxu1 }
 0x3fa   : > { %2016 = vst.msk [vmem:[%s2860_s21 + $0x10] sm:$0xff] %vm508_vm1, %v874_v28  ;;  %v2273_v29 = vpack.c.bf16 %v2184_v27, %v874_v28 }
 0x3fc   : > { %2274 = vmatprep.subr.bf16.mxu0 %v2273_v29 }
 0x3fd   : > { %2276 = vmatpush3.bf16.msra.mxu0 %v2273_v29 }
 0x3fe   : > { %2205 = vmatprep.subr.mxu0 %v2030_v30 }
 0x400   : > { %2190 = vmatmul.mubr.msk.f32.vlgmr.msra.gmra.mrb[8].mxu0 %vm508_vm1, %v2867_v14 }
 0x401   : > { %2206 = vmatpush3.msra.mxu0 %v2030_v30  ;;  %2192 = vmatprep.mubr.msk.f32.mxu0 %vm508_vm1, %v2869_v15 }
 0x404   : > { %2193 = vmatmul.mubr.msk.f32.gmra.mrb[10].mxu0 %vm508_vm1, %v2875_v16 }
 0x405   : > { %2207 = vmatprep.mubr.msk.f32.mxu0 %vm344_vm0, %v2829_v1 }
 0x408   : > { %2208 = vmatmul.mubr.msk.f32.vlgmr.msra.gmra.mrb[12].mxu0 %vm344_vm0, %v2831_v2 }
 0x409   : > { %2219 = vmatprep.mubr.msk.f32.mxu0 %vm508_vm1, %v2843_v6 }
 0x4d3   : > { %v2191_v31 = vpop.f32.mrb[8].mxu0 }
 0x4d4   : > { %v968_v32 = vpop.f32.mrb[9].mxu0 }
 0x4d5   : > { %2199 = vmatprep.mubr.msk.f32.mxu1 %vm508_vm1, %v968_v32 }
 0x4d6   : > { %2200 = vmatmul.mubr.msk.f32.vlgmr.msra.gmra.mrb[8].mxu1 %vm508_vm1, %v2191_v31 }
 0x4d7   : > { %v2194_v33 = vpop.f32.mrb[10].mxu0  ;;  %2211 = vmatpush3.msra.mxu1 %v2837_v3 }
 0x4d8   : > { %v978_v34 = vpop.f32.mrb[11].mxu0  ;;  %2286 = vmatprep.subr.bf16.mxu1 %v2847_v9 }
 0x4d9   : > { %2202 = vmatprep.mubr.msk.f32.mxu1 %vm508_vm1, %v978_v34 }
 0x4da   : > { %2203 = vmatmul.mubr.msk.f32.gmra.mrb[10].mxu1 %vm508_vm1, %v2194_v33 }
 0x4db   : > { %v2209_v35 = vpop.f32.mrb[12].mxu0 }
 0x4dc   : > { %v1167_v36 = vpop.f32.mrb[13].mxu0 }
 0x4dd   : > { %2212 = vmatprep.mubr.msk.f32.mxu1 %vm344_vm0, %v1167_v36 }
 0x4de   : > { %2213 = vmatmul.mubr.msk.f32.vlgmr.msra.gmra.mrb[12].mxu1 %vm344_vm0, %v2209_v35 }
 0x4df   : > { %2288 = vmatpush3.bf16.msra.mxu1 %v2847_v9 }
 0x4e0   : > { %2240 = vmatprep.subr.mxu1 %v2837_v3 }
 0x5a9   : > { %v2201_v37 = vpop.f32.mrb[8].mxu1 }
 0x5aa   : > { %2027 = vst.msk [vmem:[%s2899_s24 + $0x28] sm:$0xff] %vm711_vm2, %v2201_v37  ;;  %v1067_v38 = vpop.f32.mrb[9].mxu1 }
 0x5ab   : > { %2026 = vst.msk [vmem:[%s2899_s24 + $0x20] sm:$0xff] %vm711_vm2, %v1067_v38 }
 0x5ad   : > { %v2204_v39 = vpop.f32.mrb[10].mxu1 }
 0x5ae   : > { %2029 = vst.msk [vmem:[%s2899_s24 + $0x38] sm:$0xff] %vm711_vm2, %v2204_v39  ;;  %v1077_v40 = vpop.f32.mrb[11].mxu1 }
 0x5af   : > { %2028 = vst.msk [vmem:[%s2899_s24 + $0x30] sm:$0xff] %vm711_vm2, %v1077_v40 }
 0x5b1   : > { %v2214_v41 = vpop.f32.mrb[12].mxu1 }
 0x5b2   : > { %2036 = vst.msk [vmem:[%s2860_s21 + $0x28] sm:$0xff] %vm508_vm1, %v2214_v41  ;;  %v1249_v42 = vpop.f32.mrb[13].mxu1 }
 0x5b3   : > { %2035 = vst.msk [vmem:[%s2860_s21 + $0x20] sm:$0xff] %vm508_vm1, %v1249_v42  ;;  %v2281_v43 = vpack.c.bf16 %v2214_v41, %v1249_v42 }
 0x5b5   : > { %2282 = vmatprep.subr.bf16.mxu0 %v2281_v43 }
 0x5b6   : > { %2284 = vmatpush3.bf16.msra.mxu0 %v2281_v43 }
 0x5b7   : > { %2235 = vmatprep.subr.mxu0 %v2049_v44 }
 0x5b9   : > { %2220 = vmatmul.mubr.msk.f32.vlgmr.msra.gmra.mrb[14].mxu0 %vm508_vm1, %v2867_v14 }
 0x5ba   : > { %2236 = vmatpush3.msra.mxu0 %v2049_v44  ;;  %2222 = vmatprep.mubr.msk.f32.mxu0 %vm508_vm1, %v2869_v15 }
 0x5bd   : > { %2223 = vmatmul.mubr.msk.f32.gmra.mrb[16].mxu0 %vm508_vm1, %v2875_v16 }
 0x5be   : > { %2237 = vmatprep.mubr.msk.f32.mxu0 %vm344_vm0, %v2829_v1 }
 0x5c1   : > { %2238 = vmatmul.mubr.msk.f32.vlgmr.msra.gmra.mrb[18].mxu0 %vm344_vm0, %v2831_v2 }
 0x5c2   : > { %2249 = vmatprep.mubr.msk.f32.mxu0 %vm508_vm1, %v2843_v6 }
 0x68c   : > { %v2221_v45 = vpop.f32.mrb[14].mxu0 }
 0x68d   : > { %v1343_v46 = vpop.f32.mrb[15].mxu0 }
 0x68e   : > { %2229 = vmatprep.mubr.msk.f32.mxu1 %vm508_vm1, %v1343_v46 }
 0x68f   : > { %2230 = vmatmul.mubr.msk.f32.vlgmr.msra.gmra.mrb[14].mxu1 %vm508_vm1, %v2221_v45 }
 0x690   : > { %v2224_v47 = vpop.f32.mrb[16].mxu0  ;;  %2241 = vmatpush3.msra.mxu1 %v2837_v3 }
 0x691   : > { %v1353_v48 = vpop.f32.mrb[17].mxu0  ;;  %2294 = vmatprep.subr.bf16.mxu1 %v2847_v9 }
 0x692   : > { %2232 = vmatprep.mubr.msk.f32.mxu1 %vm508_vm1, %v1353_v48 }
 0x693   : > { %2233 = vmatmul.mubr.msk.f32.gmra.mrb[16].mxu1 %vm508_vm1, %v2224_v47 }
 0x694   : > { %v2239_v49 = vpop.f32.mrb[18].mxu0 }
 0x695   : > { %v1542_v50 = vpop.f32.mrb[19].mxu0 }
 0x696   : > { %2242 = vmatprep.mubr.msk.f32.mxu1 %vm344_vm0, %v1542_v50 }
 0x697   : > { %2243 = vmatmul.mubr.msk.f32.vlgmr.msra.gmra.mrb[18].mxu1 %vm344_vm0, %v2239_v49 }
 0x698   : > { %2296 = vmatpush3.bf16.msra.mxu1 %v2847_v9 }
 0x762   : > { %v2231_v51 = vpop.f32.mrb[14].mxu1 }
 0x763   : > { %2046 = vst.msk [vmem:[%s2899_s24 + $0x48] sm:$0xff] %vm711_vm2, %v2231_v51  ;;  %v1442_v52 = vpop.f32.mrb[15].mxu1 }
 0x764   : > { %2045 = vst.msk [vmem:[%s2899_s24 + $0x40] sm:$0xff] %vm711_vm2, %v1442_v52 }
 0x766   : > { %v2234_v53 = vpop.f32.mrb[16].mxu1 }
 0x767   : > { %2048 = vst.msk [vmem:[%s2899_s24 + $0x58] sm:$0xff] %vm711_vm2, %v2234_v53  ;;  %v1452_v54 = vpop.f32.mrb[17].mxu1 }
 0x768   : > { %2047 = vst.msk [vmem:[%s2899_s24 + $0x50] sm:$0xff] %vm711_vm2, %v1452_v54 }
 0x76a   : > { %v2244_v55 = vpop.f32.mrb[18].mxu1 }
 0x76b   : > { %2055 = vst.msk [vmem:[%s2860_s21 + $0x38] sm:$0xff] %vm508_vm1, %v2244_v55  ;;  %v1624_v56 = vpop.f32.mrb[19].mxu1 }
 0x76c   : > { %2054 = vst.msk [vmem:[%s2860_s21 + $0x30] sm:$0xff] %vm508_vm1, %v1624_v56  ;;  %v2289_v57 = vpack.c.bf16 %v2244_v55, %v1624_v56 }
 0x76e   : > { %2290 = vmatprep.subr.bf16.mxu0 %v2289_v57 }
 0x76f   : > { %2292 = vmatpush3.bf16.msra.mxu0 %v2289_v57 }
 0x772   : > { %2250 = vmatmul.mubr.msk.f32.vlgmr.msra.gmra.mrb[20].mxu0 %vm508_vm1, %v2867_v14 }
 0x773   : > { %2252 = vmatprep.mubr.msk.f32.mxu0 %vm508_vm1, %v2869_v15 }
 0x776   : > { %2253 = vmatmul.mubr.msk.f32.gmra.mrb[22].mxu0 %vm508_vm1, %v2875_v16 }
 0x845   : > { %v2251_v58 = vpop.f32.mrb[20].mxu0 }
 0x846   : > { %v1718_v59 = vpop.f32.mrb[21].mxu0 }
 0x847   : > { %2259 = vmatprep.mubr.msk.f32.mxu1 %vm508_vm1, %v1718_v59 }
 0x848   : > { %2260 = vmatmul.mubr.msk.f32.vlgmr.msra.gmra.mrb[20].mxu1 %vm508_vm1, %v2251_v58 }
 0x849   : > { %v2254_v60 = vpop.f32.mrb[22].mxu0 }
 0x84a   : > { %v1728_v61 = vpop.f32.mrb[23].mxu0 }
 0x84b   : > { %2262 = vmatprep.mubr.msk.f32.mxu1 %vm508_vm1, %v1728_v61 }
 0x84c   : > { %2263 = vmatmul.mubr.msk.f32.gmra.mrb[22].mxu1 %vm508_vm1, %v2254_v60 }
 0x91b   : > { %v2261_v62 = vpop.f32.mrb[20].mxu1 }
 0x91c   : > { %2065 = vst.msk [vmem:[%s2899_s24 + $0x68] sm:$0xff] %vm711_vm2, %v2261_v62  ;;  %v1817_v63 = vpop.f32.mrb[21].mxu1 }
 0x91d   : > { %2064 = vst.msk [vmem:[%s2899_s24 + $0x60] sm:$0xff] %vm711_vm2, %v1817_v63 }
 0x91f   : > { %v2264_v0 = vpop.f32.mrb[22].mxu1 }
 0x920   : > { %2067 = vst.msk [vmem:[%s2899_s24 + $0x78] sm:$0xff] %vm711_vm2, %v2264_v0  ;;  %v1827_v1 = vpop.f32.mrb[23].mxu1 }
 0x921   : > { %2066 = vst.msk [vmem:[%s2899_s24 + $0x70] sm:$0xff] %vm711_vm2, %v1827_v1 }
 0x922 PF: > { %p19_p4 = scmp.ge.s32.totalorder %s2755_s16, 4   ;;  %s3034_s21 = smov %s2555_s22 }
 0x923   : > { %s3035_s22 = smov %s2559_s23  ;;  %s3036_s23 = smov %s2766_s29 }
 0x924   : > { %s3037_s24 = smov %s2755_s16  ;;  %21 = sbr.rel (!%p19_p4) target bundleno = 5 (0x5), region = 117 }
 0x92b   :  { %1878 = vsyncpa [#allocation3], 1 }
 0x92c   :  { %1880 = vsyncpa [#allocation3 + $0x1], 1 }
 0x92d   :  { %1881 = vsyncpa [#allocation5], 1 }
 0x92e   :  { %1882 = vsyncpa [#allocation8], 1 }

// kernel: aggregation_init_forward.13
= control target key start
LH: loop header
LB: loop body
LE: loop exit
PB: predicated region body
PF: predicated region fallthrough
CT: control target
= control target key end

     0   :  { %s595_s15 = smov 0   ;;  %s597_s16 = smov 0   ;;  %s641_s0 = inlined_call_operand.vmem [shape: f32[2,36,256], index: 0, kind: input, shape index: {}]   ;;  %s642_s1 = inlined_call_operand.vmem [shape: f32[4,36], index: 1, kind: input, shape index: {}]   ;;  %s643_s2 = inlined_call_operand.vmem [shape: f32[4,1], index: 2, kind: input, shape index: {}]   ;;  %s644_s3 = inlined_call_operand.vmem [shape: f32[2,4,256], index: 3, kind: input, shape index: {}]   ;;  %s645_s4 = inlined_call_operand.vmem [shape: f32[2,4,256], index: 4, kind: output, shape index: {}]  }
   0x1   :  { %s599_s17 = smov 0  }
   0x2 LB: > { %s26_s18 = sadd.s32 1, %s562_s16  ;;  %p494_p0 = scmp.ge.s32.totalorder %s566_s17, 1  ;;  %s566_s17 = sphi %s599_s17, %s14_s17   ;;  %s562_s16 = sphi %s597_s16, %s647_s16   ;;  %s558_s15 = sphi %s595_s15, %s646_s15  }
   0x3   : > { %p28_p1 = scmp.ge.s32.totalorder %s26_s18, 2  ;;  %p200_p2 = scmp.lt.s32.totalorder %s566_s17, 3 }
   0x5   : > { %s649_s18 = smov (%p28_p1, %s26_s18), 0  ;;  %p201_p3 = pnand %p494_p0, %p200_p2 }
   0x6   : > { %p244_p4 = scmp.lt.s32.totalorder (!%p201_p3), %s558_s15, 1  ;;  %v568_v0 = vmov (!%p201_p3), 0.0   ;;  %v284_v1 = vld [vmem:[%s643_s2] sm:$0xf] (!%p201_p3)  ;;  %v569_v2 = vmov (!%p201_p3), 0   ;;  %vm294_vm0 = vcmask (!%p201_p3), 1043456  }
   0x7   : > { %204 = sbr.rel (%p201_p3) target bundleno = 253 (0xfd), region = 36  ;;  %365 = vmatprep.mubr.f32.mxu0 (!%p201_p3), %v568_v0  ;;  %542 = vset.pattern.permute.xlu0 (!%p201_p3), %v569_v2  ;;  %v273_v17 = vld [vmem:[%s642_s1] sm:$0xf] (!%p201_p3)  ;;  %vm290_vm1 = vcmask (!%p201_p3), 293888  }
   0x8   : > { %287 = vperm.xlu0 (!%p201_p3), %542, %v284_v1  }
   0xe   : > { %s651_s15 = smov (!%p244_p4, %s558_s15), 1 }
   0xf   : > { %s515_s21 = smul.u32 80, %s651_s15  ;;  %s505_s27 = sshll.u32 %s651_s15, 3 }
  0x10   : > { %s261_s30 = scalar_lea.vmem %s644_s3, %s505_s27  ;;  %s271_s7 = scalar_lea.vmem %s645_s4, %s505_s27 }
  0x11   : > { %s251_s24 = scalar_lea.vmem %s641_s0, %s515_s21  ;;  %v374_v19 = vld [vmem:[%s261_s30] sm:$0xff] }
  0x12   : > { %v275_v3 = vld [vmem:[%s251_s24 + $0x8] sm:$0xff]  ;;  %v277_v4 = vld [vmem:[%s251_s24 + $0x18] sm:$0xff]  ;;  %v274_v5 = vld [vmem:[%s251_s24] sm:$0xff]  ;;  %v376_v24 = vcombine.high %v374_v19, %v374_v19 }
  0x13   : > { %v507_v6 = vpack.c.bf16 %v277_v4, %v275_v3  ;;  %v276_v7 = vld [vmem:[%s251_s24 + $0x10] sm:$0xff]  ;;  %v279_v8 = vld [vmem:[%s251_s24 + $0x28] sm:$0xff]  ;;  %v281_v9 = vld [vmem:[%s251_s24 + $0x38] sm:$0xff] }
  0x14   : > { %v509_v10 = vpack.c.bf16 %v276_v7, %v274_v5  ;;  %v511_v11 = vpack.c.bf16 %v281_v9, %v279_v8  ;;  %v278_v12 = vld [vmem:[%s251_s24 + $0x20] sm:$0xff]  ;;  %v280_v13 = vld [vmem:[%s251_s24 + $0x30] sm:$0xff]  ;;  %v283_v15 = vld [vmem:[%s251_s24 + $0x48] sm:$0xf] }
  0x15   : > { %508 = vmatprep.subr.bf16.mxu0 %v507_v6  ;;  %v513_v14 = vpack.c.bf16 %v280_v13, %v278_v12  ;;  %v282_v16 = vld [vmem:[%s251_s24 + $0x40] sm:$0xf] }
  0x16   : > { %510 = vmatpush1.bf16.msra.mxu0 %v509_v10 }
  0x17   : > { %512 = vmatprep.subr.bf16.mxu0 %v511_v11 }
  0x1a   : > { %514 = vmatpush1.bf16.msra.mxu0 %v513_v14 }
  0x1b   : > { %500 = vmatprep.subr.msk.mxu0 %vm294_vm0, %v283_v15 }
  0x1e   : > { %501 = vmatpush1.msk.msra.mxu0 %vm294_vm0, %v282_v16 }
  0x1f   : > { %502 = vmatmul.mubr.msk.f32.vlgmr.msra.gmra.mrb[0].mxu0 %vm290_vm1, %v273_v17 }
  0x87   : > { %v288_v18 = vpop.permute.xlu0 %287 }
  0xf2   : > { %v367_v20 = vpop.f32.mrb[0].mxu0 }
  0xf3   : > { %v368_v21 = vadd.f32 %v367_v20, %v288_v18  ;;  %v369_v22 = vpop.f32.mrb[1].mxu0 }
  0xf4   : > { %v370_v23 = vadd.f32 %v369_v22, %v288_v18 }
  0xf5   : > { %v372_v25 = vmax.f32 %v368_v21, 0.0 }
  0xf6   : > { %v373_v26 = vmax.f32 %v370_v23, 0.0 }
  0xf7   : > { %v378_v27 = vmul.f32 %v374_v19, %v372_v25 }
  0xf8   : > { %v379_v28 = vmul.f32 %v376_v24, %v373_v26 }
  0xfa   : > { %v382_v29 = vcombine.low %v378_v27, %v379_v28 }
  0xfc   : > { %384 = vst [vmem:[%s271_s7] sm:$0xff] %v382_v29 }
  0xfd PF: > { %s14_s17 = sadd.s32 1, %s566_s17   ;;  %s646_s15 = smov %s562_s16 }
  0xfe   : > { %p11_p5 = scmp.ge.s32.totalorder %s14_s17, 4   ;;  %s647_s16 = smov %s649_s18 }
 0x100   :  { %13 = sbr.rel (!%p11_p5) target bundleno = 2 (0x2), region = 69 }

// kernel: aggregation_init_forward.17
= control target key start
LH: loop header
LB: loop body
LE: loop exit
PB: predicated region body
PF: predicated region fallthrough
CT: control target
= control target key end

     0   :  { %s721_s18 = smov 0   ;;  %s723_s19 = smov 0   ;;  %s794_s0 = inlined_call_operand.vmem [shape: f32[2,36,256], index: 0, kind: input, shape index: {}]   ;;  %s795_s1 = inlined_call_operand.vmem [shape: f32[2,36,256], index: 1, kind: input, shape index: {}]   ;;  %s796_s2 = inlined_call_operand.vmem [shape: f32[8,36], index: 2, kind: input, shape index: {}]   ;;  %s797_s3 = inlined_call_operand.vmem [shape: f32[8,36], index: 3, kind: input, shape index: {}]   ;;  %s798_s4 = inlined_call_operand.vmem [shape: f32[8,1], index: 4, kind: input, shape index: {}]   ;;  %s799_s5 = inlined_call_operand.vmem [shape: f32[2,8,256], index: 5, kind: output, shape index: {}]  }
   0x1   :  { %s725_s20 = smov 0  }
   0x2 LB: > { %s27_s21 = sadd.s32 1, %s683_s19  ;;  %p605_p0 = scmp.ge.s32.totalorder %s687_s20, 1  ;;  %s687_s20 = sphi %s725_s20, %s15_s20   ;;  %s683_s19 = sphi %s723_s19, %s801_s19   ;;  %s679_s18 = sphi %s721_s18, %s800_s18  }
   0x3   : > { %p29_p1 = scmp.ge.s32.totalorder %s27_s21, 2  ;;  %p225_p2 = scmp.lt.s32.totalorder %s687_s20, 3 }
   0x5   : > { %s803_s21 = smov (%p29_p1, %s27_s21), 0  ;;  %p226_p3 = pnand %p605_p0, %p225_p2 }
   0x6   : > { %p271_p4 = scmp.lt.s32.totalorder (!%p226_p3), %s679_s18, 1  ;;  %v689_v0 = vmov (!%p226_p3), 0.0   ;;  %v484_v1 = vld [vmem:[%s798_s4] sm:$0xff] (!%p226_p3)  ;;  %v690_v2 = vmov (!%p226_p3), 0   ;;  %vm326_vm0 = vcmask (!%p226_p3), 1043456   ;;  %vm322_vm1 = vcmask (!%p226_p3), 293888  }
   0x7   : > { %229 = sbr.rel (%p226_p3) target bundleno = 252 (0xfc), region = 40  ;;  %397 = vmatprep.mubr.f32.mxu1 (!%p226_p3), %v689_v0  ;;  %477 = vmatprep.mubr.f32.mxu0 (!%p226_p3), %v689_v0  ;;  %v311_v31 = vld [vmem:[%s797_s3] sm:$0xff] (!%p226_p3) }
   0x8   : > { %664 = vset.pattern.permute.xlu0 (!%p226_p3), %v690_v2  ;;  %v300_v32 = vld [vmem:[%s796_s2] sm:$0xff] (!%p226_p3) }
   0x9   : > { %487 = vperm.xlu0 (!%p226_p3), %664, %v484_v1  }
   0xe   : > { %s805_s18 = smov (!%p271_p4, %s679_s18), 1 }
   0xf   : > { %s637_s24 = smul.u32 80, %s805_s18  ;;  %s618_s10 = sshll.u32 %s805_s18, 4 }
  0x10   : > { %s298_s13 = scalar_lea.vmem %s799_s5, %s618_s10 }
  0x11   : > { %s748_s27 = scalar_lea.vmem %s795_s1, %s637_s24  ;;  %s753_s30 = scalar_lea.vmem %s794_s0, %s637_s24 }
  0x12   : > { %v313_v3 = vld [vmem:[%s748_s27 + $0x8] sm:$0xff]  ;;  %v315_v4 = vld [vmem:[%s748_s27 + $0x18] sm:$0xff]  ;;  %v312_v8 = vld [vmem:[%s748_s27] sm:$0xff] }
  0x13   : > { %v302_v5 = vld [vmem:[%s753_s30 + $0x8] sm:$0xff]  ;;  %v619_v6 = vpack.c.bf16 %v315_v4, %v313_v3  ;;  %v304_v7 = vld [vmem:[%s753_s30 + $0x18] sm:$0xff]  ;;  %v314_v9 = vld [vmem:[%s748_s27 + $0x10] sm:$0xff] }
  0x14   : > { %v627_v10 = vpack.c.bf16 %v304_v7, %v302_v5  ;;  %v621_v11 = vpack.c.bf16 %v314_v9, %v312_v8  ;;  %v301_v12 = vld [vmem:[%s753_s30] sm:$0xff]  ;;  %v303_v13 = vld [vmem:[%s753_s30 + $0x10] sm:$0xff]  ;;  %v317_v14 = vld [vmem:[%s748_s27 + $0x28] sm:$0xff] }
  0x15   : > { %620 = vmatprep.subr.bf16.mxu1 %v619_v6  ;;  %v629_v15 = vpack.c.bf16 %v303_v13, %v301_v12  ;;  %v319_v16 = vld [vmem:[%s748_s27 + $0x38] sm:$0xff]  ;;  %v306_v17 = vld [vmem:[%s753_s30 + $0x28] sm:$0xff]  ;;  %v316_v21 = vld [vmem:[%s748_s27 + $0x20] sm:$0xff] }
  0x16   : > { %v308_v18 = vld [vmem:[%s753_s30 + $0x38] sm:$0xff]  ;;  %628 = vmatprep.subr.bf16.mxu0 %v627_v10  ;;  %622 = vmatpush1.bf16.msra.mxu1 %v621_v11  ;;  %v623_v19 = vpack.c.bf16 %v319_v16, %v317_v14  ;;  %v318_v22 = vld [vmem:[%s748_s27 + $0x30] sm:$0xff]  ;;  %v305_v23 = vld [vmem:[%s753_s30 + $0x20] sm:$0xff] }
  0x17   : > { %v631_v20 = vpack.c.bf16 %v308_v18, %v306_v17  ;;  %630 = vmatpush1.bf16.msra.mxu0 %v629_v15  ;;  %v625_v24 = vpack.c.bf16 %v318_v22, %v316_v21  ;;  %v307_v25 = vld [vmem:[%s753_s30 + $0x30] sm:$0xff]  ;;  %v321_v27 = vld [vmem:[%s748_s27 + $0x48] sm:$0xf]  ;;  %v320_v29 = vld [vmem:[%s748_s27 + $0x40] sm:$0xf] }
  0x18   : > { %624 = vmatprep.subr.bf16.mxu1 %v623_v19  ;;  %v633_v26 = vpack.c.bf16 %v307_v25, %v305_v23  ;;  %v310_v28 = vld [vmem:[%s753_s30 + $0x48] sm:$0xf]  ;;  %v309_v30 = vld [vmem:[%s753_s30 + $0x40] sm:$0xf] }
  0x19   : > { %632 = vmatprep.subr.bf16.mxu0 %v631_v20 }
  0x1a   : > { %626 = vmatpush1.bf16.msra.mxu1 %v625_v24 }
  0x1b   : > { %634 = vmatpush1.bf16.msra.mxu0 %v633_v26  ;;  %610 = vmatprep.subr.msk.mxu1 %vm326_vm0, %v321_v27 }
  0x1c   : > { %613 = vmatprep.subr.msk.mxu0 %vm326_vm0, %v310_v28 }
  0x1e   : > { %611 = vmatpush1.msk.msra.mxu1 %vm326_vm0, %v320_v29 }
  0x1f   : > { %614 = vmatpush1.msk.msra.mxu0 %vm326_vm0, %v309_v30  ;;  %612 = vmatmul.mubr.msk.f32.vlgmr.msra.gmra.mrb[0].mxu1 %vm322_vm1, %v311_v31 }
  0x20   : > { %615 = vmatmul.mubr.msk.f32.vlgmr.msra.gmra.mrb[0].mxu0 %vm322_vm1, %v300_v32 }
  0x88   : > { %v488_v34 = vpop.permute.xlu0 %487 }
  0xf2   : > { %v399_v33 = vpop.f32.mrb[0].mxu1 }
  0xf3   : > { %v479_v35 = vpop.f32.mrb[0].mxu0  ;;  %v401_v36 = vpop.f32.mrb[1].mxu1 }
  0xf4   : > { %v480_v37 = vadd.f32 %v479_v35, %v399_v33  ;;  %v481_v38 = vpop.f32.mrb[1].mxu0 }
  0xf5   : > { %v482_v39 = vadd.f32 %v481_v38, %v401_v36 }
  0xf6   : > { %v490_v40 = vadd.f32 %v488_v34, %v480_v37 }
  0xf7   : > { %v491_v41 = vadd.f32 %v488_v34, %v482_v39 }
  0xf8   : > { %v492_v42 = vmax.f32 %v490_v40, 0.0 }
  0xf9   : > { %v493_v43 = vmax.f32 %v491_v41, 0.0 }
  0xfa   : > { %494 = vst [vmem:[%s298_s13] sm:$0xff] %v492_v42 }
  0xfb   : > { %495 = vst [vmem:[%s298_s13 + $0x8] sm:$0xff] %v493_v43 }
  0xfc PF: > { %s15_s20 = sadd.s32 1, %s687_s20   ;;  %s800_s18 = smov %s683_s19 }
  0xfd   : > { %p12_p5 = scmp.ge.s32.totalorder %s15_s20, 4   ;;  %s801_s19 = smov %s803_s21 }
  0xff   :  { %14 = sbr.rel (!%p12_p5) target bundleno = 2 (0x2), region = 73 }

// kernel: aggregation_init_forward.18
= control target key start
LH: loop header
LB: loop body
LE: loop exit
PB: predicated region body
PF: predicated region fallthrough
CT: control target
= control target key end

     0   :  { %s2365_s12 = smov 0   ;;  %s2580_s0 = inlined_call_operand.vmem [shape: f32[2,8,16,16], index: 0, kind: input, shape index: {}]   ;;  %s2581_s1 = inlined_call_operand.vmem [shape: f32[32,16], index: 1, kind: input, shape index: {}]   ;;  %s2582_s2 = inlined_call_operand.vmem [shape: f32[16,32], index: 2, kind: input, shape index: {}]   ;;  %s2583_s3 = inlined_call_operand.vmem [shape: f32[2,8,32,32], index: 3, kind: output, shape index: {}]  }
   0x1 LB: > { %s1890_s13 = sadd.s32 4294967295, %s2343_s12   ;;  %p1894_p0 = scmp.ge.s32.totalorder %s2343_s12, 1  ;;  %s2343_s12 = sphi %s2365_s12, %s13_s12  }
   0x2   : > { %p137_p1 = scmp.lt.s32.totalorder %s2343_s12, 3 }
   0x4   : > { %p138_p2 = pnand %p1894_p0, %p137_p1 }
   0x5   : > { %p161_p3 = scmp.lt.s32.totalorder (!%p138_p2), %s1890_s13, 1  ;;  %v2376_v0 = vld [vmem:[%s2581_s1] sm:$0xff] (!%p138_p2)  ;;  %vm177_vm0 = vcmask (!%p138_p2), 130048   ;;  %v276_v2 = vld [vmem:[%s2582_s2 + $0x8] sm:$0xff] (!%p138_p2)  ;;  %v173_v13 = vld [vmem:[%s2581_s1 + $0x10] sm:$0xff] (!%p138_p2)  ;;  %vm374_vm1 = vcmask (!%p138_p2), 261120  }
   0x6   : > { %141 = sbr.rel (%p138_p2) target bundleno = 511 (0x1ff), region = 32  ;;  %2109 = vmatprep.mubr.msk.f32.mxu0 (!%p138_p2), %vm177_vm0, %v2376_v0  ;;  %v275_v1 = vld [vmem:[%s2582_s2] sm:$0xff] (!%p138_p2)  ;;  %v172_v12 = vld [vmem:[%s2581_s1 + $0x8] sm:$0xff] (!%p138_p2)  ;;  %v174_v15 = vld [vmem:[%s2581_s1 + $0x18] sm:$0xff] (!%p138_p2) }
   0x7   : > { %v2388_v3 = vpack.c.bf16 (!%p138_p2), %v276_v2, %v275_v1 }
   0x9   : > { %2270 = vmatprep.subr.bf16.mxu1 (!%p138_p2), %v2388_v3 }
   0xa   : > { %2272 = vmatpush3.bf16.msra.mxu1 (!%p138_p2), %v2388_v3 }
   0xb   : > { %2278 = vmatprep.subr.bf16.mxu1 (!%p138_p2), %v2388_v3 }
   0xd   : > { %s2585_s13 = smov (!%p161_p3, %s1890_s13), 1 }
   0xe   : > { %s2007_s20 = sshll.u32 %s2585_s13, 7  ;;  %s2008_s30 = sshll.u32 %s2585_s13, 8 }
   0xf   : > { %s2395_s23 = scalar_lea.vmem %s2580_s0, %s2007_s20  ;;  %s2511_s6 = scalar_lea.vmem %s2583_s3, %s2008_s30 }
  0x10   : > { %v175_v4 = vld [vmem:[%s2395_s23] sm:$0xff]  ;;  %v176_v5 = vld [vmem:[%s2395_s23 + $0x8] sm:$0xff]  ;;  %v1907_v6 = vld [vmem:[%s2395_s23 + $0x10] sm:$0xff] }
  0x11   : > { %v2265_v7 = vpack.c.bf16 %v176_v5, %v175_v4  ;;  %v1908_v8 = vld [vmem:[%s2395_s23 + $0x18] sm:$0xff]  ;;  %v1921_v10 = vld [vmem:[%s2395_s23 + $0x20] sm:$0xff]  ;;  %v1922_v11 = vld [vmem:[%s2395_s23 + $0x28] sm:$0xff] }
  0x12   : > { %v2273_v9 = vpack.c.bf16 %v1908_v8, %v1907_v6  ;;  %v2281_v14 = vpack.c.bf16 %v1922_v11, %v1921_v10  ;;  %v1935_v16 = vld [vmem:[%s2395_s23 + $0x30] sm:$0xff]  ;;  %v1936_v17 = vld [vmem:[%s2395_s23 + $0x38] sm:$0xff]  ;;  %v1949_v19 = vld [vmem:[%s2395_s23 + $0x40] sm:$0xff] }
  0x13   : > { %2266 = vmatprep.subr.bf16.mxu0 %v2265_v7  ;;  %v2289_v18 = vpack.c.bf16 %v1936_v17, %v1935_v16  ;;  %v1950_v20 = vld [vmem:[%s2395_s23 + $0x48] sm:$0xff]  ;;  %v1963_v22 = vld [vmem:[%s2395_s23 + $0x50] sm:$0xff]  ;;  %v1964_v23 = vld [vmem:[%s2395_s23 + $0x58] sm:$0xff] }
  0x14   : > { %2268 = vmatpush3.bf16.msra.mxu0 %v2265_v7  ;;  %v2297_v21 = vpack.c.bf16 %v1950_v20, %v1949_v19  ;;  %v2305_v24 = vpack.c.bf16 %v1964_v23, %v1963_v22  ;;  %v1977_v25 = vld [vmem:[%s2395_s23 + $0x60] sm:$0xff]  ;;  %v1978_v26 = vld [vmem:[%s2395_s23 + $0x68] sm:$0xff]  ;;  %v1991_v28 = vld [vmem:[%s2395_s23 + $0x70] sm:$0xff] }
  0x15   : > { %2274 = vmatprep.subr.bf16.mxu0 %v2273_v9  ;;  %v2313_v27 = vpack.c.bf16 %v1978_v26, %v1977_v25  ;;  %v1992_v29 = vld [vmem:[%s2395_s23 + $0x78] sm:$0xff] }
  0x16   : > { %v2321_v30 = vpack.c.bf16 %v1992_v29, %v1991_v28 }
  0x17   : > { %2110 = vmatmul.mubr.msk.f32.vlgmr.msra.gmra.mrb[0].mxu0 %vm177_vm0, %v172_v12 }
  0x18   : > { %2276 = vmatpush3.bf16.msra.mxu0 %v2273_v9  ;;  %2112 = vmatprep.mubr.msk.f32.mxu0 %vm177_vm0, %v173_v13 }
  0x19   : > { %2282 = vmatprep.subr.bf16.mxu0 %v2281_v14 }
  0x1b   : > { %2113 = vmatmul.mubr.msk.f32.gmra.mrb[2].mxu0 %vm177_vm0, %v174_v15 }
  0x1c   : > { %2129 = vmatprep.mubr.msk.f32.mxu0 %vm177_vm0, %v2376_v0 }
  0x1f   : > { %2130 = vmatmul.mubr.msk.f32.vlgmr.msra.gmra.mrb[4].mxu0 %vm177_vm0, %v172_v12 }
  0x20   : > { %2284 = vmatpush3.bf16.msra.mxu0 %v2281_v14  ;;  %2132 = vmatprep.mubr.msk.f32.mxu0 %vm177_vm0, %v173_v13 }
  0x21   : > { %2290 = vmatprep.subr.bf16.mxu0 %v2289_v18 }
  0x23   : > { %2133 = vmatmul.mubr.msk.f32.gmra.mrb[6].mxu0 %vm177_vm0, %v174_v15 }
  0x24   : > { %2149 = vmatprep.mubr.msk.f32.mxu0 %vm177_vm0, %v2376_v0 }
  0x27   : > { %2150 = vmatmul.mubr.msk.f32.vlgmr.msra.gmra.mrb[8].mxu0 %vm177_vm0, %v172_v12 }
  0x28   : > { %2292 = vmatpush3.bf16.msra.mxu0 %v2289_v18  ;;  %2152 = vmatprep.mubr.msk.f32.mxu0 %vm177_vm0, %v173_v13 }
  0x29   : > { %2298 = vmatprep.subr.bf16.mxu0 %v2297_v21 }
  0x2b   : > { %2153 = vmatmul.mubr.msk.f32.gmra.mrb[10].mxu0 %vm177_vm0, %v174_v15 }
  0x2c   : > { %2169 = vmatprep.mubr.msk.f32.mxu0 %vm177_vm0, %v2376_v0 }
  0x2f   : > { %2170 = vmatmul.mubr.msk.f32.vlgmr.msra.gmra.mrb[12].mxu0 %vm177_vm0, %v172_v12 }
  0x30   : > { %2300 = vmatpush3.bf16.msra.mxu0 %v2297_v21  ;;  %2172 = vmatprep.mubr.msk.f32.mxu0 %vm177_vm0, %v173_v13 }
  0x31   : > { %2306 = vmatprep.subr.bf16.mxu0 %v2305_v24 }
  0x33   : > { %2173 = vmatmul.mubr.msk.f32.gmra.mrb[14].mxu0 %vm177_vm0, %v174_v15 }
  0x34   : > { %2189 = vmatprep.mubr.msk.f32.mxu0 %vm177_vm0, %v2376_v0 }
  0x37   : > { %2190 = vmatmul.mubr.msk.f32.vlgmr.msra.gmra.mrb[16].mxu0 %vm177_vm0, %v172_v12 }
  0x38   : > { %2308 = vmatpush3.bf16.msra.mxu0 %v2305_v24  ;;  %2192 = vmatprep.mubr.msk.f32.mxu0 %vm177_vm0, %v173_v13 }
  0x39   : > { %2314 = vmatprep.subr.bf16.mxu0 %v2313_v27 }
  0x3b   : > { %2193 = vmatmul.mubr.msk.f32.gmra.mrb[18].mxu0 %vm177_vm0, %v174_v15 }
  0x3c   : > { %2209 = vmatprep.mubr.msk.f32.mxu0 %vm177_vm0, %v2376_v0 }
  0x3f   : > { %2210 = vmatmul.mubr.msk.f32.vlgmr.msra.gmra.mrb[20].mxu0 %vm177_vm0, %v172_v12 }
  0x40   : > { %2316 = vmatpush3.bf16.msra.mxu0 %v2313_v27  ;;  %2212 = vmatprep.mubr.msk.f32.mxu0 %vm177_vm0, %v173_v13 }
  0x41   : > { %2322 = vmatprep.subr.bf16.mxu0 %v2321_v30 }
  0x43   : > { %2213 = vmatmul.mubr.msk.f32.gmra.mrb[22].mxu0 %vm177_vm0, %v174_v15 }
  0x44   : > { %2229 = vmatprep.mubr.msk.f32.mxu0 %vm177_vm0, %v2376_v0 }
  0x47   : > { %2230 = vmatmul.mubr.msk.f32.vlgmr.msra.gmra.mrb[24].mxu0 %vm177_vm0, %v172_v12 }
  0x48   : > { %2324 = vmatpush3.bf16.msra.mxu0 %v2321_v30  ;;  %2232 = vmatprep.mubr.msk.f32.mxu0 %vm177_vm0, %v173_v13 }
  0x4b   : > { %2233 = vmatmul.mubr.msk.f32.gmra.mrb[26].mxu0 %vm177_vm0, %v174_v15 }
  0x4c   : > { %2249 = vmatprep.mubr.msk.f32.mxu0 %vm177_vm0, %v2376_v0 }
  0x4f   : > { %2250 = vmatmul.mubr.msk.f32.vlgmr.msra.gmra.mrb[28].mxu0 %vm177_vm0, %v172_v12 }
  0x50   : > { %2252 = vmatprep.mubr.msk.f32.mxu0 %vm177_vm0, %v173_v13 }
  0x53   : > { %2253 = vmatmul.mubr.msk.f32.gmra.mrb[30].mxu0 %vm177_vm0, %v174_v15 }
  0xea   : > { %v2111_v31 = vpop.f32.mrb[0].mxu0 }
  0xeb   : > { %v256_v32 = vpop.f32.mrb[1].mxu0 }
  0xec   : > { %2119 = vmatprep.mubr.msk.f32.mxu1 %vm177_vm0, %v256_v32 }
  0xed   : > { %2120 = vmatmul.mubr.msk.f32.vlgmr.msra.gmra.mrb[0].mxu1 %vm177_vm0, %v2111_v31 }
  0xee   : > { %v2114_v33 = vpop.f32.mrb[2].mxu0  ;;  %2280 = vmatpush3.bf16.msra.mxu1 %v2388_v3 }
  0xef   : > { %v266_v34 = vpop.f32.mrb[3].mxu0  ;;  %2286 = vmatprep.subr.bf16.mxu1 %v2388_v3 }
  0xf0   : > { %2122 = vmatprep.mubr.msk.f32.mxu1 %vm177_vm0, %v266_v34 }
  0xf1   : > { %2123 = vmatmul.mubr.msk.f32.gmra.mrb[2].mxu1 %vm177_vm0, %v2114_v33 }
  0xf2   : > { %v2131_v35 = vpop.f32.mrb[4].mxu0 }
  0xf3   : > { %v464_v36 = vpop.f32.mrb[5].mxu0 }
  0xf4   : > { %2139 = vmatprep.mubr.msk.f32.mxu1 %vm177_vm0, %v464_v36 }
  0xf5   : > { %2140 = vmatmul.mubr.msk.f32.vlgmr.msra.gmra.mrb[4].mxu1 %vm177_vm0, %v2131_v35 }
  0xf6   : > { %v2134_v37 = vpop.f32.mrb[6].mxu0  ;;  %2288 = vmatpush3.bf16.msra.mxu1 %v2388_v3 }
  0xf7   : > { %v474_v38 = vpop.f32.mrb[7].mxu0  ;;  %2294 = vmatprep.subr.bf16.mxu1 %v2388_v3 }
  0xf8   : > { %2142 = vmatprep.mubr.msk.f32.mxu1 %vm177_vm0, %v474_v38 }
  0xf9   : > { %2143 = vmatmul.mubr.msk.f32.gmra.mrb[6].mxu1 %vm177_vm0, %v2134_v37 }
  0xfa   : > { %v2151_v39 = vpop.f32.mrb[8].mxu0 }
  0xfb   : > { %v672_v40 = vpop.f32.mrb[9].mxu0 }
  0xfc   : > { %2159 = vmatprep.mubr.msk.f32.mxu1 %vm177_vm0, %v672_v40 }
  0xfd   : > { %2160 = vmatmul.mubr.msk.f32.vlgmr.msra.gmra.mrb[8].mxu1 %vm177_vm0, %v2151_v39 }
  0xfe   : > { %v2154_v41 = vpop.f32.mrb[10].mxu0  ;;  %2296 = vmatpush3.bf16.msra.mxu1 %v2388_v3 }
  0xff   : > { %v682_v42 = vpop.f32.mrb[11].mxu0  ;;  %2302 = vmatprep.subr.bf16.mxu1 %v2388_v3 }
 0x100   : > { %2162 = vmatprep.mubr.msk.f32.mxu1 %vm177_vm0, %v682_v42 }
 0x101   : > { %2163 = vmatmul.mubr.msk.f32.gmra.mrb[10].mxu1 %vm177_vm0, %v2154_v41 }
 0x102   : > { %v2171_v43 = vpop.f32.mrb[12].mxu0 }
 0x103   : > { %v880_v44 = vpop.f32.mrb[13].mxu0 }
 0x104   : > { %2179 = vmatprep.mubr.msk.f32.mxu1 %vm177_vm0, %v880_v44 }
 0x105   : > { %2180 = vmatmul.mubr.msk.f32.vlgmr.msra.gmra.mrb[12].mxu1 %vm177_vm0, %v2171_v43 }
 0x106   : > { %v2174_v45 = vpop.f32.mrb[14].mxu0  ;;  %2304 = vmatpush3.bf16.msra.mxu1 %v2388_v3 }
 0x107   : > { %v890_v46 = vpop.f32.mrb[15].mxu0  ;;  %2310 = vmatprep.subr.bf16.mxu1 %v2388_v3 }
 0x108   : > { %2182 = vmatprep.mubr.msk.f32.mxu1 %vm177_vm0, %v890_v46 }
 0x109   : > { %2183 = vmatmul.mubr.msk.f32.gmra.mrb[14].mxu1 %vm177_vm0, %v2174_v45 }
 0x10a   : > { %v2191_v47 = vpop.f32.mrb[16].mxu0 }
 0x10b   : > { %v1088_v48 = vpop.f32.mrb[17].mxu0 }
 0x10c   : > { %2199 = vmatprep.mubr.msk.f32.mxu1 %vm177_vm0, %v1088_v48 }
 0x10d   : > { %2200 = vmatmul.mubr.msk.f32.vlgmr.msra.gmra.mrb[16].mxu1 %vm177_vm0, %v2191_v47 }
 0x10e   : > { %v2194_v49 = vpop.f32.mrb[18].mxu0  ;;  %2312 = vmatpush3.bf16.msra.mxu1 %v2388_v3 }
 0x10f   : > { %v1098_v50 = vpop.f32.mrb[19].mxu0  ;;  %2318 = vmatprep.subr.bf16.mxu1 %v2388_v3 }
 0x110   : > { %2202 = vmatprep.mubr.msk.f32.mxu1 %vm177_vm0, %v1098_v50 }
 0x111   : > { %2203 = vmatmul.mubr.msk.f32.gmra.mrb[18].mxu1 %vm177_vm0, %v2194_v49 }
 0x112   : > { %v2211_v51 = vpop.f32.mrb[20].mxu0 }
 0x113   : > { %v1296_v52 = vpop.f32.mrb[21].mxu0 }
 0x114   : > { %2219 = vmatprep.mubr.msk.f32.mxu1 %vm177_vm0, %v1296_v52 }
 0x115   : > { %2220 = vmatmul.mubr.msk.f32.vlgmr.msra.gmra.mrb[20].mxu1 %vm177_vm0, %v2211_v51 }
 0x116   : > { %v2214_v53 = vpop.f32.mrb[22].mxu0  ;;  %2320 = vmatpush3.bf16.msra.mxu1 %v2388_v3 }
 0x117   : > { %v1306_v54 = vpop.f32.mrb[23].mxu0  ;;  %2326 = vmatprep.subr.bf16.mxu1 %v2388_v3 }
 0x118   : > { %2222 = vmatprep.mubr.msk.f32.mxu1 %vm177_vm0, %v1306_v54 }
 0x119   : > { %2223 = vmatmul.mubr.msk.f32.gmra.mrb[22].mxu1 %vm177_vm0, %v2214_v53 }
 0x11a   : > { %v2231_v55 = vpop.f32.mrb[24].mxu0 }
 0x11b   : > { %v1504_v56 = vpop.f32.mrb[25].mxu0 }
 0x11c   : > { %2239 = vmatprep.mubr.msk.f32.mxu1 %vm177_vm0, %v1504_v56 }
 0x11d   : > { %2240 = vmatmul.mubr.msk.f32.vlgmr.msra.gmra.mrb[24].mxu1 %vm177_vm0, %v2231_v55 }
 0x11e   : > { %v2234_v57 = vpop.f32.mrb[26].mxu0  ;;  %2328 = vmatpush3.bf16.msra.mxu1 %v2388_v3 }
 0x11f   : > { %v1514_v58 = vpop.f32.mrb[27].mxu0 }
 0x120   : > { %2242 = vmatprep.mubr.msk.f32.mxu1 %vm177_vm0, %v1514_v58 }
 0x121   : > { %2243 = vmatmul.mubr.msk.f32.gmra.mrb[26].mxu1 %vm177_vm0, %v2234_v57 }
 0x122   : > { %v2251_v59 = vpop.f32.mrb[28].mxu0 }
 0x123   : > { %v1712_v60 = vpop.f32.mrb[29].mxu0 }
 0x124   : > { %2259 = vmatprep.mubr.msk.f32.mxu1 %vm177_vm0, %v1712_v60 }
 0x125   : > { %2260 = vmatmul.mubr.msk.f32.vlgmr.msra.gmra.mrb[28].mxu1 %vm177_vm0, %v2251_v59 }
 0x126   : > { %v2254_v61 = vpop.f32.mrb[30].mxu0 }
 0x127   : > { %v1722_v62 = vpop.f32.mrb[31].mxu0 }
 0x128   : > { %2262 = vmatprep.mubr.msk.f32.mxu1 %vm177_vm0, %v1722_v62 }
 0x129   : > { %2263 = vmatmul.mubr.msk.f32.gmra.mrb[30].mxu1 %vm177_vm0, %v2254_v61 }
 0x1c0   : > { %v2121_v63 = vpop.f32.mrb[0].mxu1 }
 0x1c1   : > { %376 = vst.msk [vmem:[%s2511_s6 + $0x8] sm:$0xff] %vm374_vm1, %v2121_v63  ;;  %v355_v0 = vpop.f32.mrb[1].mxu1 }
 0x1c2   : > { %375 = vst.msk [vmem:[%s2511_s6] sm:$0xff] %vm374_vm1, %v355_v0 }
 0x1c4   : > { %v2124_v1 = vpop.f32.mrb[2].mxu1 }
 0x1c5   : > { %378 = vst.msk [vmem:[%s2511_s6 + $0x18] sm:$0xff] %vm374_vm1, %v2124_v1  ;;  %v365_v2 = vpop.f32.mrb[3].mxu1 }
 0x1c6   : > { %377 = vst.msk [vmem:[%s2511_s6 + $0x10] sm:$0xff] %vm374_vm1, %v365_v2 }
 0x1c8   : > { %v2141_v3 = vpop.f32.mrb[4].mxu1 }
 0x1c9   : > { %1918 = vst.msk [vmem:[%s2511_s6 + $0x28] sm:$0xff] %vm374_vm1, %v2141_v3  ;;  %v563_v4 = vpop.f32.mrb[5].mxu1 }
 0x1ca   : > { %1917 = vst.msk [vmem:[%s2511_s6 + $0x20] sm:$0xff] %vm374_vm1, %v563_v4 }
 0x1cc   : > { %v2144_v5 = vpop.f32.mrb[6].mxu1 }
 0x1cd   : > { %1920 = vst.msk [vmem:[%s2511_s6 + $0x38] sm:$0xff] %vm374_vm1, %v2144_v5  ;;  %v573_v6 = vpop.f32.mrb[7].mxu1 }
 0x1ce   : > { %1919 = vst.msk [vmem:[%s2511_s6 + $0x30] sm:$0xff] %vm374_vm1, %v573_v6 }
 0x1d0   : > { %v2161_v7 = vpop.f32.mrb[8].mxu1 }
 0x1d1   : > { %1932 = vst.msk [vmem:[%s2511_s6 + $0x48] sm:$0xff] %vm374_vm1, %v2161_v7  ;;  %v771_v8 = vpop.f32.mrb[9].mxu1 }
 0x1d2   : > { %1931 = vst.msk [vmem:[%s2511_s6 + $0x40] sm:$0xff] %vm374_vm1, %v771_v8 }
 0x1d4   : > { %v2164_v9 = vpop.f32.mrb[10].mxu1 }
 0x1d5   : > { %1934 = vst.msk [vmem:[%s2511_s6 + $0x58] sm:$0xff] %vm374_vm1, %v2164_v9  ;;  %v781_v10 = vpop.f32.mrb[11].mxu1 }
 0x1d6   : > { %1933 = vst.msk [vmem:[%s2511_s6 + $0x50] sm:$0xff] %vm374_vm1, %v781_v10 }
 0x1d8   : > { %v2181_v11 = vpop.f32.mrb[12].mxu1 }
 0x1d9   : > { %1946 = vst.msk [vmem:[%s2511_s6 + $0x68] sm:$0xff] %vm374_vm1, %v2181_v11  ;;  %v979_v12 = vpop.f32.mrb[13].mxu1 }
 0x1da   : > { %1945 = vst.msk [vmem:[%s2511_s6 + $0x60] sm:$0xff] %vm374_vm1, %v979_v12 }
 0x1dc   : > { %v2184_v13 = vpop.f32.mrb[14].mxu1 }
 0x1dd   : > { %1948 = vst.msk [vmem:[%s2511_s6 + $0x78] sm:$0xff] %vm374_vm1, %v2184_v13  ;;  %v989_v14 = vpop.f32.mrb[15].mxu1 }
 0x1de   : > { %1947 = vst.msk [vmem:[%s2511_s6 + $0x70] sm:$0xff] %vm374_vm1, %v989_v14 }
 0x1e0   : > { %v2201_v15 = vpop.f32.mrb[16].mxu1 }
 0x1e1   : > { %1960 = vst.msk [vmem:[%s2511_s6 + $0x88] sm:$0xff] %vm374_vm1, %v2201_v15  ;;  %v1187_v16 = vpop.f32.mrb[17].mxu1 }
 0x1e2   : > { %1959 = vst.msk [vmem:[%s2511_s6 + $0x80] sm:$0xff] %vm374_vm1, %v1187_v16 }
 0x1e4   : > { %v2204_v17 = vpop.f32.mrb[18].mxu1 }
 0x1e5   : > { %1962 = vst.msk [vmem:[%s2511_s6 + $0x98] sm:$0xff] %vm374_vm1, %v2204_v17  ;;  %v1197_v18 = vpop.f32.mrb[19].mxu1 }
 0x1e6   : > { %1961 = vst.msk [vmem:[%s2511_s6 + $0x90] sm:$0xff] %vm374_vm1, %v1197_v18 }
 0x1e8   : > { %v2221_v19 = vpop.f32.mrb[20].mxu1 }
 0x1e9   : > { %1974 = vst.msk [vmem:[%s2511_s6 + $0xa8] sm:$0xff] %vm374_vm1, %v2221_v19  ;;  %v1395_v20 = vpop.f32.mrb[21].mxu1 }
 0x1ea   : > { %1973 = vst.msk [vmem:[%s2511_s6 + $0xa0] sm:$0xff] %vm374_vm1, %v1395_v20 }
 0x1ec   : > { %v2224_v21 = vpop.f32.mrb[22].mxu1 }
 0x1ed   : > { %1976 = vst.msk [vmem:[%s2511_s6 + $0xb8] sm:$0xff] %vm374_vm1, %v2224_v21  ;;  %v1405_v22 = vpop.f32.mrb[23].mxu1 }
 0x1ee   : > { %1975 = vst.msk [vmem:[%s2511_s6 + $0xb0] sm:$0xff] %vm374_vm1, %v1405_v22 }
 0x1f0   : > { %v2241_v23 = vpop.f32.mrb[24].mxu1 }
 0x1f1   : > { %1988 = vst.msk [vmem:[%s2511_s6 + $0xc8] sm:$0xff] %vm374_vm1, %v2241_v23  ;;  %v1603_v24 = vpop.f32.mrb[25].mxu1 }
 0x1f2   : > { %1987 = vst.msk [vmem:[%s2511_s6 + $0xc0] sm:$0xff] %vm374_vm1, %v1603_v24 }
 0x1f4   : > { %v2244_v25 = vpop.f32.mrb[26].mxu1 }
 0x1f5   : > { %1990 = vst.msk [vmem:[%s2511_s6 + $0xd8] sm:$0xff] %vm374_vm1, %v2244_v25  ;;  %v1613_v26 = vpop.f32.mrb[27].mxu1 }
 0x1f6   : > { %1989 = vst.msk [vmem:[%s2511_s6 + $0xd0] sm:$0xff] %vm374_vm1, %v1613_v26 }
 0x1f8   : > { %v2261_v27 = vpop.f32.mrb[28].mxu1 }
 0x1f9   : > { %2002 = vst.msk [vmem:[%s2511_s6 + $0xe8] sm:$0xff] %vm374_vm1, %v2261_v27  ;;  %v1811_v28 = vpop.f32.mrb[29].mxu1 }
 0x1fa   : > { %2001 = vst.msk [vmem:[%s2511_s6 + $0xe0] sm:$0xff] %vm374_vm1, %v1811_v28 }
 0x1fc   : > { %v2264_v29 = vpop.f32.mrb[30].mxu1 }
 0x1fd   : > { %2004 = vst.msk [vmem:[%s2511_s6 + $0xf8] sm:$0xff] %vm374_vm1, %v2264_v29  ;;  %v1821_v30 = vpop.f32.mrb[31].mxu1 }
 0x1fe   : > { %2003 = vst.msk [vmem:[%s2511_s6 + $0xf0] sm:$0xff] %vm374_vm1, %v1821_v30 }
 0x1ff PF: > { %s13_s12 = sadd.s32 1, %s2343_s12  }
 0x200   : > { %p10_p4 = scmp.ge.s32.totalorder %s13_s12, 4  }
 0x202   :  { %12 = sbr.rel (!%p10_p4) target bundleno = 1 (0x1), region = 76 }

// kernel: aggregation_init_forward.19
= control target key start
LH: loop header
LB: loop body
LE: loop exit
PB: predicated region body
PF: predicated region fallthrough
CT: control target
= control target key end

     0   :  { %s833_s12 = smov 0   ;;  %s835_s13 = smov 0   ;;  %s964_s0 = inlined_call_operand.vmem [shape: f32[2,72,1024], index: 0, kind: input, shape index: {}]   ;;  %s965_s1 = inlined_call_operand.vmem [shape: f32[8,72], index: 1, kind: input, shape index: {}]   ;;  %s966_s2 = inlined_call_operand.vmem [shape: f32[8,1], index: 2, kind: input, shape index: {}]   ;;  %s967_s3 = inlined_call_operand.vmem [shape: f32[2,8,1024], index: 3, kind: output, shape index: {}]  }
   0x1   :  { %s837_s14 = smov 0  }
   0x2 LB: > { %s25_s15 = sadd.s32 1, %s805_s13  ;;  %p684_p0 = scmp.ge.s32.totalorder %s809_s14, 1  ;;  %s809_s14 = sphi %s837_s14, %s13_s14   ;;  %s805_s13 = sphi %s835_s13, %s969_s13   ;;  %s801_s12 = sphi %s833_s12, %s968_s12  }
   0x3   : > { %p27_p1 = scmp.ge.s32.totalorder %s25_s15, 2  ;;  %p158_p2 = scmp.lt.s32.totalorder %s809_s14, 3 }
   0x5   : > { %s971_s15 = smov (%p27_p1, %s25_s15), 0  ;;  %p159_p3 = pnand %p684_p0, %p158_p2 }
   0x6   : > { %p191_p4 = scmp.lt.s32.totalorder (!%p159_p3), %s801_s12, 1  ;;  %v283_v0 = vld [vmem:[%s966_s2] sm:$0xff] (!%p159_p3)  ;;  %v811_v1 = vmov (!%p159_p3), 0.0   ;;  %v812_v2 = vmov (!%p159_p3), 0   ;;  %vm289_vm0 = vcmask (!%p159_p3), 588800  }
   0x7   : > { %162 = sbr.rel (%p159_p3) target bundleno = 278 (0x116), region = 32  ;;  %357 = vmatprep.mubr.f32.mxu0 (!%p159_p3), %v811_v1  ;;  %428 = vmatprep.mubr.f32.mxu1 (!%p159_p3), %v811_v1  ;;  %v906_v58 = vld [vmem:[%s965_s1] sm:$0xff] (!%p159_p3) }
   0x8   : > { %786 = vset.pattern.permute.xlu0 (!%p159_p3), %v812_v2 }
   0x9   : > { %286 = vperm.xlu0 (!%p159_p3), %786, %v283_v0  }
   0xe   : > { %s973_s12 = smov (!%p191_p4, %s801_s12), 1 }
   0xf   : > { %s759_s18 = smul.u32 576, %s973_s12  ;;  %s694_s24 = sshll.u32 %s973_s12, 6 }
  0x10   : > { %s208_s27 = scalar_lea.vmem %s967_s3, %s694_s24 }
  0x11   : > { %s862_s21 = scalar_lea.vmem %s964_s0, %s759_s18 }
  0x12   : > { %v212_v3 = vld [vmem:[%s862_s21 + $0x8] sm:$0xff]  ;;  %v214_v5 = vld [vmem:[%s862_s21 + $0x18] sm:$0xff]  ;;  %v211_v8 = vld [vmem:[%s862_s21] sm:$0xff] }
  0x13   : > { %v220_v4 = vld [vmem:[%s862_s21 + $0x48] sm:$0xff]  ;;  %v222_v7 = vld [vmem:[%s862_s21 + $0x58] sm:$0xff]  ;;  %v219_v9 = vld [vmem:[%s862_s21 + $0x40] sm:$0xff] }
  0x14   : > { %v695_v6 = vpack.c.bf16 %v220_v4, %v212_v3  ;;  %v711_v10 = vpack.c.bf16 %v222_v7, %v214_v5  ;;  %v697_v11 = vpack.c.bf16 %v219_v9, %v211_v8  ;;  %v213_v12 = vld [vmem:[%s862_s21 + $0x10] sm:$0xff]  ;;  %v228_v14 = vld [vmem:[%s862_s21 + $0x88] sm:$0xff]  ;;  %v230_v17 = vld [vmem:[%s862_s21 + $0x98] sm:$0xff] }
  0x15   : > { %v221_v13 = vld [vmem:[%s862_s21 + $0x50] sm:$0xff]  ;;  %v236_v16 = vld [vmem:[%s862_s21 + $0xc8] sm:$0xff]  ;;  %v238_v18 = vld [vmem:[%s862_s21 + $0xd8] sm:$0xff] }
  0x16   : > { %696 = vmatprep.subr.bf16.mxu0 %v695_v6  ;;  %v713_v15 = vpack.c.bf16 %v221_v13, %v213_v12  ;;  %712 = vmatprep.subr.bf16.mxu1 %v711_v10  ;;  %v699_v19 = vpack.c.bf16 %v236_v16, %v228_v14  ;;  %v715_v20 = vpack.c.bf16 %v238_v18, %v230_v17  ;;  %v227_v21 = vld [vmem:[%s862_s21 + $0x80] sm:$0xff]  ;;  %v229_v23 = vld [vmem:[%s862_s21 + $0x90] sm:$0xff]  ;;  %v244_v26 = vld [vmem:[%s862_s21 + $0x108] sm:$0xff] }
  0x17   : > { %698 = vmatpush1.bf16.msra.mxu0 %v697_v11  ;;  %v235_v22 = vld [vmem:[%s862_s21 + $0xc0] sm:$0xff]  ;;  %v237_v25 = vld [vmem:[%s862_s21 + $0xd0] sm:$0xff]  ;;  %v252_v27 = vld [vmem:[%s862_s21 + $0x148] sm:$0xff] }
  0x18   : > { %714 = vmatpush1.bf16.msra.mxu1 %v713_v15  ;;  %v701_v24 = vpack.c.bf16 %v235_v22, %v227_v21  ;;  %700 = vmatprep.subr.bf16.mxu0 %v699_v19  ;;  %v717_v28 = vpack.c.bf16 %v237_v25, %v229_v23  ;;  %v703_v29 = vpack.c.bf16 %v252_v27, %v244_v26  ;;  %v246_v30 = vld [vmem:[%s862_s21 + $0x118] sm:$0xff]  ;;  %v243_v32 = vld [vmem:[%s862_s21 + $0x100] sm:$0xff]  ;;  %v245_v35 = vld [vmem:[%s862_s21 + $0x110] sm:$0xff] }
  0x19   : > { %716 = vmatprep.subr.bf16.mxu1 %v715_v20  ;;  %v254_v31 = vld [vmem:[%s862_s21 + $0x158] sm:$0xff]  ;;  %v251_v34 = vld [vmem:[%s862_s21 + $0x140] sm:$0xff]  ;;  %v253_v36 = vld [vmem:[%s862_s21 + $0x150] sm:$0xff] }
  0x1a   : > { %v719_v33 = vpack.c.bf16 %v254_v31, %v246_v30  ;;  %v705_v37 = vpack.c.bf16 %v251_v34, %v243_v32  ;;  %v260_v38 = vld [vmem:[%s862_s21 + $0x188] sm:$0xff]  ;;  %v262_v40 = vld [vmem:[%s862_s21 + $0x198] sm:$0xff]  ;;  %v721_v41 = vpack.c.bf16 %v253_v36, %v245_v35  ;;  %v259_v44 = vld [vmem:[%s862_s21 + $0x180] sm:$0xff] }
  0x1b   : > { %702 = vmatpush1.bf16.msra.mxu0 %v701_v24  ;;  %v268_v39 = vld [vmem:[%s862_s21 + $0x1c8] sm:$0xff]  ;;  %v270_v43 = vld [vmem:[%s862_s21 + $0x1d8] sm:$0xff]  ;;  %v267_v45 = vld [vmem:[%s862_s21 + $0x1c0] sm:$0xff] }
  0x1c   : > { %718 = vmatpush1.bf16.msra.mxu1 %v717_v28  ;;  %704 = vmatprep.subr.bf16.mxu0 %v703_v29  ;;  %v707_v42 = vpack.c.bf16 %v268_v39, %v260_v38  ;;  %v723_v46 = vpack.c.bf16 %v270_v43, %v262_v40  ;;  %v261_v47 = vld [vmem:[%s862_s21 + $0x190] sm:$0xff]  ;;  %v709_v49 = vpack.c.bf16 %v267_v45, %v259_v44  ;;  %v276_v51 = vld [vmem:[%s862_s21 + $0x208] sm:$0xff]  ;;  %v278_v52 = vld [vmem:[%s862_s21 + $0x218] sm:$0xff] }
  0x1d   : > { %720 = vmatprep.subr.bf16.mxu1 %v719_v33  ;;  %v269_v48 = vld [vmem:[%s862_s21 + $0x1d0] sm:$0xff]  ;;  %v216_v53 = vld [vmem:[%s862_s21 + $0x28] sm:$0xff]  ;;  %v275_v54 = vld [vmem:[%s862_s21 + $0x200] sm:$0xff] }
  0x1e   : > { %v725_v50 = vpack.c.bf16 %v269_v48, %v261_v47  ;;  %v224_v55 = vld [vmem:[%s862_s21 + $0x68] sm:$0xff]  ;;  %v218_v56 = vld [vmem:[%s862_s21 + $0x38] sm:$0xff]  ;;  %v215_v59 = vld [vmem:[%s862_s21 + $0x20] sm:$0xff] }
  0x1f   : > { %706 = vmatpush1.bf16.msra.mxu0 %v705_v37  ;;  %v226_v57 = vld [vmem:[%s862_s21 + $0x78] sm:$0xff]  ;;  %v223_v60 = vld [vmem:[%s862_s21 + $0x60] sm:$0xff]  ;;  %v217_v61 = vld [vmem:[%s862_s21 + $0x30] sm:$0xff]  ;;  %v727_v3 = vpack.c.bf16 %v224_v55, %v216_v53 }
  0x20   : > { %722 = vmatpush1.bf16.msra.mxu1 %v721_v41  ;;  %708 = vmatprep.subr.bf16.mxu0 %v707_v42  ;;  %v225_v62 = vld [vmem:[%s862_s21 + $0x70] sm:$0xff]  ;;  %v232_v63 = vld [vmem:[%s862_s21 + $0xa8] sm:$0xff]  ;;  %v234_v4 = vld [vmem:[%s862_s21 + $0xb8] sm:$0xff]  ;;  %v743_v6 = vpack.c.bf16 %v226_v57, %v218_v56  ;;  %v729_v7 = vpack.c.bf16 %v223_v60, %v215_v59 }
  0x21   : > { %724 = vmatprep.subr.bf16.mxu1 %v723_v46  ;;  %v240_v0 = vld [vmem:[%s862_s21 + $0xe8] sm:$0xff]  ;;  %v277_v2 = vld [vmem:[%s862_s21 + $0x210] sm:$0xff]  ;;  %v242_v5 = vld [vmem:[%s862_s21 + $0xf8] sm:$0xff]  ;;  %v745_v8 = vpack.c.bf16 %v225_v62, %v217_v61 }
  0x22   : > { %v731_v9 = vpack.c.bf16 %v240_v0, %v232_v63  ;;  %v231_v10 = vld [vmem:[%s862_s21 + $0xa0] sm:$0xff]  ;;  %v233_v12 = vld [vmem:[%s862_s21 + $0xb0] sm:$0xff]  ;;  %v747_v13 = vpack.c.bf16 %v242_v5, %v234_v4  ;;  %v248_v15 = vld [vmem:[%s862_s21 + $0x128] sm:$0xff] }
  0x23   : > { %710 = vmatpush1.bf16.msra.mxu0 %v709_v49  ;;  %v239_v11 = vld [vmem:[%s862_s21 + $0xe0] sm:$0xff]  ;;  %v241_v14 = vld [vmem:[%s862_s21 + $0xf0] sm:$0xff]  ;;  %v256_v16 = vld [vmem:[%s862_s21 + $0x168] sm:$0xff] }
  0x24   : > { %726 = vmatpush1.bf16.msra.mxu1 %v725_v50  ;;  %309 = vmatprep.subr.mxu0 %v276_v51  ;;  %v250_v17 = vld [vmem:[%s862_s21 + $0x138] sm:$0xff]  ;;  %v733_v19 = vpack.c.bf16 %v239_v11, %v231_v10  ;;  %v749_v20 = vpack.c.bf16 %v241_v14, %v233_v12  ;;  %v735_v21 = vpack.c.bf16 %v256_v16, %v248_v15  ;;  %v247_v22 = vld [vmem:[%s862_s21 + $0x120] sm:$0xff]  ;;  %v249_v24 = vld [vmem:[%s862_s21 + $0x130] sm:$0xff] }
  0x25   : > { %380 = vmatprep.subr.mxu1 %v278_v52  ;;  %v258_v18 = vld [vmem:[%s862_s21 + $0x178] sm:$0xff]  ;;  %v255_v23 = vld [vmem:[%s862_s21 + $0x160] sm:$0xff]  ;;  %v257_v26 = vld [vmem:[%s862_s21 + $0x170] sm:$0xff] }
  0x26   : > { %v751_v25 = vpack.c.bf16 %v258_v18, %v250_v17  ;;  %v264_v27 = vld [vmem:[%s862_s21 + $0x1a8] sm:$0xff]  ;;  %v266_v29 = vld [vmem:[%s862_s21 + $0x1b8] sm:$0xff]  ;;  %v737_v31 = vpack.c.bf16 %v255_v23, %v247_v22  ;;  %v753_v32 = vpack.c.bf16 %v257_v26, %v249_v24  ;;  %v263_v34 = vld [vmem:[%s862_s21 + $0x1a0] sm:$0xff] }
  0x27   : > { %310 = vmatpush1.msra.mxu0 %v275_v54  ;;  %v272_v28 = vld [vmem:[%s862_s21 + $0x1e8] sm:$0xff]  ;;  %v274_v30 = vld [vmem:[%s862_s21 + $0x1f8] sm:$0xff]  ;;  %v271_v35 = vld [vmem:[%s862_s21 + $0x1e0] sm:$0xff] }
  0x28   : > { %381 = vmatpush1.msra.mxu1 %v277_v2  ;;  %688 = vmatmul.mubr.msk.f32.vlgmr.msra.gmra.mrb[0].mxu0 %vm289_vm0, %v906_v58  ;;  %v739_v33 = vpack.c.bf16 %v272_v28, %v264_v27  ;;  %v755_v36 = vpack.c.bf16 %v274_v30, %v266_v29  ;;  %v265_v37 = vld [vmem:[%s862_s21 + $0x1b0] sm:$0xff]  ;;  %v741_v39 = vpack.c.bf16 %v271_v35, %v263_v34  ;;  %v280_v40 = vld [vmem:[%s862_s21 + $0x228] sm:$0xff]  ;;  %v282_v41 = vld [vmem:[%s862_s21 + $0x238] sm:$0xff] }
  0x29   : > { %689 = vmatmul.mubr.msk.f32.vlgmr.msra.gmra.mrb[0].mxu1 %vm289_vm0, %v906_v58  ;;  %728 = vmatprep.subr.bf16.mxu0 %v727_v3  ;;  %v273_v38 = vld [vmem:[%s862_s21 + $0x1f0] sm:$0xff]  ;;  %v279_v42 = vld [vmem:[%s862_s21 + $0x220] sm:$0xff] }
  0x2a   : > { %744 = vmatprep.subr.bf16.mxu1 %v743_v6  ;;  %730 = vmatpush1.bf16.msra.mxu0 %v729_v7  ;;  %v281_v43 = vld [vmem:[%s862_s21 + $0x230] sm:$0xff] }
  0x2b   : > { %746 = vmatpush1.bf16.msra.mxu1 %v745_v8  ;;  %732 = vmatprep.subr.bf16.mxu0 %v731_v9 }
  0x2c   : > { %748 = vmatprep.subr.bf16.mxu1 %v747_v13  ;;  %499 = vmatprep.mubr.f32.mxu0 %v811_v1 }
  0x2d   : > { %570 = vmatprep.mubr.f32.mxu1 %v811_v1  ;;  %v757_v1 = vpack.c.bf16 %v273_v38, %v265_v37 }
  0x2e   : > { %734 = vmatpush1.bf16.msra.mxu0 %v733_v19 }
  0x2f   : > { %750 = vmatpush1.bf16.msra.mxu1 %v749_v20  ;;  %736 = vmatprep.subr.bf16.mxu0 %v735_v21 }
  0x30   : > { %752 = vmatprep.subr.bf16.mxu1 %v751_v25 }
  0x32   : > { %738 = vmatpush1.bf16.msra.mxu0 %v737_v31 }
  0x33   : > { %754 = vmatpush1.bf16.msra.mxu1 %v753_v32  ;;  %740 = vmatprep.subr.bf16.mxu0 %v739_v33 }
  0x34   : > { %756 = vmatprep.subr.bf16.mxu1 %v755_v36 }
  0x36   : > { %742 = vmatpush1.bf16.msra.mxu0 %v741_v39 }
  0x37   : > { %758 = vmatpush1.bf16.msra.mxu1 %v757_v1  ;;  %451 = vmatprep.subr.mxu0 %v280_v40 }
  0x38   : > { %522 = vmatprep.subr.mxu1 %v282_v41 }
  0x3a   : > { %452 = vmatpush1.msra.mxu0 %v279_v42 }
  0x3b   : > { %523 = vmatpush1.msra.mxu1 %v281_v43  ;;  %690 = vmatmul.mubr.msk.f32.vlgmr.msra.gmra.mrb[2].mxu0 %vm289_vm0, %v906_v58 }
  0x3c   : > { %691 = vmatmul.mubr.msk.f32.vlgmr.msra.gmra.mrb[2].mxu1 %vm289_vm0, %v906_v58 }
  0x88   : > { %v287_v44 = vpop.permute.xlu0 %286 }
  0xfb   : > { %v359_v45 = vpop.f32.mrb[0].mxu0 }
  0xfc   : > { %v430_v46 = vpop.f32.mrb[0].mxu1  ;;  %v360_v47 = vadd.f32 %v359_v45, %v287_v44  ;;  %v361_v48 = vpop.f32.mrb[1].mxu0 }
  0xfd   : > { %v431_v49 = vadd.f32 %v430_v46, %v287_v44  ;;  %v362_v50 = vadd.f32 %v361_v48, %v287_v44  ;;  %v432_v51 = vpop.f32.mrb[1].mxu1 }
  0xfe   : > { %v577_v52 = vmax.f32 %v360_v47, 0.0  ;;  %v433_v53 = vadd.f32 %v432_v51, %v287_v44 }
  0xff   : > { %v579_v54 = vmax.f32 %v431_v49, 0.0  ;;  %v578_v55 = vmax.f32 %v362_v50, 0.0 }
 0x100   : > { %585 = vst [vmem:[%s208_s27] sm:$0xff] %v577_v52  ;;  %v580_v56 = vmax.f32 %v433_v53, 0.0 }
 0x101   : > { %587 = vst [vmem:[%s208_s27 + $0x10] sm:$0xff] %v579_v54  ;;  %586 = vst [vmem:[%s208_s27 + $0x8] sm:$0xff] %v578_v55 }
 0x102   : > { %588 = vst [vmem:[%s208_s27 + $0x18] sm:$0xff] %v580_v56 }
 0x10e   : > { %v501_v57 = vpop.f32.mrb[2].mxu0 }
 0x10f   : > { %v502_v58 = vadd.f32 %v501_v57, %v287_v44  ;;  %v572_v59 = vpop.f32.mrb[2].mxu1  ;;  %v503_v60 = vpop.f32.mrb[3].mxu0 }
 0x110   : > { %v573_v61 = vadd.f32 %v572_v59, %v287_v44  ;;  %v504_v62 = vadd.f32 %v503_v60, %v287_v44  ;;  %v574_v63 = vpop.f32.mrb[3].mxu1 }
 0x111   : > { %v581_v0 = vmax.f32 %v502_v58, 0.0  ;;  %v575_v2 = vadd.f32 %v574_v63, %v287_v44 }
 0x112   : > { %v583_v3 = vmax.f32 %v573_v61, 0.0  ;;  %v582_v4 = vmax.f32 %v504_v62, 0.0 }
 0x113   : > { %589 = vst [vmem:[%s208_s27 + $0x20] sm:$0xff] %v581_v0  ;;  %v584_v5 = vmax.f32 %v575_v2, 0.0 }
 0x114   : > { %591 = vst [vmem:[%s208_s27 + $0x30] sm:$0xff] %v583_v3  ;;  %590 = vst [vmem:[%s208_s27 + $0x28] sm:$0xff] %v582_v4 }
 0x115   : > { %592 = vst [vmem:[%s208_s27 + $0x38] sm:$0xff] %v584_v5 }
 0x116 PF: > { %s13_s14 = sadd.s32 1, %s809_s14   ;;  %s968_s12 = smov %s805_s13 }
 0x117   : > { %p10_p5 = scmp.ge.s32.totalorder %s13_s14, 4   ;;  %s969_s13 = smov %s971_s15 }
 0x119   :  { %12 = sbr.rel (!%p10_p5) target bundleno = 2 (0x2), region = 62 }

// kernel: aggregation_init_forward.14
= control target key start
LH: loop header
LB: loop body
LE: loop exit
PB: predicated region body
PF: predicated region fallthrough
CT: control target
= control target key end

     0   :  { %s814_s12 = smov 0   ;;  %s816_s13 = smov 0   ;;  %s915_s0 = inlined_call_operand.vmem [shape: f32[2,36,1024], index: 0, kind: input, shape index: {}]   ;;  %s916_s1 = inlined_call_operand.vmem [shape: f32[4,36], index: 1, kind: input, shape index: {}]   ;;  %s917_s2 = inlined_call_operand.vmem [shape: f32[4,1], index: 2, kind: input, shape index: {}]   ;;  %s918_s3 = inlined_call_operand.vmem [shape: f32[2,4,1024], index: 3, kind: output, shape index: {}]  }
   0x1   :  { %s818_s14 = smov 0  }
   0x2 LB: > { %s25_s15 = sadd.s32 1, %s786_s13  ;;  %p689_p0 = scmp.ge.s32.totalorder %s790_s14, 1  ;;  %s790_s14 = sphi %s818_s14, %s13_s14   ;;  %s786_s13 = sphi %s816_s13, %s920_s13   ;;  %s782_s12 = sphi %s814_s12, %s919_s12  }
   0x3   : > { %p27_p1 = scmp.ge.s32.totalorder %s25_s15, 2  ;;  %p158_p2 = scmp.lt.s32.totalorder %s790_s14, 3 }
   0x5   : > { %s922_s15 = smov (%p27_p1, %s25_s15), 0  ;;  %p159_p3 = pnand %p689_p0, %p158_p2 }
   0x6   : > { %p191_p4 = scmp.lt.s32.totalorder (!%p159_p3), %s782_s12, 1  ;;  %v792_v0 = vmov (!%p159_p3), 0.0   ;;  %v251_v1 = vld [vmem:[%s917_s2] sm:$0xf] (!%p159_p3)  ;;  %v793_v2 = vmov (!%p159_p3), 0   ;;  %vm261_vm0 = vcmask (!%p159_p3), 1043456  }
   0x7   : > { %162 = sbr.rel (%p159_p3) target bundleno = 264 (0x108), region = 32  ;;  %350 = vmatprep.mubr.f32.mxu0 (!%p159_p3), %v792_v0  ;;  %421 = vmatprep.mubr.f32.mxu1 (!%p159_p3), %v792_v0  ;;  %v210_v34 = vld [vmem:[%s916_s1] sm:$0xf] (!%p159_p3)  ;;  %vm257_vm1 = vcmask (!%p159_p3), 293888  }
   0x8   : > { %767 = vset.pattern.permute.xlu0 (!%p159_p3), %v793_v2 }
   0x9   : > { %254 = vperm.xlu0 (!%p159_p3), %767, %v251_v1  }
   0xe   : > { %s924_s12 = smov (!%p191_p4, %s782_s12), 1 }
   0xf   : > { %s740_s18 = smul.u32 320, %s924_s12  ;;  %s707_s24 = sshll.u32 %s924_s12, 5 }
  0x10   : > { %s208_s27 = scalar_lea.vmem %s918_s3, %s707_s24 }
  0x11   : > { %s843_s21 = scalar_lea.vmem %s915_s0, %s740_s18 }
  0x12   : > { %v212_v3 = vld [vmem:[%s843_s21 + $0x8] sm:$0xff]  ;;  %v214_v5 = vld [vmem:[%s843_s21 + $0x18] sm:$0xff]  ;;  %v211_v8 = vld [vmem:[%s843_s21] sm:$0xff] }
  0x13   : > { %v220_v4 = vld [vmem:[%s843_s21 + $0x48] sm:$0xff]  ;;  %v222_v7 = vld [vmem:[%s843_s21 + $0x58] sm:$0xff]  ;;  %v219_v9 = vld [vmem:[%s843_s21 + $0x40] sm:$0xff] }
  0x14   : > { %v708_v6 = vpack.c.bf16 %v220_v4, %v212_v3  ;;  %v716_v10 = vpack.c.bf16 %v222_v7, %v214_v5  ;;  %v710_v11 = vpack.c.bf16 %v219_v9, %v211_v8  ;;  %v213_v12 = vld [vmem:[%s843_s21 + $0x10] sm:$0xff]  ;;  %v228_v14 = vld [vmem:[%s843_s21 + $0x88] sm:$0xff]  ;;  %v230_v17 = vld [vmem:[%s843_s21 + $0x98] sm:$0xff] }
  0x15   : > { %v221_v13 = vld [vmem:[%s843_s21 + $0x50] sm:$0xff]  ;;  %v236_v16 = vld [vmem:[%s843_s21 + $0xc8] sm:$0xff]  ;;  %v238_v18 = vld [vmem:[%s843_s21 + $0xd8] sm:$0xff] }
  0x16   : > { %709 = vmatprep.subr.bf16.mxu0 %v708_v6  ;;  %v718_v15 = vpack.c.bf16 %v221_v13, %v213_v12  ;;  %717 = vmatprep.subr.bf16.mxu1 %v716_v10  ;;  %v712_v19 = vpack.c.bf16 %v236_v16, %v228_v14  ;;  %v720_v20 = vpack.c.bf16 %v238_v18, %v230_v17  ;;  %v227_v21 = vld [vmem:[%s843_s21 + $0x80] sm:$0xff]  ;;  %v229_v23 = vld [vmem:[%s843_s21 + $0x90] sm:$0xff]  ;;  %v244_v27 = vld [vmem:[%s843_s21 + $0x108] sm:$0xf] }
  0x17   : > { %711 = vmatpush1.bf16.msra.mxu0 %v710_v11  ;;  %v235_v22 = vld [vmem:[%s843_s21 + $0xc0] sm:$0xff]  ;;  %v237_v25 = vld [vmem:[%s843_s21 + $0xd0] sm:$0xff]  ;;  %v246_v28 = vld [vmem:[%s843_s21 + $0x118] sm:$0xf] }
  0x18   : > { %719 = vmatpush1.bf16.msra.mxu1 %v718_v15  ;;  %v714_v24 = vpack.c.bf16 %v235_v22, %v227_v21  ;;  %713 = vmatprep.subr.bf16.mxu0 %v712_v19  ;;  %v722_v26 = vpack.c.bf16 %v237_v25, %v229_v23  ;;  %v216_v29 = vld [vmem:[%s843_s21 + $0x28] sm:$0xff]  ;;  %v243_v30 = vld [vmem:[%s843_s21 + $0x100] sm:$0xf]  ;;  %v218_v32 = vld [vmem:[%s843_s21 + $0x38] sm:$0xff] }
  0x19   : > { %721 = vmatprep.subr.bf16.mxu1 %v720_v20  ;;  %v224_v31 = vld [vmem:[%s843_s21 + $0x68] sm:$0xff]  ;;  %v226_v33 = vld [vmem:[%s843_s21 + $0x78] sm:$0xff]  ;;  %v215_v35 = vld [vmem:[%s843_s21 + $0x20] sm:$0xff] }
  0x1a   : > { %v223_v36 = vld [vmem:[%s843_s21 + $0x60] sm:$0xff]  ;;  %v217_v37 = vld [vmem:[%s843_s21 + $0x30] sm:$0xff]  ;;  %v232_v39 = vld [vmem:[%s843_s21 + $0xa8] sm:$0xff]  ;;  %v724_v42 = vpack.c.bf16 %v224_v31, %v216_v29  ;;  %v732_v45 = vpack.c.bf16 %v226_v33, %v218_v32 }
  0x1b   : > { %715 = vmatpush1.bf16.msra.mxu0 %v714_v24  ;;  %v225_v38 = vld [vmem:[%s843_s21 + $0x70] sm:$0xff]  ;;  %v240_v40 = vld [vmem:[%s843_s21 + $0xe8] sm:$0xff]  ;;  %v234_v43 = vld [vmem:[%s843_s21 + $0xb8] sm:$0xff]  ;;  %v726_v46 = vpack.c.bf16 %v223_v36, %v215_v35 }
  0x1c   : > { %723 = vmatpush1.bf16.msra.mxu1 %v722_v26  ;;  %693 = vmatprep.subr.msk.mxu0 %vm261_vm0, %v244_v27  ;;  %v245_v41 = vld [vmem:[%s843_s21 + $0x110] sm:$0xf]  ;;  %v242_v44 = vld [vmem:[%s843_s21 + $0xf8] sm:$0xff]  ;;  %v734_v47 = vpack.c.bf16 %v225_v38, %v217_v37  ;;  %v728_v48 = vpack.c.bf16 %v240_v40, %v232_v39  ;;  %v231_v49 = vld [vmem:[%s843_s21 + $0xa0] sm:$0xff] }
  0x1d   : > { %696 = vmatprep.subr.msk.mxu1 %vm261_vm0, %v246_v28  ;;  %v239_v50 = vld [vmem:[%s843_s21 + $0xe0] sm:$0xff]  ;;  %v736_v51 = vpack.c.bf16 %v242_v44, %v234_v43  ;;  %v233_v52 = vld [vmem:[%s843_s21 + $0xb0] sm:$0xff]  ;;  %v248_v56 = vld [vmem:[%s843_s21 + $0x128] sm:$0xf] }
  0x1e   : > { %v241_v53 = vld [vmem:[%s843_s21 + $0xf0] sm:$0xff]  ;;  %v730_v54 = vpack.c.bf16 %v239_v50, %v231_v49  ;;  %v250_v57 = vld [vmem:[%s843_s21 + $0x138] sm:$0xf]  ;;  %v247_v58 = vld [vmem:[%s843_s21 + $0x120] sm:$0xf] }
  0x1f   : > { %694 = vmatpush1.msk.msra.mxu0 %vm261_vm0, %v243_v30  ;;  %v738_v55 = vpack.c.bf16 %v241_v53, %v233_v52  ;;  %v249_v59 = vld [vmem:[%s843_s21 + $0x130] sm:$0xf] }
  0x20   : > { %697 = vmatpush1.msk.msra.mxu1 %vm261_vm0, %v245_v41  ;;  %695 = vmatmul.mubr.msk.f32.vlgmr.msra.gmra.mrb[0].mxu0 %vm257_vm1, %v210_v34 }
  0x21   : > { %698 = vmatmul.mubr.msk.f32.vlgmr.msra.gmra.mrb[0].mxu1 %vm257_vm1, %v210_v34  ;;  %725 = vmatprep.subr.bf16.mxu0 %v724_v42 }
  0x22   : > { %733 = vmatprep.subr.bf16.mxu1 %v732_v45  ;;  %727 = vmatpush1.bf16.msra.mxu0 %v726_v46 }
  0x23   : > { %735 = vmatpush1.bf16.msra.mxu1 %v734_v47  ;;  %729 = vmatprep.subr.bf16.mxu0 %v728_v48 }
  0x24   : > { %737 = vmatprep.subr.bf16.mxu1 %v736_v51  ;;  %492 = vmatprep.mubr.f32.mxu0 %v792_v0 }
  0x25   : > { %563 = vmatprep.mubr.f32.mxu1 %v792_v0 }
  0x26   : > { %731 = vmatpush1.bf16.msra.mxu0 %v730_v54 }
  0x27   : > { %739 = vmatpush1.bf16.msra.mxu1 %v738_v55  ;;  %699 = vmatprep.subr.msk.mxu0 %vm261_vm0, %v248_v56 }
  0x28   : > { %702 = vmatprep.subr.msk.mxu1 %vm261_vm0, %v250_v57 }
  0x2a   : > { %700 = vmatpush1.msk.msra.mxu0 %vm261_vm0, %v247_v58 }
  0x2b   : > { %703 = vmatpush1.msk.msra.mxu1 %vm261_vm0, %v249_v59  ;;  %701 = vmatmul.mubr.msk.f32.vlgmr.msra.gmra.mrb[2].mxu0 %vm257_vm1, %v210_v34 }
  0x2c   : > { %704 = vmatmul.mubr.msk.f32.vlgmr.msra.gmra.mrb[2].mxu1 %vm257_vm1, %v210_v34 }
  0x88   : > { %v255_v60 = vpop.permute.xlu0 %254 }
  0xf3   : > { %v352_v61 = vpop.f32.mrb[0].mxu0 }
  0xf4   : > { %v423_v62 = vpop.f32.mrb[0].mxu1  ;;  %v353_v63 = vadd.f32 %v352_v61, %v255_v60  ;;  %v354_v0 = vpop.f32.mrb[1].mxu0 }
  0xf5   : > { %v355_v1 = vadd.f32 %v354_v0, %v255_v60  ;;  %v424_v2 = vadd.f32 %v423_v62, %v255_v60  ;;  %v425_v3 = vpop.f32.mrb[1].mxu1 }
  0xf6   : > { %v570_v4 = vmax.f32 %v353_v63, 0.0  ;;  %v426_v5 = vadd.f32 %v425_v3, %v255_v60 }
  0xf7   : > { %v571_v6 = vmax.f32 %v355_v1, 0.0  ;;  %v572_v7 = vmax.f32 %v424_v2, 0.0 }
  0xf8   : > { %v573_v8 = vmax.f32 %v426_v5, 0.0 }
  0xf9   : > { %v586_v9 = vcombine.low %v570_v4, %v571_v6 }
  0xfa   : > { %v587_v10 = vcombine.low %v572_v7, %v573_v8 }
  0xfb   : > { %594 = vst [vmem:[%s208_s27] sm:$0xff] %v586_v9 }
  0xfc   : > { %595 = vst [vmem:[%s208_s27 + $0x8] sm:$0xff] %v587_v10 }
  0xfe   : > { %v494_v11 = vpop.f32.mrb[2].mxu0 }
  0xff   : > { %v495_v12 = vadd.f32 %v494_v11, %v255_v60  ;;  %v565_v13 = vpop.f32.mrb[2].mxu1  ;;  %v496_v14 = vpop.f32.mrb[3].mxu0 }
 0x100   : > { %v566_v15 = vadd.f32 %v565_v13, %v255_v60  ;;  %v497_v16 = vadd.f32 %v496_v14, %v255_v60  ;;  %v567_v17 = vpop.f32.mrb[3].mxu1 }
 0x101   : > { %v574_v18 = vmax.f32 %v495_v12, 0.0  ;;  %v568_v19 = vadd.f32 %v567_v17, %v255_v60 }
 0x102   : > { %v576_v20 = vmax.f32 %v566_v15, 0.0  ;;  %v575_v21 = vmax.f32 %v497_v16, 0.0 }
 0x103   : > { %v577_v22 = vmax.f32 %v568_v19, 0.0 }
 0x104   : > { %v588_v23 = vcombine.low %v574_v18, %v575_v21 }
 0x105   : > { %v589_v24 = vcombine.low %v576_v20, %v577_v22 }
 0x106   : > { %596 = vst [vmem:[%s208_s27 + $0x10] sm:$0xff] %v588_v23 }
 0x107   : > { %597 = vst [vmem:[%s208_s27 + $0x18] sm:$0xff] %v589_v24 }
 0x108 PF: > { %s13_s14 = sadd.s32 1, %s790_s14   ;;  %s919_s12 = smov %s786_s13 }
 0x109   : > { %p10_p5 = scmp.ge.s32.totalorder %s13_s14, 4   ;;  %s920_s13 = smov %s922_s15 }
 0x10b   :  { %12 = sbr.rel (!%p10_p5) target bundleno = 2 (0x2), region = 62 }

// kernel: aggregation_init_forward.12
= control target key start
LH: loop header
LB: loop body
LE: loop exit
PB: predicated region body
PF: predicated region fallthrough
CT: control target
= control target key end

     0   :  { %s1317_s12 = smov 0   ;;  %s1432_s0 = inlined_call_operand.vmem [shape: f32[2,4,16,16], index: 0, kind: input, shape index: {}]   ;;  %s1433_s1 = inlined_call_operand.vmem [shape: f32[32,16], index: 1, kind: input, shape index: {}]   ;;  %s1434_s2 = inlined_call_operand.vmem [shape: f32[16,32], index: 2, kind: input, shape index: {}]   ;;  %s1435_s3 = inlined_call_operand.vmem [shape: f32[2,4,32,32], index: 3, kind: output, shape index: {}]  }
   0x1 LB: > { %s1058_s13 = sadd.s32 4294967295, %s1295_s12   ;;  %p1062_p0 = scmp.ge.s32.totalorder %s1295_s12, 1  ;;  %s1295_s12 = sphi %s1317_s12, %s13_s12  }
   0x2   : > { %p137_p1 = scmp.lt.s32.totalorder %s1295_s12, 3 }
   0x4   : > { %p138_p2 = pnand %p1062_p0, %p137_p1 }
   0x5   : > { %p161_p3 = scmp.lt.s32.totalorder (!%p138_p2), %s1058_s13, 1  ;;  %v171_v0 = vld [vmem:[%s1433_s1] sm:$0xff] (!%p138_p2)  ;;  %vm177_vm0 = vcmask (!%p138_p2), 130048   ;;  %v276_v2 = vld [vmem:[%s1434_s2 + $0x8] sm:$0xff] (!%p138_p2)  ;;  %v173_v13 = vld [vmem:[%s1433_s1 + $0x10] sm:$0xff] (!%p138_p2)  ;;  %vm374_vm1 = vcmask (!%p138_p2), 261120  }
   0x6   : > { %141 = sbr.rel (%p138_p2) target bundleno = 479 (0x1df), region = 32  ;;  %1173 = vmatprep.mubr.msk.f32.mxu0 (!%p138_p2), %vm177_vm0, %v171_v0  ;;  %v275_v1 = vld [vmem:[%s1434_s2] sm:$0xff] (!%p138_p2)  ;;  %v172_v12 = vld [vmem:[%s1433_s1 + $0x8] sm:$0xff] (!%p138_p2)  ;;  %v174_v15 = vld [vmem:[%s1433_s1 + $0x18] sm:$0xff] (!%p138_p2) }
   0x7   : > { %v1337_v3 = vpack.c.bf16 (!%p138_p2), %v276_v2, %v275_v1 }
   0x9   : > { %1254 = vmatprep.subr.bf16.mxu1 (!%p138_p2), %v1337_v3 }
   0xa   : > { %1256 = vmatpush3.bf16.msra.mxu1 (!%p138_p2), %v1337_v3 }
   0xb   : > { %1262 = vmatprep.subr.bf16.mxu1 (!%p138_p2), %v1337_v3 }
   0xd   : > { %s1437_s13 = smov (!%p161_p3, %s1058_s13), 1 }
   0xe   : > { %s1119_s20 = sshll.u32 %s1437_s13, 6  ;;  %s1120_s30 = sshll.u32 %s1437_s13, 7 }
   0xf   : > { %s165_s23 = scalar_lea.vmem %s1432_s0, %s1119_s20  ;;  %s1395_s6 = scalar_lea.vmem %s1435_s3, %s1120_s30 }
  0x10   : > { %v175_v4 = vld [vmem:[%s165_s23] sm:$0xff]  ;;  %v176_v5 = vld [vmem:[%s165_s23 + $0x8] sm:$0xff]  ;;  %v1075_v6 = vld [vmem:[%s165_s23 + $0x10] sm:$0xff] }
  0x11   : > { %v1249_v7 = vpack.c.bf16 %v176_v5, %v175_v4  ;;  %v1076_v8 = vld [vmem:[%s165_s23 + $0x18] sm:$0xff]  ;;  %v1089_v10 = vld [vmem:[%s165_s23 + $0x20] sm:$0xff]  ;;  %v1090_v11 = vld [vmem:[%s165_s23 + $0x28] sm:$0xff] }
  0x12   : > { %v1257_v9 = vpack.c.bf16 %v1076_v8, %v1075_v6  ;;  %v1265_v14 = vpack.c.bf16 %v1090_v11, %v1089_v10  ;;  %v1103_v16 = vld [vmem:[%s165_s23 + $0x30] sm:$0xff]  ;;  %v1104_v17 = vld [vmem:[%s165_s23 + $0x38] sm:$0xff] }
  0x13   : > { %1250 = vmatprep.subr.bf16.mxu0 %v1249_v7  ;;  %v1273_v18 = vpack.c.bf16 %v1104_v17, %v1103_v16 }
  0x14   : > { %1252 = vmatpush3.bf16.msra.mxu0 %v1249_v7 }
  0x15   : > { %1258 = vmatprep.subr.bf16.mxu0 %v1257_v9 }
  0x17   : > { %1174 = vmatmul.mubr.msk.f32.vlgmr.msra.gmra.mrb[0].mxu0 %vm177_vm0, %v172_v12 }
  0x18   : > { %1260 = vmatpush3.bf16.msra.mxu0 %v1257_v9  ;;  %1176 = vmatprep.mubr.msk.f32.mxu0 %vm177_vm0, %v173_v13 }
  0x19   : > { %1266 = vmatprep.subr.bf16.mxu0 %v1265_v14 }
  0x1b   : > { %1177 = vmatmul.mubr.msk.f32.gmra.mrb[2].mxu0 %vm177_vm0, %v174_v15 }
  0x1c   : > { %1193 = vmatprep.mubr.msk.f32.mxu0 %vm177_vm0, %v171_v0 }
  0x1f   : > { %1194 = vmatmul.mubr.msk.f32.vlgmr.msra.gmra.mrb[4].mxu0 %vm177_vm0, %v172_v12 }
  0x20   : > { %1268 = vmatpush3.bf16.msra.mxu0 %v1265_v14  ;;  %1196 = vmatprep.mubr.msk.f32.mxu0 %vm177_vm0, %v173_v13 }
  0x21   : > { %1274 = vmatprep.subr.bf16.mxu0 %v1273_v18 }
  0x23   : > { %1197 = vmatmul.mubr.msk.f32.gmra.mrb[6].mxu0 %vm177_vm0, %v174_v15 }
  0x24   : > { %1213 = vmatprep.mubr.msk.f32.mxu0 %vm177_vm0, %v171_v0 }
  0x27   : > { %1214 = vmatmul.mubr.msk.f32.vlgmr.msra.gmra.mrb[8].mxu0 %vm177_vm0, %v172_v12 }
  0x28   : > { %1276 = vmatpush3.bf16.msra.mxu0 %v1273_v18  ;;  %1216 = vmatprep.mubr.msk.f32.mxu0 %vm177_vm0, %v173_v13 }
  0x2b   : > { %1217 = vmatmul.mubr.msk.f32.gmra.mrb[10].mxu0 %vm177_vm0, %v174_v15 }
  0x2c   : > { %1233 = vmatprep.mubr.msk.f32.mxu0 %vm177_vm0, %v171_v0 }
  0x2f   : > { %1234 = vmatmul.mubr.msk.f32.vlgmr.msra.gmra.mrb[12].mxu0 %vm177_vm0, %v172_v12 }
  0x30   : > { %1236 = vmatprep.mubr.msk.f32.mxu0 %vm177_vm0, %v173_v13 }
  0x33   : > { %1237 = vmatmul.mubr.msk.f32.gmra.mrb[14].mxu0 %vm177_vm0, %v174_v15 }
  0xea   : > { %v1175_v19 = vpop.f32.mrb[0].mxu0 }
  0xeb   : > { %v256_v20 = vpop.f32.mrb[1].mxu0 }
  0xec   : > { %1183 = vmatprep.mubr.msk.f32.mxu1 %vm177_vm0, %v256_v20 }
  0xed   : > { %1184 = vmatmul.mubr.msk.f32.vlgmr.msra.gmra.mrb[0].mxu1 %vm177_vm0, %v1175_v19 }
  0xee   : > { %v1178_v21 = vpop.f32.mrb[2].mxu0  ;;  %1264 = vmatpush3.bf16.msra.mxu1 %v1337_v3 }
  0xef   : > { %v266_v22 = vpop.f32.mrb[3].mxu0  ;;  %1270 = vmatprep.subr.bf16.mxu1 %v1337_v3 }
  0xf0   : > { %1186 = vmatprep.mubr.msk.f32.mxu1 %vm177_vm0, %v266_v22 }
  0xf1   : > { %1187 = vmatmul.mubr.msk.f32.gmra.mrb[2].mxu1 %vm177_vm0, %v1178_v21 }
  0xf2   : > { %v1195_v23 = vpop.f32.mrb[4].mxu0 }
  0xf3   : > { %v464_v24 = vpop.f32.mrb[5].mxu0 }
  0xf4   : > { %1203 = vmatprep.mubr.msk.f32.mxu1 %vm177_vm0, %v464_v24 }
  0xf5   : > { %1204 = vmatmul.mubr.msk.f32.vlgmr.msra.gmra.mrb[4].mxu1 %vm177_vm0, %v1195_v23 }
  0xf6   : > { %v1198_v25 = vpop.f32.mrb[6].mxu0  ;;  %1272 = vmatpush3.bf16.msra.mxu1 %v1337_v3 }
  0xf7   : > { %v474_v26 = vpop.f32.mrb[7].mxu0  ;;  %1278 = vmatprep.subr.bf16.mxu1 %v1337_v3 }
  0xf8   : > { %1206 = vmatprep.mubr.msk.f32.mxu1 %vm177_vm0, %v474_v26 }
  0xf9   : > { %1207 = vmatmul.mubr.msk.f32.gmra.mrb[6].mxu1 %vm177_vm0, %v1198_v25 }
  0xfa   : > { %v1215_v27 = vpop.f32.mrb[8].mxu0 }
  0xfb   : > { %v672_v28 = vpop.f32.mrb[9].mxu0 }
  0xfc   : > { %1223 = vmatprep.mubr.msk.f32.mxu1 %vm177_vm0, %v672_v28 }
  0xfd   : > { %1224 = vmatmul.mubr.msk.f32.vlgmr.msra.gmra.mrb[8].mxu1 %vm177_vm0, %v1215_v27 }
  0xfe   : > { %v1218_v29 = vpop.f32.mrb[10].mxu0  ;;  %1280 = vmatpush3.bf16.msra.mxu1 %v1337_v3 }
  0xff   : > { %v682_v30 = vpop.f32.mrb[11].mxu0 }
 0x100   : > { %1226 = vmatprep.mubr.msk.f32.mxu1 %vm177_vm0, %v682_v30 }
 0x101   : > { %1227 = vmatmul.mubr.msk.f32.gmra.mrb[10].mxu1 %vm177_vm0, %v1218_v29 }
 0x102   : > { %v1235_v31 = vpop.f32.mrb[12].mxu0 }
 0x103   : > { %v880_v32 = vpop.f32.mrb[13].mxu0 }
 0x104   : > { %1243 = vmatprep.mubr.msk.f32.mxu1 %vm177_vm0, %v880_v32 }
 0x105   : > { %1244 = vmatmul.mubr.msk.f32.vlgmr.msra.gmra.mrb[12].mxu1 %vm177_vm0, %v1235_v31 }
 0x106   : > { %v1238_v33 = vpop.f32.mrb[14].mxu0 }
 0x107   : > { %v890_v34 = vpop.f32.mrb[15].mxu0 }
 0x108   : > { %1246 = vmatprep.mubr.msk.f32.mxu1 %vm177_vm0, %v890_v34 }
 0x109   : > { %1247 = vmatmul.mubr.msk.f32.gmra.mrb[14].mxu1 %vm177_vm0, %v1238_v33 }
 0x1c0   : > { %v1185_v35 = vpop.f32.mrb[0].mxu1 }
 0x1c1   : > { %376 = vst.msk [vmem:[%s1395_s6 + $0x8] sm:$0xff] %vm374_vm1, %v1185_v35  ;;  %v355_v36 = vpop.f32.mrb[1].mxu1 }
 0x1c2   : > { %375 = vst.msk [vmem:[%s1395_s6] sm:$0xff] %vm374_vm1, %v355_v36 }
 0x1c4   : > { %v1188_v37 = vpop.f32.mrb[2].mxu1 }
 0x1c5   : > { %378 = vst.msk [vmem:[%s1395_s6 + $0x18] sm:$0xff] %vm374_vm1, %v1188_v37  ;;  %v365_v38 = vpop.f32.mrb[3].mxu1 }
 0x1c6   : > { %377 = vst.msk [vmem:[%s1395_s6 + $0x10] sm:$0xff] %vm374_vm1, %v365_v38 }
 0x1c8   : > { %v1205_v39 = vpop.f32.mrb[4].mxu1 }
 0x1c9   : > { %1086 = vst.msk [vmem:[%s1395_s6 + $0x28] sm:$0xff] %vm374_vm1, %v1205_v39  ;;  %v563_v40 = vpop.f32.mrb[5].mxu1 }
 0x1ca   : > { %1085 = vst.msk [vmem:[%s1395_s6 + $0x20] sm:$0xff] %vm374_vm1, %v563_v40 }
 0x1cc   : > { %v1208_v41 = vpop.f32.mrb[6].mxu1 }
 0x1cd   : > { %1088 = vst.msk [vmem:[%s1395_s6 + $0x38] sm:$0xff] %vm374_vm1, %v1208_v41  ;;  %v573_v42 = vpop.f32.mrb[7].mxu1 }
 0x1ce   : > { %1087 = vst.msk [vmem:[%s1395_s6 + $0x30] sm:$0xff] %vm374_vm1, %v573_v42 }
 0x1d0   : > { %v1225_v43 = vpop.f32.mrb[8].mxu1 }
 0x1d1   : > { %1100 = vst.msk [vmem:[%s1395_s6 + $0x48] sm:$0xff] %vm374_vm1, %v1225_v43  ;;  %v771_v44 = vpop.f32.mrb[9].mxu1 }
 0x1d2   : > { %1099 = vst.msk [vmem:[%s1395_s6 + $0x40] sm:$0xff] %vm374_vm1, %v771_v44 }
 0x1d4   : > { %v1228_v45 = vpop.f32.mrb[10].mxu1 }
 0x1d5   : > { %1102 = vst.msk [vmem:[%s1395_s6 + $0x58] sm:$0xff] %vm374_vm1, %v1228_v45  ;;  %v781_v46 = vpop.f32.mrb[11].mxu1 }
 0x1d6   : > { %1101 = vst.msk [vmem:[%s1395_s6 + $0x50] sm:$0xff] %vm374_vm1, %v781_v46 }
 0x1d8   : > { %v1245_v47 = vpop.f32.mrb[12].mxu1 }
 0x1d9   : > { %1114 = vst.msk [vmem:[%s1395_s6 + $0x68] sm:$0xff] %vm374_vm1, %v1245_v47  ;;  %v979_v48 = vpop.f32.mrb[13].mxu1 }
 0x1da   : > { %1113 = vst.msk [vmem:[%s1395_s6 + $0x60] sm:$0xff] %vm374_vm1, %v979_v48 }
 0x1dc   : > { %v1248_v49 = vpop.f32.mrb[14].mxu1 }
 0x1dd   : > { %1116 = vst.msk [vmem:[%s1395_s6 + $0x78] sm:$0xff] %vm374_vm1, %v1248_v49  ;;  %v989_v50 = vpop.f32.mrb[15].mxu1 }
 0x1de   : > { %1115 = vst.msk [vmem:[%s1395_s6 + $0x70] sm:$0xff] %vm374_vm1, %v989_v50 }
 0x1df PF: > { %s13_s12 = sadd.s32 1, %s1295_s12  }
 0x1e0   : > { %p10_p4 = scmp.ge.s32.totalorder %s13_s12, 4  }
 0x1e2   :  { %12 = sbr.rel (!%p10_p4) target bundleno = 1 (0x1), region = 68 }

// kernel: aggregation_init_forward.15
= control target key start
LH: loop header
LB: loop body
LE: loop exit
PB: predicated region body
PF: predicated region fallthrough
CT: control target
= control target key end

     0   :  { %s1048_s18 = smov 0   ;;  %s1050_s19 = smov 0   ;;  %s1178_s0 = inlined_call_operand.vmem [shape: f32[2,36,1024], index: 0, kind: input, shape index: {}]   ;;  %s1179_s1 = inlined_call_operand.vmem [shape: f32[4,36], index: 1, kind: input, shape index: {}]   ;;  %s1180_s2 = inlined_call_operand.vmem [shape: f32[4,1], index: 2, kind: input, shape index: {}]   ;;  %s1181_s3 = inlined_call_operand.vmem [shape: f32[2,4,1024], index: 3, kind: input, shape index: {}]   ;;  %s1182_s4 = inlined_call_operand.vmem [shape: f32[2,4,1024], index: 4, kind: input, shape index: {}]   ;;  %s1183_s5 = inlined_call_operand.vmem [shape: f32[2,4,1024], index: 5, kind: output, shape index: {}]  }
   0x1   :  { %s1052_s20 = smov 0  }
   0x2 LB: > { %s27_s21 = sadd.s32 1, %s1010_s19  ;;  %p899_p0 = scmp.ge.s32.totalorder %s1014_s20, 1  ;;  %s1014_s20 = sphi %s1052_s20, %s15_s20   ;;  %s1010_s19 = sphi %s1050_s19, %s1185_s19   ;;  %s1006_s18 = sphi %s1048_s18, %s1184_s18  }
   0x3   : > { %p29_p1 = scmp.ge.s32.totalorder %s27_s21, 2  ;;  %p242_p2 = scmp.lt.s32.totalorder %s1014_s20, 3 }
   0x5   : > { %s1187_s21 = smov (%p29_p1, %s27_s21), 0  ;;  %p243_p3 = pnand %p899_p0, %p242_p2 }
   0x6   : > { %p297_p4 = scmp.lt.s32.totalorder (!%p243_p3), %s1006_s18, 1  ;;  %v1016_v0 = vmov (!%p243_p3), 0.0   ;;  %v377_v1 = vld [vmem:[%s1180_s2] sm:$0xf] (!%p243_p3)  ;;  %v1017_v2 = vmov (!%p243_p3), 0   ;;  %vm387_vm0 = vcmask (!%p243_p3), 1043456  }
   0x7   : > { %246 = sbr.rel (%p243_p3) target bundleno = 268 (0x10c), region = 40  ;;  %476 = vmatprep.mubr.f32.mxu0 (!%p243_p3), %v1016_v0  ;;  %547 = vmatprep.mubr.f32.mxu1 (!%p243_p3), %v1016_v0  ;;  %v336_v34 = vld [vmem:[%s1179_s1] sm:$0xf] (!%p243_p3)  ;;  %vm383_vm1 = vcmask (!%p243_p3), 293888  }
   0x8   : > { %983 = vset.pattern.permute.xlu0 (!%p243_p3), %v1017_v2 }
   0x9   : > { %380 = vperm.xlu0 (!%p243_p3), %983, %v377_v1  }
   0xe   : > { %s1189_s18 = smov (!%p297_p4, %s1006_s18), 1 }
   0xf   : > { %s956_s24 = smul.u32 320, %s1189_s18  ;;  %s1137_s30 = sshll.u32 %s1189_s18, 5 }
  0x10   : > { %s1143_s8 = scalar_lea.vmem %s1181_s3, %s1137_s30  ;;  %s1149_s11 = scalar_lea.vmem %s1182_s4, %s1137_s30 }
  0x11   : > { %s1077_s27 = scalar_lea.vmem %s1178_s0, %s956_s24  ;;  %v704_v61 = vld [vmem:[%s1143_s8] sm:$0xff]  ;;  %v705_v63 = vld [vmem:[%s1143_s8 + $0x8] sm:$0xff]  ;;  %s1159_s14 = scalar_lea.vmem %s1183_s5, %s1137_s30 }
  0x12   : > { %v338_v3 = vld [vmem:[%s1077_s27 + $0x8] sm:$0xff]  ;;  %v340_v5 = vld [vmem:[%s1077_s27 + $0x18] sm:$0xff]  ;;  %v337_v8 = vld [vmem:[%s1077_s27] sm:$0xff] }
  0x13   : > { %v346_v4 = vld [vmem:[%s1077_s27 + $0x48] sm:$0xff]  ;;  %v348_v7 = vld [vmem:[%s1077_s27 + $0x58] sm:$0xff]  ;;  %v345_v9 = vld [vmem:[%s1077_s27 + $0x40] sm:$0xff] }
  0x14   : > { %v924_v6 = vpack.c.bf16 %v346_v4, %v338_v3  ;;  %v932_v10 = vpack.c.bf16 %v348_v7, %v340_v5  ;;  %v926_v11 = vpack.c.bf16 %v345_v9, %v337_v8  ;;  %v339_v12 = vld [vmem:[%s1077_s27 + $0x10] sm:$0xff]  ;;  %v354_v14 = vld [vmem:[%s1077_s27 + $0x88] sm:$0xff]  ;;  %v356_v17 = vld [vmem:[%s1077_s27 + $0x98] sm:$0xff]  ;;  %v712_v5 = vcombine.high %v704_v61, %v704_v61 }
  0x15   : > { %v347_v13 = vld [vmem:[%s1077_s27 + $0x50] sm:$0xff]  ;;  %v362_v16 = vld [vmem:[%s1077_s27 + $0xc8] sm:$0xff]  ;;  %v364_v18 = vld [vmem:[%s1077_s27 + $0xd8] sm:$0xff] }
  0x16   : > { %925 = vmatprep.subr.bf16.mxu0 %v924_v6  ;;  %v934_v15 = vpack.c.bf16 %v347_v13, %v339_v12  ;;  %933 = vmatprep.subr.bf16.mxu1 %v932_v10  ;;  %v928_v19 = vpack.c.bf16 %v362_v16, %v354_v14  ;;  %v936_v20 = vpack.c.bf16 %v364_v18, %v356_v17  ;;  %v353_v21 = vld [vmem:[%s1077_s27 + $0x80] sm:$0xff]  ;;  %v355_v23 = vld [vmem:[%s1077_s27 + $0x90] sm:$0xff]  ;;  %v370_v27 = vld [vmem:[%s1077_s27 + $0x108] sm:$0xf] }
  0x17   : > { %927 = vmatpush1.bf16.msra.mxu0 %v926_v11  ;;  %v361_v22 = vld [vmem:[%s1077_s27 + $0xc0] sm:$0xff]  ;;  %v363_v25 = vld [vmem:[%s1077_s27 + $0xd0] sm:$0xff]  ;;  %v372_v28 = vld [vmem:[%s1077_s27 + $0x118] sm:$0xf]  ;;  %v713_v11 = vcombine.high %v705_v63, %v705_v63 }
  0x18   : > { %935 = vmatpush1.bf16.msra.mxu1 %v934_v15  ;;  %v930_v24 = vpack.c.bf16 %v361_v22, %v353_v21  ;;  %929 = vmatprep.subr.bf16.mxu0 %v928_v19  ;;  %v938_v26 = vpack.c.bf16 %v363_v25, %v355_v23  ;;  %v342_v29 = vld [vmem:[%s1077_s27 + $0x28] sm:$0xff]  ;;  %v369_v30 = vld [vmem:[%s1077_s27 + $0x100] sm:$0xf]  ;;  %v344_v32 = vld [vmem:[%s1077_s27 + $0x38] sm:$0xff] }
  0x19   : > { %937 = vmatprep.subr.bf16.mxu1 %v936_v20  ;;  %v350_v31 = vld [vmem:[%s1077_s27 + $0x68] sm:$0xff]  ;;  %v352_v33 = vld [vmem:[%s1077_s27 + $0x78] sm:$0xff]  ;;  %v341_v35 = vld [vmem:[%s1077_s27 + $0x20] sm:$0xff] }
  0x1a   : > { %v349_v36 = vld [vmem:[%s1077_s27 + $0x60] sm:$0xff]  ;;  %v343_v37 = vld [vmem:[%s1077_s27 + $0x30] sm:$0xff]  ;;  %v358_v39 = vld [vmem:[%s1077_s27 + $0xa8] sm:$0xff]  ;;  %v940_v42 = vpack.c.bf16 %v350_v31, %v342_v29  ;;  %v948_v45 = vpack.c.bf16 %v352_v33, %v344_v32 }
  0x1b   : > { %931 = vmatpush1.bf16.msra.mxu0 %v930_v24  ;;  %v351_v38 = vld [vmem:[%s1077_s27 + $0x70] sm:$0xff]  ;;  %v366_v40 = vld [vmem:[%s1077_s27 + $0xe8] sm:$0xff]  ;;  %v360_v43 = vld [vmem:[%s1077_s27 + $0xb8] sm:$0xff]  ;;  %v942_v46 = vpack.c.bf16 %v349_v36, %v341_v35 }
  0x1c   : > { %939 = vmatpush1.bf16.msra.mxu1 %v938_v26  ;;  %907 = vmatprep.subr.msk.mxu0 %vm387_vm0, %v370_v27  ;;  %v371_v41 = vld [vmem:[%s1077_s27 + $0x110] sm:$0xf]  ;;  %v368_v44 = vld [vmem:[%s1077_s27 + $0xf8] sm:$0xff]  ;;  %v950_v47 = vpack.c.bf16 %v351_v38, %v343_v37  ;;  %v944_v48 = vpack.c.bf16 %v366_v40, %v358_v39  ;;  %v357_v49 = vld [vmem:[%s1077_s27 + $0xa0] sm:$0xff] }
  0x1d   : > { %910 = vmatprep.subr.msk.mxu1 %vm387_vm0, %v372_v28  ;;  %v365_v50 = vld [vmem:[%s1077_s27 + $0xe0] sm:$0xff]  ;;  %v952_v51 = vpack.c.bf16 %v368_v44, %v360_v43  ;;  %v359_v52 = vld [vmem:[%s1077_s27 + $0xb0] sm:$0xff]  ;;  %v374_v56 = vld [vmem:[%s1077_s27 + $0x128] sm:$0xf] }
  0x1e   : > { %v367_v53 = vld [vmem:[%s1077_s27 + $0xf0] sm:$0xff]  ;;  %v946_v54 = vpack.c.bf16 %v365_v50, %v357_v49  ;;  %v376_v57 = vld [vmem:[%s1077_s27 + $0x138] sm:$0xf]  ;;  %v373_v58 = vld [vmem:[%s1077_s27 + $0x120] sm:$0xf] }
  0x1f   : > { %908 = vmatpush1.msk.msra.mxu0 %vm387_vm0, %v369_v30  ;;  %v954_v55 = vpack.c.bf16 %v367_v53, %v359_v52  ;;  %v375_v59 = vld [vmem:[%s1077_s27 + $0x130] sm:$0xf]  ;;  %v728_v3 = vld [vmem:[%s1149_s11] sm:$0xff]  ;;  %v729_v8 = vld [vmem:[%s1149_s11 + $0x8] sm:$0xff] }
  0x20   : > { %911 = vmatpush1.msk.msra.mxu1 %vm387_vm0, %v371_v41  ;;  %909 = vmatmul.mubr.msk.f32.vlgmr.msra.gmra.mrb[0].mxu0 %vm383_vm1, %v336_v34  ;;  %v736_v13 = vcombine.high %v728_v3, %v728_v3  ;;  %v737_v17 = vcombine.high %v729_v8, %v729_v8  ;;  %v706_v26 = vld [vmem:[%s1143_s8 + $0x10] sm:$0xff]  ;;  %v707_v29 = vld [vmem:[%s1143_s8 + $0x18] sm:$0xff] }
  0x21   : > { %912 = vmatmul.mubr.msk.f32.vlgmr.msra.gmra.mrb[0].mxu1 %vm383_vm1, %v336_v34  ;;  %941 = vmatprep.subr.bf16.mxu0 %v940_v42  ;;  %v730_v31 = vld [vmem:[%s1149_s11 + $0x10] sm:$0xff]  ;;  %v731_v35 = vld [vmem:[%s1149_s11 + $0x18] sm:$0xff]  ;;  %v714_v37 = vcombine.high %v706_v26, %v706_v26  ;;  %v715_v41 = vcombine.high %v707_v29, %v707_v29 }
  0x22   : > { %949 = vmatprep.subr.bf16.mxu1 %v948_v45  ;;  %943 = vmatpush1.bf16.msra.mxu0 %v942_v46  ;;  %v738_v44 = vcombine.high %v730_v31, %v730_v31 }
  0x23   : > { %951 = vmatpush1.bf16.msra.mxu1 %v950_v47  ;;  %945 = vmatprep.subr.bf16.mxu0 %v944_v48  ;;  %v739_v47 = vcombine.high %v731_v35, %v731_v35 }
  0x24   : > { %953 = vmatprep.subr.bf16.mxu1 %v952_v51  ;;  %618 = vmatprep.mubr.f32.mxu0 %v1016_v0 }
  0x25   : > { %689 = vmatprep.mubr.f32.mxu1 %v1016_v0 }
  0x26   : > { %947 = vmatpush1.bf16.msra.mxu0 %v946_v54 }
  0x27   : > { %955 = vmatpush1.bf16.msra.mxu1 %v954_v55  ;;  %913 = vmatprep.subr.msk.mxu0 %vm387_vm0, %v374_v56 }
  0x28   : > { %916 = vmatprep.subr.msk.mxu1 %vm387_vm0, %v376_v57 }
  0x2a   : > { %914 = vmatpush1.msk.msra.mxu0 %vm387_vm0, %v373_v58 }
  0x2b   : > { %917 = vmatpush1.msk.msra.mxu1 %vm387_vm0, %v375_v59  ;;  %915 = vmatmul.mubr.msk.f32.vlgmr.msra.gmra.mrb[2].mxu0 %vm383_vm1, %v336_v34 }
  0x2c   : > { %918 = vmatmul.mubr.msk.f32.vlgmr.msra.gmra.mrb[2].mxu1 %vm383_vm1, %v336_v34 }
  0x88   : > { %v381_v60 = vpop.permute.xlu0 %380 }
  0xf3   : > { %v478_v62 = vpop.f32.mrb[0].mxu0 }
  0xf4   : > { %v549_v0 = vpop.f32.mrb[0].mxu1  ;;  %v479_v1 = vadd.f32 %v478_v62, %v381_v60  ;;  %v480_v2 = vpop.f32.mrb[1].mxu0 }
  0xf5   : > { %v481_v4 = vadd.f32 %v480_v2, %v381_v60  ;;  %v550_v6 = vadd.f32 %v549_v0, %v381_v60  ;;  %v551_v7 = vpop.f32.mrb[1].mxu1 }
  0xf6   : > { %v696_v9 = vmax.f32 %v479_v1, 0.0  ;;  %v552_v10 = vadd.f32 %v551_v7, %v381_v60 }
  0xf7   : > { %v697_v12 = vmax.f32 %v481_v4, 0.0  ;;  %v698_v14 = vmax.f32 %v550_v6, 0.0 }
  0xf8   : > { %v720_v15 = vmul.f32 %v704_v61, %v696_v9  ;;  %v699_v16 = vmax.f32 %v552_v10, 0.0 }
  0xf9   : > { %v721_v18 = vmul.f32 %v712_v5, %v697_v12  ;;  %v722_v19 = vmul.f32 %v705_v63, %v698_v14 }
  0xfa   : > { %v744_v20 = vmul.f32 %v728_v3, %v720_v15  ;;  %v723_v21 = vmul.f32 %v713_v11, %v699_v16 }
  0xfb   : > { %v745_v22 = vmul.f32 %v736_v13, %v721_v18  ;;  %v746_v23 = vmul.f32 %v729_v8, %v722_v19 }
  0xfc   : > { %v747_v24 = vmul.f32 %v737_v17, %v723_v21 }
  0xfd   : > { %v760_v25 = vcombine.low %v744_v20, %v745_v22 }
  0xfe   : > { %v761_v27 = vcombine.low %v746_v23, %v747_v24  ;;  %v620_v28 = vpop.f32.mrb[2].mxu0 }
  0xff   : > { %768 = vst [vmem:[%s1159_s14] sm:$0xff] %v760_v25  ;;  %v621_v30 = vadd.f32 %v620_v28, %v381_v60  ;;  %v691_v32 = vpop.f32.mrb[2].mxu1  ;;  %v622_v33 = vpop.f32.mrb[3].mxu0 }
 0x100   : > { %769 = vst [vmem:[%s1159_s14 + $0x8] sm:$0xff] %v761_v27  ;;  %v692_v34 = vadd.f32 %v691_v32, %v381_v60  ;;  %v623_v36 = vadd.f32 %v622_v33, %v381_v60  ;;  %v693_v38 = vpop.f32.mrb[3].mxu1 }
 0x101   : > { %v700_v39 = vmax.f32 %v621_v30, 0.0  ;;  %v694_v40 = vadd.f32 %v693_v38, %v381_v60 }
 0x102   : > { %v702_v42 = vmax.f32 %v692_v34, 0.0  ;;  %v701_v43 = vmax.f32 %v623_v36, 0.0 }
 0x103   : > { %v724_v45 = vmul.f32 %v706_v26, %v700_v39  ;;  %v703_v46 = vmax.f32 %v694_v40, 0.0 }
 0x104   : > { %v726_v48 = vmul.f32 %v707_v29, %v702_v42  ;;  %v725_v49 = vmul.f32 %v714_v37, %v701_v43 }
 0x105   : > { %v748_v50 = vmul.f32 %v730_v31, %v724_v45  ;;  %v727_v51 = vmul.f32 %v715_v41, %v703_v46 }
 0x106   : > { %v750_v52 = vmul.f32 %v731_v35, %v726_v48  ;;  %v749_v53 = vmul.f32 %v738_v44, %v725_v49 }
 0x107   : > { %v751_v54 = vmul.f32 %v739_v47, %v727_v51 }
 0x108   : > { %v762_v55 = vcombine.low %v748_v50, %v749_v53 }
 0x109   : > { %v763_v56 = vcombine.low %v750_v52, %v751_v54 }
 0x10a   : > { %770 = vst [vmem:[%s1159_s14 + $0x10] sm:$0xff] %v762_v55 }
 0x10b   : > { %771 = vst [vmem:[%s1159_s14 + $0x18] sm:$0xff] %v763_v56 }
 0x10c PF: > { %s15_s20 = sadd.s32 1, %s1014_s20   ;;  %s1184_s18 = smov %s1010_s19 }
 0x10d   : > { %p12_p5 = scmp.ge.s32.totalorder %s15_s20, 4   ;;  %s1185_s19 = smov %s1187_s21 }
 0x10f   :  { %14 = sbr.rel (!%p12_p5) target bundleno = 2 (0x2), region = 76 }

// kernel: aggregation_init_forward.20
= control target key start
LH: loop header
LB: loop body
LE: loop exit
PB: predicated region body
PF: predicated region fallthrough
CT: control target
= control target key end

     0   :  { %s1469_s18 = smov 0   ;;  %s1471_s19 = smov 0   ;;  %s1714_s0 = inlined_call_operand.vmem [shape: f32[2,36,1024], index: 0, kind: input, shape index: {}]   ;;  %s1715_s1 = inlined_call_operand.vmem [shape: f32[2,72,1024], index: 1, kind: input, shape index: {}]   ;;  %s1716_s2 = inlined_call_operand.vmem [shape: f32[12,36], index: 2, kind: input, shape index: {}]   ;;  %s1717_s3 = inlined_call_operand.vmem [shape: f32[12,72], index: 3, kind: input, shape index: {}]   ;;  %s1718_s4 = inlined_call_operand.vmem [shape: f32[12,1], index: 4, kind: input, shape index: {}]   ;;  %s1719_s5 = inlined_call_operand.vmem [shape: f32[2,12,1024], index: 5, kind: output, shape index: {}]  }
   0x1   :  { %s1473_s20 = smov 0  }
   0x2 LB: > { %s27_s21 = sadd.s32 1, %s1431_s19  ;;  %p1240_p0 = scmp.ge.s32.totalorder %s1435_s20, 1  ;;  %s1435_s20 = sphi %s1473_s20, %s15_s20   ;;  %s1431_s19 = sphi %s1471_s19, %s1721_s19   ;;  %s1427_s18 = sphi %s1469_s18, %s1720_s18  }
   0x3   : > { %p29_p1 = scmp.ge.s32.totalorder %s27_s21, 2  ;;  %p225_p2 = scmp.lt.s32.totalorder %s1435_s20, 3 }
   0x5   : > { %s1723_s21 = smov (%p29_p1, %s27_s21), 0  ;;  %p226_p3 = pnand %p1240_p0, %p225_p2 }
   0x6   : > { %p271_p4 = scmp.lt.s32.totalorder (!%p226_p3), %s1427_s18, 1  ;;  %v1437_v0 = vmov (!%p226_p3), 0.0   ;;  %v1438_v1 = vmov (!%p226_p3), 0   ;;  %v1071_v2 = vld [vmem:[%s1718_s4] sm:$0xff] (!%p226_p3)  ;;  %v1072_v3 = vld [vmem:[%s1718_s4 + $0x8] sm:$0xf] (!%p226_p3) }
   0x7   : > { %229 = sbr.rel (%p226_p3) target bundleno = 304 (0x130), region = 40  ;;  %487 = vmatprep.mubr.f32.mxu0 (!%p226_p3), %v1437_v0  ;;  %564 = vmatprep.mubr.f32.mxu1 (!%p226_p3), %v1437_v0  ;;  %vm416_vm0 = vcmask (!%p226_p3), 588800   ;;  %vm738_vm1 = vcmask (!%p226_p3), 1043456   ;;  %vm731_vm2 = vcmask (!%p226_p3), 293888  }
   0x8   : > { %1412 = vset.pattern.permute.xlu0 (!%p226_p3), %v1438_v1 }
   0x9   : > { %1075 = vperm.xlu0 (!%p226_p3), %1412, %v1071_v2  }
   0xd   : > { %1080 = vperm.xlu0 (!%p226_p3), %1412, %v1072_v3  }
   0xe   : > { %s1725_s18 = smov (!%p271_p4, %s1427_s18), 1 }
   0xf   : > { %s1385_s24 = smul.u32 576, %s1725_s18  ;;  %s1271_s17 = sshll.u32 %s1725_s18, 7 }
  0x10   : > { %s1384_s9 = smul.u32 320, %s1725_s18 }
  0x11   : > { %s1501_s29 = scalar_lea.vmem %s1715_s1, %s1385_s24  ;;  %s1687_s24 = scalar_lea.vmem %s1719_s5, %s1271_s17 }
  0x12   : > { %v345_v4 = vld [vmem:[%s1501_s29 + $0x8] sm:$0xff]  ;;  %v347_v6 = vld [vmem:[%s1501_s29 + $0x18] sm:$0xff]  ;;  %v344_v9 = vld [vmem:[%s1501_s29] sm:$0xff]  ;;  %s1597_s12 = scalar_lea.vmem %s1714_s0, %s1384_s9 }
  0x13   : > { %v353_v5 = vld [vmem:[%s1501_s29 + $0x48] sm:$0xff]  ;;  %v355_v8 = vld [vmem:[%s1501_s29 + $0x58] sm:$0xff]  ;;  %v352_v10 = vld [vmem:[%s1501_s29 + $0x40] sm:$0xff] }
  0x14   : > { %v1272_v7 = vpack.c.bf16 %v353_v5, %v345_v4  ;;  %v1288_v11 = vpack.c.bf16 %v355_v8, %v347_v6  ;;  %v1274_v12 = vpack.c.bf16 %v352_v10, %v344_v9  ;;  %v346_v13 = vld [vmem:[%s1501_s29 + $0x10] sm:$0xff]  ;;  %v361_v15 = vld [vmem:[%s1501_s29 + $0x88] sm:$0xff]  ;;  %v363_v18 = vld [vmem:[%s1501_s29 + $0x98] sm:$0xff] }
  0x15   : > { %v354_v14 = vld [vmem:[%s1501_s29 + $0x50] sm:$0xff]  ;;  %v369_v17 = vld [vmem:[%s1501_s29 + $0xc8] sm:$0xff]  ;;  %v371_v19 = vld [vmem:[%s1501_s29 + $0xd8] sm:$0xff] }
  0x16   : > { %1273 = vmatprep.subr.bf16.mxu0 %v1272_v7  ;;  %v1290_v16 = vpack.c.bf16 %v354_v14, %v346_v13  ;;  %1289 = vmatprep.subr.bf16.mxu1 %v1288_v11  ;;  %v1276_v20 = vpack.c.bf16 %v369_v17, %v361_v15  ;;  %v1292_v21 = vpack.c.bf16 %v371_v19, %v363_v18  ;;  %v360_v22 = vld [vmem:[%s1501_s29 + $0x80] sm:$0xff]  ;;  %v362_v24 = vld [vmem:[%s1501_s29 + $0x90] sm:$0xff]  ;;  %v377_v27 = vld [vmem:[%s1501_s29 + $0x108] sm:$0xff] }
  0x17   : > { %1275 = vmatpush1.bf16.msra.mxu0 %v1274_v12  ;;  %v368_v23 = vld [vmem:[%s1501_s29 + $0xc0] sm:$0xff]  ;;  %v370_v26 = vld [vmem:[%s1501_s29 + $0xd0] sm:$0xff]  ;;  %v385_v28 = vld [vmem:[%s1501_s29 + $0x148] sm:$0xff] }
  0x18   : > { %1291 = vmatpush1.bf16.msra.mxu1 %v1290_v16  ;;  %v1278_v25 = vpack.c.bf16 %v368_v23, %v360_v22  ;;  %1277 = vmatprep.subr.bf16.mxu0 %v1276_v20  ;;  %v1294_v29 = vpack.c.bf16 %v370_v26, %v362_v24  ;;  %v1280_v30 = vpack.c.bf16 %v385_v28, %v377_v27  ;;  %v379_v31 = vld [vmem:[%s1501_s29 + $0x118] sm:$0xff]  ;;  %v376_v33 = vld [vmem:[%s1501_s29 + $0x100] sm:$0xff]  ;;  %v378_v36 = vld [vmem:[%s1501_s29 + $0x110] sm:$0xff] }
  0x19   : > { %1293 = vmatprep.subr.bf16.mxu1 %v1292_v21  ;;  %v387_v32 = vld [vmem:[%s1501_s29 + $0x158] sm:$0xff]  ;;  %v384_v35 = vld [vmem:[%s1501_s29 + $0x140] sm:$0xff]  ;;  %v386_v37 = vld [vmem:[%s1501_s29 + $0x150] sm:$0xff] }
  0x1a   : > { %v1296_v34 = vpack.c.bf16 %v387_v32, %v379_v31  ;;  %v1282_v38 = vpack.c.bf16 %v384_v35, %v376_v33  ;;  %v393_v39 = vld [vmem:[%s1501_s29 + $0x188] sm:$0xff]  ;;  %v395_v41 = vld [vmem:[%s1501_s29 + $0x198] sm:$0xff]  ;;  %v1298_v42 = vpack.c.bf16 %v386_v37, %v378_v36  ;;  %v392_v45 = vld [vmem:[%s1501_s29 + $0x180] sm:$0xff] }
  0x1b   : > { %1279 = vmatpush1.bf16.msra.mxu0 %v1278_v25  ;;  %v401_v40 = vld [vmem:[%s1501_s29 + $0x1c8] sm:$0xff]  ;;  %v403_v44 = vld [vmem:[%s1501_s29 + $0x1d8] sm:$0xff]  ;;  %v400_v46 = vld [vmem:[%s1501_s29 + $0x1c0] sm:$0xff] }
  0x1c   : > { %1295 = vmatpush1.bf16.msra.mxu1 %v1294_v29  ;;  %1281 = vmatprep.subr.bf16.mxu0 %v1280_v30  ;;  %v1284_v43 = vpack.c.bf16 %v401_v40, %v393_v39  ;;  %v1300_v47 = vpack.c.bf16 %v403_v44, %v395_v41  ;;  %v394_v48 = vld [vmem:[%s1501_s29 + $0x190] sm:$0xff]  ;;  %v1286_v50 = vpack.c.bf16 %v400_v46, %v392_v45  ;;  %v409_v52 = vld [vmem:[%s1501_s29 + $0x208] sm:$0xff]  ;;  %v411_v53 = vld [vmem:[%s1501_s29 + $0x218] sm:$0xff] }
  0x1d   : > { %1297 = vmatprep.subr.bf16.mxu1 %v1296_v34  ;;  %v402_v49 = vld [vmem:[%s1501_s29 + $0x1d0] sm:$0xff]  ;;  %v349_v54 = vld [vmem:[%s1501_s29 + $0x28] sm:$0xff]  ;;  %v408_v56 = vld [vmem:[%s1501_s29 + $0x200] sm:$0xff] }
  0x1e   : > { %v1302_v51 = vpack.c.bf16 %v402_v49, %v394_v48  ;;  %v357_v55 = vld [vmem:[%s1501_s29 + $0x68] sm:$0xff]  ;;  %v351_v57 = vld [vmem:[%s1501_s29 + $0x38] sm:$0xff]  ;;  %v348_v59 = vld [vmem:[%s1501_s29 + $0x20] sm:$0xff] }
  0x1f   : > { %1283 = vmatpush1.bf16.msra.mxu0 %v1282_v38  ;;  %v359_v58 = vld [vmem:[%s1501_s29 + $0x78] sm:$0xff]  ;;  %v356_v60 = vld [vmem:[%s1501_s29 + $0x60] sm:$0xff]  ;;  %v350_v61 = vld [vmem:[%s1501_s29 + $0x30] sm:$0xff]  ;;  %v1304_v62 = vpack.c.bf16 %v357_v55, %v349_v54 }
  0x20   : > { %1299 = vmatpush1.bf16.msra.mxu1 %v1298_v42  ;;  %1285 = vmatprep.subr.bf16.mxu0 %v1284_v43  ;;  %v358_v63 = vld [vmem:[%s1501_s29 + $0x70] sm:$0xff]  ;;  %v365_v1 = vld [vmem:[%s1501_s29 + $0xa8] sm:$0xff]  ;;  %v1320_v4 = vpack.c.bf16 %v359_v58, %v351_v57  ;;  %v367_v5 = vld [vmem:[%s1501_s29 + $0xb8] sm:$0xff]  ;;  %v1306_v8 = vpack.c.bf16 %v356_v60, %v348_v59 }
  0x21   : > { %1301 = vmatprep.subr.bf16.mxu1 %v1300_v47  ;;  %v373_v2 = vld [vmem:[%s1501_s29 + $0xe8] sm:$0xff]  ;;  %v410_v3 = vld [vmem:[%s1501_s29 + $0x210] sm:$0xff]  ;;  %v375_v6 = vld [vmem:[%s1501_s29 + $0xf8] sm:$0xff]  ;;  %v1322_v9 = vpack.c.bf16 %v358_v63, %v350_v61 }
  0x22   : > { %v1554_v7 = vld [vmem:[%s1717_s3] sm:$0xff]  ;;  %v1308_v10 = vpack.c.bf16 %v373_v2, %v365_v1  ;;  %v366_v13 = vld [vmem:[%s1501_s29 + $0xb0] sm:$0xff]  ;;  %v1324_v14 = vpack.c.bf16 %v375_v6, %v367_v5  ;;  %v381_v16 = vld [vmem:[%s1501_s29 + $0x128] sm:$0xff] }
  0x23   : > { %1287 = vmatpush1.bf16.msra.mxu0 %v1286_v50  ;;  %v364_v11 = vld [vmem:[%s1501_s29 + $0xa0] sm:$0xff]  ;;  %v374_v15 = vld [vmem:[%s1501_s29 + $0xf0] sm:$0xff]  ;;  %v389_v17 = vld [vmem:[%s1501_s29 + $0x168] sm:$0xff] }
  0x24   : > { %1303 = vmatpush1.bf16.msra.mxu1 %v1302_v51  ;;  %439 = vmatprep.subr.mxu0 %v409_v52  ;;  %v372_v12 = vld [vmem:[%s1501_s29 + $0xe0] sm:$0xff]  ;;  %v383_v18 = vld [vmem:[%s1501_s29 + $0x138] sm:$0xff]  ;;  %v1571_v21 = vld [vmem:[%s1717_s3 + $0x8] sm:$0xf]  ;;  %v1326_v22 = vpack.c.bf16 %v374_v15, %v366_v13  ;;  %v1312_v23 = vpack.c.bf16 %v389_v17, %v381_v16 }
  0x25   : > { %516 = vmatprep.subr.mxu1 %v411_v53  ;;  %v391_v19 = vld [vmem:[%s1501_s29 + $0x178] sm:$0xff]  ;;  %v1310_v20 = vpack.c.bf16 %v372_v12, %v364_v11  ;;  %v380_v24 = vld [vmem:[%s1501_s29 + $0x120] sm:$0xff]  ;;  %v382_v26 = vld [vmem:[%s1501_s29 + $0x130] sm:$0xff] }
  0x26   : > { %v388_v25 = vld [vmem:[%s1501_s29 + $0x160] sm:$0xff]  ;;  %v1328_v27 = vpack.c.bf16 %v391_v19, %v383_v18  ;;  %v390_v28 = vld [vmem:[%s1501_s29 + $0x170] sm:$0xff]  ;;  %v397_v29 = vld [vmem:[%s1501_s29 + $0x1a8] sm:$0xff] }
  0x27   : > { %440 = vmatpush1.msra.mxu0 %v408_v56  ;;  %v405_v30 = vld [vmem:[%s1501_s29 + $0x1e8] sm:$0xff]  ;;  %v399_v31 = vld [vmem:[%s1501_s29 + $0x1b8] sm:$0xff]  ;;  %v1314_v33 = vpack.c.bf16 %v388_v25, %v380_v24  ;;  %v1330_v34 = vpack.c.bf16 %v390_v28, %v382_v26  ;;  %v396_v36 = vld [vmem:[%s1501_s29 + $0x1a0] sm:$0xff] }
  0x28   : > { %517 = vmatpush1.msra.mxu1 %v410_v3  ;;  %1305 = vmatprep.subr.bf16.mxu0 %v1304_v62  ;;  %v407_v32 = vld [vmem:[%s1501_s29 + $0x1f8] sm:$0xff]  ;;  %v1316_v35 = vpack.c.bf16 %v405_v30, %v397_v29  ;;  %v404_v37 = vld [vmem:[%s1501_s29 + $0x1e0] sm:$0xff]  ;;  %v398_v39 = vld [vmem:[%s1501_s29 + $0x1b0] sm:$0xff] }
  0x29   : > { %1321 = vmatprep.subr.bf16.mxu1 %v1320_v4  ;;  %1245 = vmatmul.mubr.msk.f32.vlgmr.msra.gmra.mrb[0].mxu0 %vm416_vm0, %v1554_v7  ;;  %v1332_v38 = vpack.c.bf16 %v407_v32, %v399_v31  ;;  %v406_v40 = vld [vmem:[%s1501_s29 + $0x1f0] sm:$0xff]  ;;  %v1318_v41 = vpack.c.bf16 %v404_v37, %v396_v36  ;;  %v413_v43 = vld [vmem:[%s1501_s29 + $0x228] sm:$0xff]  ;;  %v415_v44 = vld [vmem:[%s1501_s29 + $0x238] sm:$0xff] }
  0x2a   : > { %1247 = vmatmul.mubr.msk.f32.vlgmr.msra.gmra.mrb[0].mxu1 %vm416_vm0, %v1554_v7  ;;  %1307 = vmatpush1.bf16.msra.mxu0 %v1306_v8  ;;  %v1334_v42 = vpack.c.bf16 %v406_v40, %v398_v39  ;;  %v303_v45 = vld [vmem:[%s1597_s12 + $0x8] sm:$0xff]  ;;  %v412_v47 = vld [vmem:[%s1501_s29 + $0x220] sm:$0xff]  ;;  %v305_v48 = vld [vmem:[%s1597_s12 + $0x18] sm:$0xff] }
  0x2b   : > { %1323 = vmatpush1.bf16.msra.mxu1 %v1322_v9  ;;  %1309 = vmatprep.subr.bf16.mxu0 %v1308_v10  ;;  %v311_v46 = vld [vmem:[%s1597_s12 + $0x48] sm:$0xff]  ;;  %v313_v49 = vld [vmem:[%s1597_s12 + $0x58] sm:$0xff]  ;;  %v302_v50 = vld [vmem:[%s1597_s12] sm:$0xff] }
  0x2c   : > { %1325 = vmatprep.subr.bf16.mxu1 %v1324_v14  ;;  %493 = vmatprep.mubr.f32.mxu0 %v1437_v0  ;;  %v310_v51 = vld [vmem:[%s1597_s12 + $0x40] sm:$0xff]  ;;  %v304_v52 = vld [vmem:[%s1597_s12 + $0x10] sm:$0xff]  ;;  %v1336_v53 = vpack.c.bf16 %v311_v46, %v303_v45  ;;  %v319_v55 = vld [vmem:[%s1597_s12 + $0x88] sm:$0xff]  ;;  %v1344_v58 = vpack.c.bf16 %v313_v49, %v305_v48 }
  0x2d   : > { %570 = vmatprep.mubr.f32.mxu1 %v1437_v0  ;;  %1246 = vmatmul.mubr.msk.f32.gmra.mrb[2].mxu0 %vm416_vm0, %v1571_v21  ;;  %v312_v54 = vld [vmem:[%s1597_s12 + $0x50] sm:$0xff]  ;;  %v327_v56 = vld [vmem:[%s1597_s12 + $0xc8] sm:$0xff]  ;;  %v321_v59 = vld [vmem:[%s1597_s12 + $0x98] sm:$0xff]  ;;  %v1338_v61 = vpack.c.bf16 %v310_v51, %v302_v50 }
  0x2e   : > { %1311 = vmatpush1.bf16.msra.mxu0 %v1310_v20  ;;  %1248 = vmatmul.mubr.msk.f32.gmra.mrb[2].mxu1 %vm416_vm0, %v1571_v21  ;;  %v414_v57 = vld [vmem:[%s1501_s29 + $0x230] sm:$0xff]  ;;  %v329_v60 = vld [vmem:[%s1597_s12 + $0xd8] sm:$0xff]  ;;  %v1346_v62 = vpack.c.bf16 %v312_v54, %v304_v52  ;;  %v1340_v63 = vpack.c.bf16 %v327_v56, %v319_v55  ;;  %v318_v1 = vld [vmem:[%s1597_s12 + $0x80] sm:$0xff] }
  0x2f   : > { %1327 = vmatpush1.bf16.msra.mxu1 %v1326_v22  ;;  %1313 = vmatprep.subr.bf16.mxu0 %v1312_v23  ;;  %v326_v2 = vld [vmem:[%s1597_s12 + $0xc0] sm:$0xff]  ;;  %v1348_v3 = vpack.c.bf16 %v329_v60, %v321_v59  ;;  %v320_v4 = vld [vmem:[%s1597_s12 + $0x90] sm:$0xff]  ;;  %v335_v9 = vld [vmem:[%s1597_s12 + $0x108] sm:$0xf] }
  0x30   : > { %1329 = vmatprep.subr.bf16.mxu1 %v1328_v27  ;;  %641 = vmatprep.mubr.f32.mxu0 %v1437_v0  ;;  %v328_v5 = vld [vmem:[%s1597_s12 + $0xd0] sm:$0xff]  ;;  %v1342_v6 = vpack.c.bf16 %v326_v2, %v318_v1  ;;  %v337_v10 = vld [vmem:[%s1597_s12 + $0x118] sm:$0xf]  ;;  %v315_v11 = vld [vmem:[%s1597_s12 + $0x68] sm:$0xff] }
  0x31   : > { %718 = vmatprep.mubr.f32.mxu1 %v1437_v0  ;;  %v1350_v8 = vpack.c.bf16 %v328_v5, %v320_v4  ;;  %v309_v12 = vld [vmem:[%s1597_s12 + $0x38] sm:$0xff]  ;;  %v306_v14 = vld [vmem:[%s1597_s12 + $0x20] sm:$0xff]  ;;  %v308_v17 = vld [vmem:[%s1597_s12 + $0x30] sm:$0xff] }
  0x32   : > { %1315 = vmatpush1.bf16.msra.mxu0 %v1314_v33  ;;  %v317_v13 = vld [vmem:[%s1597_s12 + $0x78] sm:$0xff]  ;;  %v314_v15 = vld [vmem:[%s1597_s12 + $0x60] sm:$0xff]  ;;  %v316_v18 = vld [vmem:[%s1597_s12 + $0x70] sm:$0xff] }
  0x33   : > { %1331 = vmatpush1.bf16.msra.mxu1 %v1330_v34  ;;  %1317 = vmatprep.subr.bf16.mxu0 %v1316_v35  ;;  %v334_v16 = vld [vmem:[%s1597_s12 + $0x100] sm:$0xf]  ;;  %v336_v19 = vld [vmem:[%s1597_s12 + $0x110] sm:$0xf]  ;;  %v1360_v22 = vpack.c.bf16 %v317_v13, %v309_v12  ;;  %v1354_v23 = vpack.c.bf16 %v314_v15, %v306_v14  ;;  %v323_v24 = vld [vmem:[%s1597_s12 + $0xa8] sm:$0xff]  ;;  %v1362_v27 = vpack.c.bf16 %v316_v18, %v308_v17 }
  0x34   : > { %1333 = vmatprep.subr.bf16.mxu1 %v1332_v38  ;;  %v300_v20 = vld [vmem:[%s1716_s2] sm:$0xff]  ;;  %v331_v25 = vld [vmem:[%s1597_s12 + $0xe8] sm:$0xff]  ;;  %v325_v26 = vld [vmem:[%s1597_s12 + $0xb8] sm:$0xff] }
  0x35   : > { %v333_v28 = vld [vmem:[%s1597_s12 + $0xf8] sm:$0xff]  ;;  %v322_v29 = vld [vmem:[%s1597_s12 + $0xa0] sm:$0xff]  ;;  %v324_v31 = vld [vmem:[%s1597_s12 + $0xb0] sm:$0xff]  ;;  %v1356_v34 = vpack.c.bf16 %v331_v25, %v323_v24 }
  0x36   : > { %1319 = vmatpush1.bf16.msra.mxu0 %v1318_v41  ;;  %v330_v30 = vld [vmem:[%s1597_s12 + $0xe0] sm:$0xff]  ;;  %v332_v32 = vld [vmem:[%s1597_s12 + $0xf0] sm:$0xff]  ;;  %v301_v33 = vld [vmem:[%s1716_s2 + $0x8] sm:$0xf]  ;;  %v1364_v35 = vpack.c.bf16 %v333_v28, %v325_v26 }
  0x37   : > { %1335 = vmatpush1.bf16.msra.mxu1 %v1334_v42  ;;  %593 = vmatprep.subr.mxu0 %v413_v43  ;;  %v1358_v36 = vpack.c.bf16 %v330_v30, %v322_v29  ;;  %v1366_v37 = vpack.c.bf16 %v332_v32, %v324_v31  ;;  %v339_v38 = vld [vmem:[%s1597_s12 + $0x128] sm:$0xf]  ;;  %v341_v39 = vld [vmem:[%s1597_s12 + $0x138] sm:$0xf]  ;;  %v338_v40 = vld [vmem:[%s1597_s12 + $0x120] sm:$0xf] }
  0x38   : > { %670 = vmatprep.subr.mxu1 %v415_v44  ;;  %v340_v41 = vld [vmem:[%s1597_s12 + $0x130] sm:$0xf] }
  0x3a   : > { %594 = vmatpush1.msra.mxu0 %v412_v47 }
  0x3b   : > { %671 = vmatpush1.msra.mxu1 %v414_v57  ;;  %1337 = vmatprep.subr.bf16.mxu0 %v1336_v53 }
  0x3c   : > { %1345 = vmatprep.subr.bf16.mxu1 %v1344_v58  ;;  %1249 = vmatmul.mubr.msk.f32.vlgmr.msra.gmra.mrb[4].mxu0 %vm416_vm0, %v1554_v7 }
  0x3d   : > { %1251 = vmatmul.mubr.msk.f32.vlgmr.msra.gmra.mrb[4].mxu1 %vm416_vm0, %v1554_v7  ;;  %1339 = vmatpush1.bf16.msra.mxu0 %v1338_v61  ;;  %v307_v7 = vld [vmem:[%s1597_s12 + $0x28] sm:$0xff] }
  0x3e   : > { %1347 = vmatpush1.bf16.msra.mxu1 %v1346_v62  ;;  %1341 = vmatprep.subr.bf16.mxu0 %v1340_v63 }
  0x3f   : > { %1349 = vmatprep.subr.bf16.mxu1 %v1348_v3  ;;  %647 = vmatprep.mubr.f32.mxu0 %v1437_v0 }
  0x40   : > { %724 = vmatprep.mubr.f32.mxu1 %v1437_v0  ;;  %1250 = vmatmul.mubr.msk.f32.gmra.mrb[6].mxu0 %vm416_vm0, %v1571_v21 }
  0x41   : > { %1343 = vmatpush1.bf16.msra.mxu0 %v1342_v6  ;;  %1252 = vmatmul.mubr.msk.f32.gmra.mrb[6].mxu1 %vm416_vm0, %v1571_v21  ;;  %v1352_v21 = vpack.c.bf16 %v315_v11, %v307_v7 }
  0x42   : > { %1351 = vmatpush1.bf16.msra.mxu1 %v1350_v8  ;;  %1253 = vmatprep.subr.msk.mxu0 %vm738_vm1, %v335_v9 }
  0x43   : > { %1257 = vmatprep.subr.msk.mxu1 %vm738_vm1, %v337_v10  ;;  %827 = vmatprep.mubr.f32.mxu0 %v1437_v0 }
  0x44   : > { %904 = vmatprep.mubr.f32.mxu1 %v1437_v0 }
  0x45   : > { %1254 = vmatpush1.msk.msra.mxu0 %vm738_vm1, %v334_v16 }
  0x46   : > { %1258 = vmatpush1.msk.msra.mxu1 %vm738_vm1, %v336_v19  ;;  %1255 = vmatmul.mubr.msk.f32.vlgmr.msra.gmra.mrb[0].mxu0 %vm731_vm2, %v300_v20 }
  0x47   : > { %1259 = vmatmul.mubr.msk.f32.vlgmr.msra.gmra.mrb[0].mxu1 %vm731_vm2, %v300_v20  ;;  %1353 = vmatprep.subr.bf16.mxu0 %v1352_v21 }
  0x48   : > { %1361 = vmatprep.subr.bf16.mxu1 %v1360_v22  ;;  %1355 = vmatpush1.bf16.msra.mxu0 %v1354_v23 }
  0x49   : > { %1363 = vmatpush1.bf16.msra.mxu1 %v1362_v27  ;;  %833 = vmatprep.mubr.f32.mxu0 %v1437_v0 }
  0x4a   : > { %910 = vmatprep.mubr.f32.mxu1 %v1437_v0  ;;  %1256 = vmatmul.mubr.msk.f32.gmra.mrb[2].mxu0 %vm731_vm2, %v301_v33 }
  0x4b   : > { %1260 = vmatmul.mubr.msk.f32.gmra.mrb[2].mxu1 %vm731_vm2, %v301_v33  ;;  %1357 = vmatprep.subr.bf16.mxu0 %v1356_v34 }
  0x4c   : > { %1365 = vmatprep.subr.bf16.mxu1 %v1364_v35  ;;  %1359 = vmatpush1.bf16.msra.mxu0 %v1358_v36 }
  0x4d   : > { %1367 = vmatpush1.bf16.msra.mxu1 %v1366_v37  ;;  %1261 = vmatprep.subr.msk.mxu0 %vm738_vm1, %v339_v38 }
  0x4e   : > { %1265 = vmatprep.subr.msk.mxu1 %vm738_vm1, %v341_v39  ;;  %981 = vmatprep.mubr.f32.mxu0 %v1437_v0 }
  0x4f   : > { %1058 = vmatprep.mubr.f32.mxu1 %v1437_v0 }
  0x50   : > { %1262 = vmatpush1.msk.msra.mxu0 %vm738_vm1, %v338_v40 }
  0x51   : > { %1266 = vmatpush1.msk.msra.mxu1 %vm738_vm1, %v340_v41  ;;  %1263 = vmatmul.mubr.msk.f32.vlgmr.msra.gmra.mrb[4].mxu0 %vm731_vm2, %v300_v20 }
  0x52   : > { %1267 = vmatmul.mubr.msk.f32.vlgmr.msra.gmra.mrb[4].mxu1 %vm731_vm2, %v300_v20  ;;  %987 = vmatprep.mubr.f32.mxu0 %v1437_v0 }
  0x53   : > { %1064 = vmatprep.mubr.f32.mxu1 %v1437_v0 }
  0x55   : > { %1264 = vmatmul.mubr.msk.f32.gmra.mrb[6].mxu0 %vm731_vm2, %v301_v33 }
  0x56   : > { %1268 = vmatmul.mubr.msk.f32.gmra.mrb[6].mxu1 %vm731_vm2, %v301_v33 }
  0x88   : > { %v1076_v42 = vpop.permute.xlu0 %1075 }
  0x8c   : > { %v1081_v49 = vpop.permute.xlu0 %1080 }
 0x119   : > { %v829_v43 = vpop.f32.mrb[0].mxu0 }
 0x11a   : > { %v1083_v44 = vadd.f32 %v1076_v42, %v829_v43  ;;  %v906_v45 = vpop.f32.mrb[0].mxu1  ;;  %v831_v46 = vpop.f32.mrb[1].mxu0 }
 0x11b   : > { %v1085_v47 = vadd.f32 %v1076_v42, %v906_v45  ;;  %v1084_v0 = vadd.f32 %v1076_v42, %v831_v46  ;;  %v908_v48 = vpop.f32.mrb[1].mxu1 }
 0x11c   : > { %v1099_v50 = vmax.f32 %v1083_v44, 0.0  ;;  %v1086_v51 = vadd.f32 %v1076_v42, %v908_v48 }
 0x11d   : > { %v1101_v52 = vmax.f32 %v1085_v47, 0.0  ;;  %v1100_v53 = vmax.f32 %v1084_v0, 0.0  ;;  %v835_v54 = vpop.f32.mrb[2].mxu0 }
 0x11e   : > { %1115 = vst [vmem:[%s1687_s24] sm:$0xff] %v1099_v50  ;;  %v1102_v55 = vmax.f32 %v1086_v51, 0.0  ;;  %v1091_v56 = vadd.f32 %v1081_v49, %v835_v54  ;;  %v912_v57 = vpop.f32.mrb[2].mxu1  ;;  %v837_v58 = vpop.f32.mrb[3].mxu0 }
 0x11f   : > { %1117 = vst [vmem:[%s1687_s24 + $0x10] sm:$0xff] %v1101_v52  ;;  %1116 = vst [vmem:[%s1687_s24 + $0x8] sm:$0xff] %v1100_v53  ;;  %v1093_v59 = vadd.f32 %v1081_v49, %v912_v57  ;;  %v1092_v60 = vadd.f32 %v1081_v49, %v837_v58  ;;  %v914_v61 = vpop.f32.mrb[3].mxu1 }
 0x120   : > { %1118 = vst [vmem:[%s1687_s24 + $0x18] sm:$0xff] %v1102_v55  ;;  %v1107_v62 = vmax.f32 %v1091_v56, 0.0  ;;  %v1094_v63 = vadd.f32 %v1081_v49, %v914_v61 }
 0x121   : > { %v1109_v1 = vmax.f32 %v1093_v59, 0.0  ;;  %v1108_v2 = vmax.f32 %v1092_v60, 0.0 }
 0x122   : > { %1123 = vst [vmem:[%s1687_s24 + $0x40] sm:$0xf] %v1107_v62  ;;  %v1110_v3 = vmax.f32 %v1094_v63, 0.0 }
 0x123   : > { %1125 = vst [vmem:[%s1687_s24 + $0x50] sm:$0xf] %v1109_v1  ;;  %1124 = vst [vmem:[%s1687_s24 + $0x48] sm:$0xf] %v1108_v2 }
 0x124   : > { %1126 = vst [vmem:[%s1687_s24 + $0x58] sm:$0xf] %v1110_v3  ;;  %v983_v4 = vpop.f32.mrb[4].mxu0 }
 0x125   : > { %v1087_v5 = vadd.f32 %v1076_v42, %v983_v4  ;;  %v1060_v6 = vpop.f32.mrb[4].mxu1  ;;  %v985_v8 = vpop.f32.mrb[5].mxu0 }
 0x126   : > { %v1089_v9 = vadd.f32 %v1076_v42, %v1060_v6  ;;  %v1088_v10 = vadd.f32 %v1076_v42, %v985_v8  ;;  %v1062_v7 = vpop.f32.mrb[5].mxu1 }
 0x127   : > { %v1103_v11 = vmax.f32 %v1087_v5, 0.0  ;;  %v1090_v12 = vadd.f32 %v1076_v42, %v1062_v7 }
 0x128   : > { %v1105_v13 = vmax.f32 %v1089_v9, 0.0  ;;  %v1104_v14 = vmax.f32 %v1088_v10, 0.0  ;;  %v989_v15 = vpop.f32.mrb[6].mxu0 }
 0x129   : > { %1119 = vst [vmem:[%s1687_s24 + $0x20] sm:$0xff] %v1103_v11  ;;  %v1106_v16 = vmax.f32 %v1090_v12, 0.0  ;;  %v1095_v17 = vadd.f32 %v1081_v49, %v989_v15  ;;  %v1066_v18 = vpop.f32.mrb[6].mxu1  ;;  %v991_v19 = vpop.f32.mrb[7].mxu0 }
 0x12a   : > { %1121 = vst [vmem:[%s1687_s24 + $0x30] sm:$0xff] %v1105_v13  ;;  %1120 = vst [vmem:[%s1687_s24 + $0x28] sm:$0xff] %v1104_v14  ;;  %v1097_v20 = vadd.f32 %v1081_v49, %v1066_v18  ;;  %v1096_v21 = vadd.f32 %v1081_v49, %v991_v19  ;;  %v1068_v22 = vpop.f32.mrb[7].mxu1 }
 0x12b   : > { %1122 = vst [vmem:[%s1687_s24 + $0x38] sm:$0xff] %v1106_v16  ;;  %v1111_v23 = vmax.f32 %v1095_v17, 0.0  ;;  %v1098_v24 = vadd.f32 %v1081_v49, %v1068_v22 }
 0x12c   : > { %v1113_v25 = vmax.f32 %v1097_v20, 0.0  ;;  %v1112_v26 = vmax.f32 %v1096_v21, 0.0 }
 0x12d   : > { %1127 = vst [vmem:[%s1687_s24 + $0x60] sm:$0xf] %v1111_v23  ;;  %v1114_v27 = vmax.f32 %v1098_v24, 0.0 }
 0x12e   : > { %1129 = vst [vmem:[%s1687_s24 + $0x70] sm:$0xf] %v1113_v25  ;;  %1128 = vst [vmem:[%s1687_s24 + $0x68] sm:$0xf] %v1112_v26 }
 0x12f   : > { %1130 = vst [vmem:[%s1687_s24 + $0x78] sm:$0xf] %v1114_v27 }
 0x130 PF: > { %s15_s20 = sadd.s32 1, %s1435_s20   ;;  %s1720_s18 = smov %s1431_s19 }
 0x131   : > { %p12_p5 = scmp.ge.s32.totalorder %s15_s20, 4   ;;  %s1721_s19 = smov %s1723_s21 }
 0x133   :  { %14 = sbr.rel (!%p12_p5) target bundleno = 2 (0x2), region = 73 }

// kernel: aggregation_init_forward.21
= control target key start
LH: loop header
LB: loop body
LE: loop exit
PB: predicated region body
PF: predicated region fallthrough
CT: control target
= control target key end

     0   :  { %s1470_s18 = smov 0   ;;  %s1472_s19 = smov 0   ;;  %s1711_s0 = inlined_call_operand.vmem [shape: f32[2,108,1024], index: 0, kind: input, shape index: {}]   ;;  %s1712_s1 = inlined_call_operand.vmem [shape: f32[12,108], index: 1, kind: input, shape index: {}]   ;;  %s1713_s2 = inlined_call_operand.vmem [shape: f32[12,1], index: 2, kind: input, shape index: {}]   ;;  %s1714_s3 = inlined_call_operand.vmem [shape: f32[2,12], index: 3, kind: input, shape index: {}]   ;;  %s1715_s4 = inlined_call_operand.vmem [shape: f32[2,1], index: 4, kind: input, shape index: {}]   ;;  %s1716_s5 = inlined_call_operand.vmem [shape: f32[2,2,1024], index: 5, kind: output, shape index: {}]  }
   0x1   :  { %s1474_s20 = smov 0  }
   0x2 LB: > { %s27_s21 = sadd.s32 1, %s1430_s19  ;;  %p1202_p0 = scmp.ge.s32.totalorder %s1434_s20, 1  ;;  %s1434_s20 = sphi %s1474_s20, %s15_s20   ;;  %s1430_s19 = sphi %s1472_s19, %s1720_s19   ;;  %s1426_s18 = sphi %s1470_s18, %s1719_s18  }
   0x3   : > { %p29_p1 = scmp.ge.s32.totalorder %s27_s21, 2  ;;  %p208_p2 = scmp.lt.s32.totalorder %s1434_s20, 3 }
   0x5   : > { %s1722_s21 = smov (%p29_p1, %s27_s21), 0  ;;  %p209_p3 = pnand %p1202_p0, %p208_p2 }
   0x6   : > { %p245_p4 = scmp.lt.s32.totalorder (!%p209_p3), %s1426_s18, 1  ;;  %v1436_v0 = vmov (!%p209_p3), 0.0   ;;  %v378_v1 = vld [vmem:[%s1713_s2] sm:$0xff] (!%p209_p3)  ;;  %v1437_v2 = vmov (!%p209_p3), 0   ;;  %v379_v3 = vld [vmem:[%s1713_s2 + $0x8] sm:$0xf] (!%p209_p3) }
   0x7   : > { %212 = sbr.rel (%p209_p3) target bundleno = 528 (0x210), region = 40  ;;  %486 = vmatprep.mubr.f32.mxu0 (!%p209_p3), %v1436_v0  ;;  %563 = vmatprep.mubr.f32.mxu1 (!%p209_p3), %v1436_v0  ;;  %vm397_vm0 = vcmask (!%p209_p3), 1043456   ;;  %vm1438_vm1 = vmmov (!%p209_p3), 1   ;;  %vm390_vm3 = vcmask (!%p209_p3), 883712   ;;  %vm753_vm4 = vcmask (!%p209_p3), 97280  }
   0x8   : > { %1410 = vset.pattern.permute.xlu0 (!%p209_p3), %v1437_v2  ;;  %1411 = vset.pattern.permute.xlu1 (!%p209_p3), %v1437_v2  ;;  %vm1556_vm2 = vmpackc.low (!%p209_p3), %vm397_vm0, %vm1438_vm1 }
   0x9   : > { %382 = vperm.xlu0 (!%p209_p3), %1410, %v378_v1  }
   0xd   : > { %387 = vperm.xlu0 (!%p209_p3), %1410, %v379_v3  }
   0xe   : > { %s1724_s18 = smov (!%p245_p4, %s1426_s18), 1 }
   0xf   : > { %s1381_s24 = smul.u32 896, %s1724_s18  ;;  %s1236_s13 = sshll.u32 %s1724_s18, 4 }
  0x10   : > { %s262_s16 = scalar_lea.vmem %s1716_s5, %s1236_s13 }
  0x11   : > { %s1502_s29 = scalar_lea.vmem %s1711_s0, %s1381_s24 }
  0x12   : > { %v267_v4 = vld [vmem:[%s1502_s29 + $0x8] sm:$0xff]  ;;  %v269_v6 = vld [vmem:[%s1502_s29 + $0x18] sm:$0xff]  ;;  %v266_v9 = vld [vmem:[%s1502_s29] sm:$0xff] }
  0x13   : > { %v275_v5 = vld [vmem:[%s1502_s29 + $0x48] sm:$0xff]  ;;  %v277_v8 = vld [vmem:[%s1502_s29 + $0x58] sm:$0xff]  ;;  %v274_v10 = vld [vmem:[%s1502_s29 + $0x40] sm:$0xff] }
  0x14   : > { %v1237_v7 = vpack.c.bf16 %v275_v5, %v267_v4  ;;  %v1267_v11 = vpack.c.bf16 %v277_v8, %v269_v6  ;;  %v1239_v12 = vpack.c.bf16 %v274_v10, %v266_v9  ;;  %v268_v13 = vld [vmem:[%s1502_s29 + $0x10] sm:$0xff]  ;;  %v283_v15 = vld [vmem:[%s1502_s29 + $0x88] sm:$0xff]  ;;  %v285_v18 = vld [vmem:[%s1502_s29 + $0x98] sm:$0xff] }
  0x15   : > { %v276_v14 = vld [vmem:[%s1502_s29 + $0x50] sm:$0xff]  ;;  %v291_v17 = vld [vmem:[%s1502_s29 + $0xc8] sm:$0xff]  ;;  %v293_v19 = vld [vmem:[%s1502_s29 + $0xd8] sm:$0xff] }
  0x16   : > { %1238 = vmatprep.subr.bf16.mxu0 %v1237_v7  ;;  %v1269_v16 = vpack.c.bf16 %v276_v14, %v268_v13  ;;  %1268 = vmatprep.subr.bf16.mxu1 %v1267_v11  ;;  %v1241_v20 = vpack.c.bf16 %v291_v17, %v283_v15  ;;  %v1271_v21 = vpack.c.bf16 %v293_v19, %v285_v18  ;;  %v282_v22 = vld [vmem:[%s1502_s29 + $0x80] sm:$0xff]  ;;  %v284_v24 = vld [vmem:[%s1502_s29 + $0x90] sm:$0xff]  ;;  %v299_v27 = vld [vmem:[%s1502_s29 + $0x108] sm:$0xff] }
  0x17   : > { %1240 = vmatpush1.bf16.msra.mxu0 %v1239_v12  ;;  %v290_v23 = vld [vmem:[%s1502_s29 + $0xc0] sm:$0xff]  ;;  %v292_v26 = vld [vmem:[%s1502_s29 + $0xd0] sm:$0xff]  ;;  %v307_v28 = vld [vmem:[%s1502_s29 + $0x148] sm:$0xff] }
  0x18   : > { %1270 = vmatpush1.bf16.msra.mxu1 %v1269_v16  ;;  %v1243_v25 = vpack.c.bf16 %v290_v23, %v282_v22  ;;  %1242 = vmatprep.subr.bf16.mxu0 %v1241_v20  ;;  %v1273_v29 = vpack.c.bf16 %v292_v26, %v284_v24  ;;  %v1245_v30 = vpack.c.bf16 %v307_v28, %v299_v27  ;;  %v301_v31 = vld [vmem:[%s1502_s29 + $0x118] sm:$0xff]  ;;  %v298_v33 = vld [vmem:[%s1502_s29 + $0x100] sm:$0xff]  ;;  %v300_v36 = vld [vmem:[%s1502_s29 + $0x110] sm:$0xff] }
  0x19   : > { %1272 = vmatprep.subr.bf16.mxu1 %v1271_v21  ;;  %v309_v32 = vld [vmem:[%s1502_s29 + $0x158] sm:$0xff]  ;;  %v306_v35 = vld [vmem:[%s1502_s29 + $0x140] sm:$0xff]  ;;  %v308_v37 = vld [vmem:[%s1502_s29 + $0x150] sm:$0xff] }
  0x1a   : > { %v1275_v34 = vpack.c.bf16 %v309_v32, %v301_v31  ;;  %v1247_v38 = vpack.c.bf16 %v306_v35, %v298_v33  ;;  %v315_v39 = vld [vmem:[%s1502_s29 + $0x188] sm:$0xff]  ;;  %v317_v41 = vld [vmem:[%s1502_s29 + $0x198] sm:$0xff]  ;;  %v1277_v42 = vpack.c.bf16 %v308_v37, %v300_v36  ;;  %v314_v45 = vld [vmem:[%s1502_s29 + $0x180] sm:$0xff] }
  0x1b   : > { %1244 = vmatpush1.bf16.msra.mxu0 %v1243_v25  ;;  %v323_v40 = vld [vmem:[%s1502_s29 + $0x1c8] sm:$0xff]  ;;  %v325_v44 = vld [vmem:[%s1502_s29 + $0x1d8] sm:$0xff]  ;;  %v322_v46 = vld [vmem:[%s1502_s29 + $0x1c0] sm:$0xff] }
  0x1c   : > { %1274 = vmatpush1.bf16.msra.mxu1 %v1273_v29  ;;  %1246 = vmatprep.subr.bf16.mxu0 %v1245_v30  ;;  %v1249_v43 = vpack.c.bf16 %v323_v40, %v315_v39  ;;  %v1279_v47 = vpack.c.bf16 %v325_v44, %v317_v41  ;;  %v316_v48 = vld [vmem:[%s1502_s29 + $0x190] sm:$0xff]  ;;  %v331_v50 = vld [vmem:[%s1502_s29 + $0x208] sm:$0xff]  ;;  %v333_v52 = vld [vmem:[%s1502_s29 + $0x218] sm:$0xff]  ;;  %v1251_v54 = vpack.c.bf16 %v322_v46, %v314_v45 }
  0x1d   : > { %1276 = vmatprep.subr.bf16.mxu1 %v1275_v34  ;;  %v324_v49 = vld [vmem:[%s1502_s29 + $0x1d0] sm:$0xff]  ;;  %v339_v51 = vld [vmem:[%s1502_s29 + $0x248] sm:$0xff]  ;;  %v341_v53 = vld [vmem:[%s1502_s29 + $0x258] sm:$0xff] }
  0x1e   : > { %v1281_v55 = vpack.c.bf16 %v324_v49, %v316_v48  ;;  %v1253_v56 = vpack.c.bf16 %v339_v51, %v331_v50  ;;  %v330_v57 = vld [vmem:[%s1502_s29 + $0x200] sm:$0xff]  ;;  %v332_v59 = vld [vmem:[%s1502_s29 + $0x210] sm:$0xff]  ;;  %v1283_v60 = vpack.c.bf16 %v341_v53, %v333_v52  ;;  %v347_v62 = vld [vmem:[%s1502_s29 + $0x288] sm:$0xff] }
  0x1f   : > { %1248 = vmatpush1.bf16.msra.mxu0 %v1247_v38  ;;  %v338_v58 = vld [vmem:[%s1502_s29 + $0x240] sm:$0xff]  ;;  %v340_v61 = vld [vmem:[%s1502_s29 + $0x250] sm:$0xff]  ;;  %v355_v63 = vld [vmem:[%s1502_s29 + $0x2c8] sm:$0xff] }
  0x20   : > { %1278 = vmatpush1.bf16.msra.mxu1 %v1277_v42  ;;  %1250 = vmatprep.subr.bf16.mxu0 %v1249_v43  ;;  %v349_v1 = vld [vmem:[%s1502_s29 + $0x298] sm:$0xff]  ;;  %v1255_v3 = vpack.c.bf16 %v338_v58, %v330_v57  ;;  %v1285_v4 = vpack.c.bf16 %v340_v61, %v332_v59  ;;  %v1257_v5 = vpack.c.bf16 %v355_v63, %v347_v62  ;;  %v346_v6 = vld [vmem:[%s1502_s29 + $0x280] sm:$0xff]  ;;  %v348_v8 = vld [vmem:[%s1502_s29 + $0x290] sm:$0xff] }
  0x21   : > { %1280 = vmatprep.subr.bf16.mxu1 %v1279_v47  ;;  %v357_v2 = vld [vmem:[%s1502_s29 + $0x2d8] sm:$0xff]  ;;  %v354_v7 = vld [vmem:[%s1502_s29 + $0x2c0] sm:$0xff]  ;;  %v356_v10 = vld [vmem:[%s1502_s29 + $0x2d0] sm:$0xff] }
  0x22   : > { %v1287_v9 = vpack.c.bf16 %v357_v2, %v349_v1  ;;  %v363_v11 = vld [vmem:[%s1502_s29 + $0x308] sm:$0xff]  ;;  %v365_v13 = vld [vmem:[%s1502_s29 + $0x318] sm:$0xff]  ;;  %v1259_v15 = vpack.c.bf16 %v354_v7, %v346_v6  ;;  %v1289_v17 = vpack.c.bf16 %v356_v10, %v348_v8  ;;  %v362_v19 = vld [vmem:[%s1502_s29 + $0x300] sm:$0xff] }
  0x23   : > { %1252 = vmatpush1.bf16.msra.mxu0 %v1251_v54  ;;  %v371_v12 = vld [vmem:[%s1502_s29 + $0x348] sm:$0xf]  ;;  %v373_v14 = vld [vmem:[%s1502_s29 + $0x358] sm:$0xf]  ;;  %v370_v20 = vld [vmem:[%s1502_s29 + $0x340] sm:$0xf] }
  0x24   : > { %1282 = vmatpush1.bf16.msra.mxu1 %v1281_v55  ;;  %1254 = vmatprep.subr.bf16.mxu0 %v1253_v56  ;;  %v1261_v18 = vpack.c.bf16 %v371_v12, %v363_v11  ;;  %v364_v21 = vld [vmem:[%s1502_s29 + $0x310] sm:$0xff]  ;;  %v1291_v22 = vpack.c.bf16 %v373_v14, %v365_v13  ;;  %v271_v24 = vld [vmem:[%s1502_s29 + $0x28] sm:$0xff]  ;;  %v273_v26 = vld [vmem:[%s1502_s29 + $0x38] sm:$0xff]  ;;  %v1264_v28 = vpack.c.bf16 %v370_v20, %v362_v19 }
  0x25   : > { %1284 = vmatprep.subr.bf16.mxu1 %v1283_v60  ;;  %v372_v23 = vld [vmem:[%s1502_s29 + $0x350] sm:$0xf]  ;;  %v279_v25 = vld [vmem:[%s1502_s29 + $0x68] sm:$0xff]  ;;  %v281_v27 = vld [vmem:[%s1502_s29 + $0x78] sm:$0xff] }
  0x26   : > { %v1294_v29 = vpack.c.bf16 %v372_v23, %v364_v21  ;;  %v1297_v30 = vpack.c.bf16 %v279_v25, %v271_v24  ;;  %v270_v31 = vld [vmem:[%s1502_s29 + $0x20] sm:$0xff]  ;;  %v1327_v33 = vpack.c.bf16 %v281_v27, %v273_v26  ;;  %v272_v34 = vld [vmem:[%s1502_s29 + $0x30] sm:$0xff]  ;;  %v287_v36 = vld [vmem:[%s1502_s29 + $0xa8] sm:$0xff] }
  0x27   : > { %1256 = vmatpush1.bf16.msra.mxu0 %v1255_v3  ;;  %v278_v32 = vld [vmem:[%s1502_s29 + $0x60] sm:$0xff]  ;;  %v280_v35 = vld [vmem:[%s1502_s29 + $0x70] sm:$0xff]  ;;  %v295_v37 = vld [vmem:[%s1502_s29 + $0xe8] sm:$0xff] }
  0x28   : > { %1286 = vmatpush1.bf16.msra.mxu1 %v1285_v4  ;;  %1258 = vmatprep.subr.bf16.mxu0 %v1257_v5  ;;  %v1583_v38 = vld [vmem:[%s1712_s1] sm:$0xff]  ;;  %v1299_v39 = vpack.c.bf16 %v278_v32, %v270_v31  ;;  %v289_v40 = vld [vmem:[%s1502_s29 + $0xb8] sm:$0xff]  ;;  %v1329_v42 = vpack.c.bf16 %v280_v35, %v272_v34  ;;  %v288_v45 = vld [vmem:[%s1502_s29 + $0xb0] sm:$0xff]  ;;  %v1301_v46 = vpack.c.bf16 %v295_v37, %v287_v36 }
  0x29   : > { %1288 = vmatprep.subr.bf16.mxu1 %v1287_v9  ;;  %v297_v41 = vld [vmem:[%s1502_s29 + $0xf8] sm:$0xff]  ;;  %v286_v43 = vld [vmem:[%s1502_s29 + $0xa0] sm:$0xff]  ;;  %v296_v47 = vld [vmem:[%s1502_s29 + $0xf0] sm:$0xff] }
  0x2a   : > { %v294_v44 = vld [vmem:[%s1502_s29 + $0xe0] sm:$0xff]  ;;  %v303_v48 = vld [vmem:[%s1502_s29 + $0x128] sm:$0xff]  ;;  %v1331_v50 = vpack.c.bf16 %v297_v41, %v289_v40  ;;  %v305_v51 = vld [vmem:[%s1502_s29 + $0x138] sm:$0xff]  ;;  %v1333_v55 = vpack.c.bf16 %v296_v47, %v288_v45 }
  0x2b   : > { %1260 = vmatpush1.bf16.msra.mxu0 %v1259_v15  ;;  %v311_v49 = vld [vmem:[%s1502_s29 + $0x168] sm:$0xff]  ;;  %v313_v52 = vld [vmem:[%s1502_s29 + $0x178] sm:$0xff]  ;;  %v1303_v54 = vpack.c.bf16 %v294_v44, %v286_v43  ;;  %v302_v57 = vld [vmem:[%s1502_s29 + $0x120] sm:$0xff] }
  0x2c   : > { %1290 = vmatpush1.bf16.msra.mxu1 %v1289_v17  ;;  %1263 = vmatprep.subr.msk.bf16.mxu0 %vm1556_vm2, %v1261_v18  ;;  %v1604_v53 = vld [vmem:[%s1712_s1 + $0x8] sm:$0xf]  ;;  %v1305_v56 = vpack.c.bf16 %v311_v49, %v303_v48  ;;  %v310_v58 = vld [vmem:[%s1502_s29 + $0x160] sm:$0xff]  ;;  %v304_v59 = vld [vmem:[%s1502_s29 + $0x130] sm:$0xff]  ;;  %v1335_v60 = vpack.c.bf16 %v313_v52, %v305_v51 }
  0x2d   : > { %1293 = vmatprep.subr.msk.bf16.mxu1 %vm1556_vm2, %v1291_v22  ;;  %v312_v61 = vld [vmem:[%s1502_s29 + $0x170] sm:$0xff]  ;;  %v319_v62 = vld [vmem:[%s1502_s29 + $0x1a8] sm:$0xff]  ;;  %v321_v1 = vld [vmem:[%s1502_s29 + $0x1b8] sm:$0xff]  ;;  %v1307_v3 = vpack.c.bf16 %v310_v58, %v302_v57 }
  0x2e   : > { %v327_v63 = vld [vmem:[%s1502_s29 + $0x1e8] sm:$0xff]  ;;  %v329_v2 = vld [vmem:[%s1502_s29 + $0x1f8] sm:$0xff]  ;;  %v1337_v4 = vpack.c.bf16 %v312_v61, %v304_v59  ;;  %v318_v6 = vld [vmem:[%s1502_s29 + $0x1a0] sm:$0xff] }
  0x2f   : > { %1266 = vmatpush1.bf16.msk.msra.mxu0 %vm1556_vm2, %v1264_v28  ;;  %v1309_v5 = vpack.c.bf16 %v327_v63, %v319_v62  ;;  %v326_v7 = vld [vmem:[%s1502_s29 + $0x1e0] sm:$0xff]  ;;  %v320_v8 = vld [vmem:[%s1502_s29 + $0x1b0] sm:$0xff]  ;;  %v1339_v9 = vpack.c.bf16 %v329_v2, %v321_v1  ;;  %v335_v11 = vld [vmem:[%s1502_s29 + $0x228] sm:$0xff] }
  0x30   : > { %1296 = vmatpush1.bf16.msk.msra.mxu1 %vm1556_vm2, %v1294_v29  ;;  %1298 = vmatprep.subr.bf16.mxu0 %v1297_v30  ;;  %v328_v10 = vld [vmem:[%s1502_s29 + $0x1f0] sm:$0xff]  ;;  %v343_v12 = vld [vmem:[%s1502_s29 + $0x268] sm:$0xff]  ;;  %v337_v13 = vld [vmem:[%s1502_s29 + $0x238] sm:$0xff]  ;;  %v1311_v15 = vpack.c.bf16 %v326_v7, %v318_v6 }
  0x31   : > { %1328 = vmatprep.subr.bf16.mxu1 %v1327_v33  ;;  %v345_v14 = vld [vmem:[%s1502_s29 + $0x278] sm:$0xff]  ;;  %v1341_v17 = vpack.c.bf16 %v328_v10, %v320_v8  ;;  %v1313_v18 = vpack.c.bf16 %v343_v12, %v335_v11  ;;  %v334_v19 = vld [vmem:[%s1502_s29 + $0x220] sm:$0xff]  ;;  %v336_v21 = vld [vmem:[%s1502_s29 + $0x230] sm:$0xff] }
  0x32   : > { %1208 = vmatmul.mubr.msk.f32.vlgmr.msra.gmra.mrb[0].mxu0 %vm390_vm3, %v1583_v38  ;;  %v342_v20 = vld [vmem:[%s1502_s29 + $0x260] sm:$0xff]  ;;  %v1343_v22 = vpack.c.bf16 %v345_v14, %v337_v13  ;;  %v344_v23 = vld [vmem:[%s1502_s29 + $0x270] sm:$0xff]  ;;  %v351_v24 = vld [vmem:[%s1502_s29 + $0x2a8] sm:$0xff] }
  0x33   : > { %1212 = vmatmul.mubr.msk.f32.vlgmr.msra.gmra.mrb[0].mxu1 %vm390_vm3, %v1583_v38  ;;  %1300 = vmatpush1.bf16.msra.mxu0 %v1299_v39  ;;  %v359_v25 = vld [vmem:[%s1502_s29 + $0x2e8] sm:$0xff]  ;;  %v353_v26 = vld [vmem:[%s1502_s29 + $0x2b8] sm:$0xff]  ;;  %v1315_v28 = vpack.c.bf16 %v342_v20, %v334_v19  ;;  %v1345_v29 = vpack.c.bf16 %v344_v23, %v336_v21  ;;  %v350_v31 = vld [vmem:[%s1502_s29 + $0x2a0] sm:$0xff] }
  0x34   : > { %1330 = vmatpush1.bf16.msra.mxu1 %v1329_v42  ;;  %492 = vmatprep.mubr.f32.mxu0 %v1436_v0  ;;  %v361_v27 = vld [vmem:[%s1502_s29 + $0x2f8] sm:$0xff]  ;;  %v1317_v30 = vpack.c.bf16 %v359_v25, %v351_v24  ;;  %v358_v32 = vld [vmem:[%s1502_s29 + $0x2e0] sm:$0xff]  ;;  %v352_v33 = vld [vmem:[%s1502_s29 + $0x2b0] sm:$0xff] }
  0x35   : > { %569 = vmatprep.mubr.f32.mxu1 %v1436_v0  ;;  %1302 = vmatprep.subr.bf16.mxu0 %v1301_v46  ;;  %v1347_v34 = vpack.c.bf16 %v361_v27, %v353_v26  ;;  %v360_v35 = vld [vmem:[%s1502_s29 + $0x2f0] sm:$0xff]  ;;  %v367_v36 = vld [vmem:[%s1502_s29 + $0x328] sm:$0xff]  ;;  %v369_v39 = vld [vmem:[%s1502_s29 + $0x338] sm:$0xff]  ;;  %v1319_v41 = vpack.c.bf16 %v358_v32, %v350_v31 }
  0x36   : > { %1209 = vmatmul.mubr.msk.f32.gmra.mrb[2].mxu0 %vm390_vm3, %v1604_v53  ;;  %1332 = vmatprep.subr.bf16.mxu1 %v1331_v50  ;;  %v375_v37 = vld [vmem:[%s1502_s29 + $0x368] sm:$0xf]  ;;  %v377_v40 = vld [vmem:[%s1502_s29 + $0x378] sm:$0xf]  ;;  %v1349_v42 = vpack.c.bf16 %v360_v35, %v352_v33  ;;  %v366_v44 = vld [vmem:[%s1502_s29 + $0x320] sm:$0xff] }
  0x37   : > { %1213 = vmatmul.mubr.msk.f32.gmra.mrb[2].mxu1 %vm390_vm3, %v1604_v53  ;;  %1304 = vmatpush1.bf16.msra.mxu0 %v1303_v54  ;;  %v1321_v43 = vpack.c.bf16 %v375_v37, %v367_v36  ;;  %v374_v45 = vld [vmem:[%s1502_s29 + $0x360] sm:$0xf]  ;;  %v1351_v46 = vpack.c.bf16 %v377_v40, %v369_v39  ;;  %v368_v47 = vld [vmem:[%s1502_s29 + $0x330] sm:$0xff] }
  0x38   : > { %1334 = vmatpush1.bf16.msra.mxu1 %v1333_v55  ;;  %1306 = vmatprep.subr.bf16.mxu0 %v1305_v56  ;;  %v376_v48 = vld [vmem:[%s1502_s29 + $0x370] sm:$0xf]  ;;  %v1324_v49 = vpack.c.bf16 %v374_v45, %v366_v44  ;;  %v747_v51 = vld [vmem:[%s1715_s4] sm:$0x3] }
  0x39   : > { %1336 = vmatprep.subr.bf16.mxu1 %v1335_v60  ;;  %640 = vmatprep.mubr.f32.mxu0 %v1436_v0  ;;  %v1354_v50 = vpack.c.bf16 %v376_v48, %v368_v47  ;;  %v746_v19 = vld [vmem:[%s1714_s3] sm:$0x3]  ;;  %v1439_v48 = vmov 1983009808  }
  0x3a   : > { %717 = vmatprep.mubr.f32.mxu1 %v1436_v0  ;;  %750 = vperm.xlu1 %1411, %v747_v51  }
  0x3b   : > { %1308 = vmatpush1.bf16.msra.mxu0 %v1307_v3 }
  0x3c   : > { %1338 = vmatpush1.bf16.msra.mxu1 %v1337_v4  ;;  %1310 = vmatprep.subr.bf16.mxu0 %v1309_v5 }
  0x3d   : > { %1340 = vmatprep.subr.bf16.mxu1 %v1339_v9 }
  0x3f   : > { %1312 = vmatpush1.bf16.msra.mxu0 %v1311_v15 }
  0x40   : > { %1342 = vmatpush1.bf16.msra.mxu1 %v1341_v17  ;;  %1314 = vmatprep.subr.bf16.mxu0 %v1313_v18 }
  0x41   : > { %1344 = vmatprep.subr.bf16.mxu1 %v1343_v22 }
  0x43   : > { %1316 = vmatpush1.bf16.msra.mxu0 %v1315_v28 }
  0x44   : > { %1346 = vmatpush1.bf16.msra.mxu1 %v1345_v29  ;;  %1318 = vmatprep.subr.bf16.mxu0 %v1317_v30 }
  0x45   : > { %1348 = vmatprep.subr.bf16.mxu1 %v1347_v34 }
  0x47   : > { %1320 = vmatpush1.bf16.msra.mxu0 %v1319_v41 }
  0x48   : > { %1350 = vmatpush1.bf16.msra.mxu1 %v1349_v42  ;;  %1323 = vmatprep.subr.msk.bf16.mxu0 %vm1556_vm2, %v1321_v43 }
  0x49   : > { %1353 = vmatprep.subr.msk.bf16.mxu1 %vm1556_vm2, %v1351_v46 }
  0x4b   : > { %1326 = vmatpush1.bf16.msk.msra.mxu0 %vm1556_vm2, %v1324_v49  ;;  %v1076_v49 = vunpack.c.l.s4 %v1439_v48 }
  0x4c   : > { %1356 = vmatpush1.bf16.msk.msra.mxu1 %vm1556_vm2, %v1354_v50  ;;  %v1078_v50 = vlaneseq }
  0x4e   : > { %1216 = vmatmul.mubr.msk.f32.vlgmr.msra.gmra.mrb[4].mxu0 %vm390_vm3, %v1583_v38 }
  0x4f   : > { %1220 = vmatmul.mubr.msk.f32.vlgmr.msra.gmra.mrb[4].mxu1 %vm390_vm3, %v1583_v38  ;;  %646 = vmatprep.mubr.f32.mxu0 %v1436_v0 }
  0x50   : > { %723 = vmatprep.mubr.f32.mxu1 %v1436_v0 }
  0x52   : > { %1217 = vmatmul.mubr.msk.f32.gmra.mrb[6].mxu0 %vm390_vm3, %v1604_v53 }
  0x53   : > { %1221 = vmatmul.mubr.msk.f32.gmra.mrb[6].mxu1 %vm390_vm3, %v1604_v53  ;;  %845 = vmatprep.mubr.f32.mxu0 %v1436_v0 }
  0x54   : > { %916 = vmatprep.mubr.f32.mxu1 %v1436_v0 }
  0x88   : > { %v383_v38 = vpop.permute.xlu0 %382 }
  0x8c   : > { %v388_v57 = vpop.permute.xlu0 %387 }
  0xb9   : > { %v751_v51 = vpop.permute.xlu1 %750 }
 0x105   : > { %v488_v52 = vpop.f32.mrb[0].mxu0 }
 0x106   : > { %v565_v54 = vpop.f32.mrb[0].mxu1  ;;  %v490_v55 = vpop.f32.mrb[1].mxu0  ;;  %v489_v58 = vadd.f32 %v488_v52, %v383_v38  ;;  %v1079_v52 = vshrl.u32 %v1078_v50, 7 }
 0x107   : > { %v567_v56 = vpop.f32.mrb[1].mxu1  ;;  %v566_v59 = vadd.f32 %v565_v54, %v383_v38  ;;  %v491_v60 = vadd.f32 %v490_v55, %v383_v38 }
 0x108   : > { %v568_v53 = vadd.f32 %v567_v56, %v383_v38  ;;  %v730_v5 = vmax.f32 %v489_v58, 0.0 }
 0x109   : > { %v494_v61 = vpop.f32.mrb[2].mxu0  ;;  %v732_v8 = vmax.f32 %v566_v59, 0.0  ;;  %v731_v9 = vmax.f32 %v491_v60, 0.0 }
 0x10a   : > { %v495_v62 = vadd.f32 %v494_v61, %v388_v57  ;;  %v571_v63 = vpop.f32.mrb[2].mxu1  ;;  %v496_v1 = vpop.f32.mrb[3].mxu0  ;;  %v733_v12 = vmax.f32 %v568_v53, 0.0 }
 0x10b   : > { %v572_v2 = vadd.f32 %v571_v63, %v388_v57  ;;  %v497_v3 = vadd.f32 %v496_v1, %v388_v57  ;;  %v573_v4 = vpop.f32.mrb[3].mxu1 }
 0x10c   : > { %v738_v6 = vmax.f32 %v495_v62, 0.0  ;;  %v574_v7 = vadd.f32 %v573_v4, %v388_v57 }
 0x10d   : > { %v740_v10 = vmax.f32 %v572_v2, 0.0  ;;  %v739_v11 = vmax.f32 %v497_v3, 0.0 }
 0x10e   : > { %v1360_v13 = vpack.c.bf16 %v738_v6, %v730_v5  ;;  %v741_v14 = vmax.f32 %v574_v7, 0.0 }
 0x10f   : > { %v1366_v15 = vpack.c.bf16 %v740_v10, %v732_v8  ;;  %v1357_v17 = vpack.c.bf16 %v739_v11, %v731_v9 }
 0x110   : > { %v1363_v18 = vpack.c.bf16 %v741_v14, %v733_v12 }
 0x111   : > { %1359 = vmatprep.subr.msk.bf16.mxu0 %vm1556_vm2, %v1357_v17 }
 0x112   : > { %1365 = vmatprep.subr.msk.bf16.mxu1 %vm1556_vm2, %v1363_v18  ;;  %1362 = vmatpush1.bf16.msk.msra.mxu0 %vm1556_vm2, %v1360_v13 }
 0x113   : > { %1368 = vmatpush1.bf16.msk.msra.mxu1 %vm1556_vm2, %v1366_v15 }
 0x115   : > { %1224 = vmatmul.mubr.msk.f32.vlgmr.msra.gmra.mrb[8].mxu0 %vm753_vm4, %v746_v19 }
 0x116   : > { %1227 = vmatmul.mubr.msk.f32.vlgmr.msra.gmra.mrb[8].mxu1 %vm753_vm4, %v746_v19  ;;  %987 = vmatprep.mubr.f32.mxu0 %v1436_v0 }
 0x117   : > { %1058 = vmatprep.mubr.f32.mxu1 %v1436_v0 }
 0x121   : > { %v642_v20 = vpop.f32.mrb[4].mxu0 }
 0x122   : > { %v719_v21 = vpop.f32.mrb[4].mxu1  ;;  %v644_v22 = vpop.f32.mrb[5].mxu0  ;;  %v643_v24 = vadd.f32 %v642_v20, %v383_v38 }
 0x123   : > { %v721_v23 = vpop.f32.mrb[5].mxu1  ;;  %v720_v25 = vadd.f32 %v719_v21, %v383_v38  ;;  %v645_v26 = vadd.f32 %v644_v22, %v383_v38 }
 0x124   : > { %v722_v28 = vadd.f32 %v721_v23, %v383_v38  ;;  %v734_v35 = vmax.f32 %v643_v24, 0.0  ;;  %v1077_v38 = vunpack.c.0.s8 %v1076_v49 }
 0x125   : > { %v648_v27 = vpop.f32.mrb[6].mxu0  ;;  %v736_v39 = vmax.f32 %v720_v25, 0.0  ;;  %v735_v0 = vmax.f32 %v645_v26, 0.0 }
 0x126   : > { %v649_v29 = vadd.f32 %v648_v27, %v388_v57  ;;  %v725_v30 = vpop.f32.mrb[6].mxu1  ;;  %v650_v31 = vpop.f32.mrb[7].mxu0  ;;  %v737_v42 = vmax.f32 %v722_v28, 0.0  ;;  %v1080_v59 = vsub.s32 %v1077_v38, %v1079_v52 }
 0x127   : > { %v726_v32 = vadd.f32 %v725_v30, %v388_v57  ;;  %v651_v33 = vadd.f32 %v650_v31, %v388_v57  ;;  %v727_v34 = vpop.f32.mrb[7].mxu1 }
 0x128   : > { %v742_v36 = vmax.f32 %v649_v29, 0.0  ;;  %v728_v37 = vadd.f32 %v727_v34, %v388_v57 }
 0x129   : > { %v744_v40 = vmax.f32 %v726_v32, 0.0  ;;  %v743_v41 = vmax.f32 %v651_v33, 0.0 }
 0x12a   : > { %v1372_v43 = vpack.c.bf16 %v742_v36, %v734_v35  ;;  %v745_v44 = vmax.f32 %v728_v37, 0.0 }
 0x12b   : > { %v1378_v45 = vpack.c.bf16 %v744_v40, %v736_v39  ;;  %v1369_v46 = vpack.c.bf16 %v743_v41, %v735_v0 }
 0x12c   : > { %v1375_v47 = vpack.c.bf16 %v745_v44, %v737_v42 }
 0x12d   : > { %1371 = vmatprep.subr.msk.bf16.mxu0 %vm1556_vm2, %v1369_v46 }
 0x12e   : > { %1377 = vmatprep.subr.msk.bf16.mxu1 %vm1556_vm2, %v1375_v47  ;;  %1374 = vmatpush1.bf16.msk.msra.mxu0 %vm1556_vm2, %v1372_v43 }
 0x12f   : > { %1380 = vmatpush1.bf16.msk.msra.mxu1 %vm1556_vm2, %v1378_v45 }
 0x131   : > { %1230 = vmatmul.mubr.msk.f32.vlgmr.msra.gmra.mrb[10].mxu0 %vm753_vm4, %v746_v19 }
 0x132   : > { %1233 = vmatmul.mubr.msk.f32.vlgmr.msra.gmra.mrb[10].mxu1 %vm753_vm4, %v746_v19 }
 0x1e8   : > { %v847_v54 = vpop.f32.mrb[8].mxu0 }
 0x1e9   : > { %v918_v55 = vpop.f32.mrb[8].mxu1  ;;  %v848_v56 = vadd.f32 %v847_v54, %v751_v51  ;;  %v849_v57 = vpop.f32.mrb[9].mxu0 }
 0x1ea   : > { %v850_v58 = vadd.f32 %v849_v57, %v751_v51  ;;  %v919_v60 = vadd.f32 %v918_v55, %v751_v51  ;;  %v920_v16 = vpop.f32.mrb[9].mxu1 }
 0x1eb   : > { %v921_v61 = vadd.f32 %v920_v16, %v751_v51 }
 0x1ec   : > { %v1073_v53 = vcombine.low %v848_v56, %v850_v58 }
 0x1ed   : > { %v1074_v62 = vcombine.low %v919_v60, %v921_v61 }
 0x1ee   : > { %v1081_v63 = vrot.slane %v1073_v53, %v1080_v59 }
 0x1ef   : > { %v1088_v1 = vrot.slane %v1074_v62, %v1080_v59 }
 0x1f1   : > { %v1089_v2 = vcombine.low %v1081_v63, %v1088_v1 }
 0x1f3   : > { %1109 = vst [vmem:[%s262_s16] sm:$0xff] %v1089_v2 }
 0x204   : > { %v989_v3 = vpop.f32.mrb[10].mxu0 }
 0x205   : > { %v990_v4 = vadd.f32 %v989_v3, %v751_v51  ;;  %v1060_v5 = vpop.f32.mrb[10].mxu1  ;;  %v991_v6 = vpop.f32.mrb[11].mxu0 }
 0x206   : > { %v1061_v7 = vadd.f32 %v1060_v5, %v751_v51  ;;  %v992_v8 = vadd.f32 %v991_v6, %v751_v51  ;;  %v1062_v9 = vpop.f32.mrb[11].mxu1 }
 0x207   : > { %v1063_v10 = vadd.f32 %v1062_v9, %v751_v51 }
 0x208   : > { %v1090_v11 = vcombine.low %v990_v4, %v992_v8 }
 0x209   : > { %v1091_v12 = vcombine.low %v1061_v7, %v1063_v10 }
 0x20a   : > { %v1098_v13 = vrot.slane %v1090_v11, %v1080_v59 }
 0x20b   : > { %v1105_v14 = vrot.slane %v1091_v12, %v1080_v59 }
 0x20d   : > { %v1106_v15 = vcombine.low %v1098_v13, %v1105_v14 }
 0x20f   : > { %1110 = vst [vmem:[%s262_s16 + $0x8] sm:$0xff] %v1106_v15 }
 0x210 PF: > { %s15_s20 = sadd.s32 1, %s1434_s20   ;;  %s1719_s18 = smov %s1430_s19 }
 0x211   : > { %p12_p5 = scmp.ge.s32.totalorder %s15_s20, 4   ;;  %s1720_s19 = smov %s1722_s21 }
 0x213   :  { %14 = sbr.rel (!%p12_p5) target bundleno = 2 (0x2), region = 70 }

</bundles_post_ra>
